<compile_context>
chip_gen: v7x
topology: tpu7x:2x2x1
jax: 0.10.0
libtpu: 0.0.40
codegen_flags: <defaults>
</compile_context>

<pallas_src>
import functools

import jax
import jax.numpy as jnp
from jax.experimental import pallas as pl
from jax.experimental.pallas import tpu as pltpu

F32 = jnp.float32
BF16 = jnp.bfloat16
BN_EPS = 1e-5
C_PAD = 128                      # lane-dense channel slab
N_BLOCKS = 3
N_CHANNELS = [16, 24, 32, 48]


# ----------------------------- in-kernel helpers ----------------------------

def _dot(patch, w, bias=None):
    """Single MXU dot per conv: bf16 operands, f32 accumulation, + bias row."""
    y = jnp.dot(patch.astype(BF16), w, preferred_element_type=jnp.float32)
    return y if bias is None else y + bias


def _patch_stride1(xb, K, pad, t_out, c_in):
    """Sliding-window patch for a stride-1 conv on ONE sample.

    xb: (t_in, 128) f32.  Returns (t_out, K * c_in) f32 (taps along lanes).
    """
    z = jnp.zeros((pad, xb.shape[1]), xb.dtype)
    xp = jnp.concatenate([z, xb, z], axis=0)
    taps = [xp[k:k + t_out, :c_in] for k in range(K)]
    return taps[0] if K == 1 else jnp.concatenate(taps, axis=-1)


def _even_odd_rows(xp):
    """Even / odd time rows of (L, 128) (static L) via static row slices."""
    L = xp.shape[0]
    ev = jnp.concatenate([xp[i:i + 1, :] for i in range(0, L, 2)], axis=0)
    od = jnp.concatenate([xp[i:i + 1, :] for i in range(1, L, 2)], axis=0)
    return ev, od


# --------------------------------- kernel -----------------------------------

def tcresnet_kernel(*refs, batch, t_in0, c_in0, blocks, n_label):
    # refs = [x_flat, bias_all, w_fc, w_conv0, (wm0, wm1, wsk) x 3 blocks, out]
    x_ref, bias_ref, wfc_ref = refs[0], refs[1], refs[2]
    w_refs = refs[3:-1]
    o_ref = refs[-1]
    B = batch

    x = x_ref[...]                                    # (B*T, 128) f32
    biases = bias_ref[...]                            # (9, 128)   f32

    # ---- conv_0: K=3, stride 1, pad 1, no BN, no ReLU ----------------------
    p0 = jnp.concatenate(
        [_patch_stride1(x[b * t_in0:(b + 1) * t_in0, :], 3, 1, t_in0, c_in0)
         for b in range(B)], axis=0)
    prev = _dot(p0, w_refs[0][...])                   # pre-ReLU carry (prev_x)

    # ---- residual blocks ----------------------------------------------------
    for blk, (t_in, t0, t1, ts, c_in, c_out) in enumerate(blocks):
        wm0 = w_refs[1 + 3 * blk + 0][...]            # (9*c_in , 128) bf16
        wm1 = w_refs[1 + 3 * blk + 1][...]            # (9*c_out, 128) bf16
        wsk = w_refs[1 + 3 * blk + 2][...]            # (  c_in , 128) bf16
        b0 = biases[3 * blk + 0:3 * blk + 1, :]
        b1 = biases[3 * blk + 1:3 * blk + 2, :]
        bs = biases[3 * blk + 2:3 * blk + 3, :]

        main_patches, skip_patches = [], []
        for b in range(B):
            pb = prev[b * t_in:(b + 1) * t_in, :]
            z4 = jnp.zeros((4, C_PAD), F32)
            xp = jnp.concatenate([z4, pb, z4], axis=0)        # time pad = 4
            ev, od = _even_odd_rows(xp)
            # skip conv (1x1, stride 2, pad 2) reads the PRE-ReLU carry; its
            # padded-by-2 row 2t is the padded-by-4 even row (t + 1).
            skip_patches.append(ev[1:1 + ts, :c_in])
            # conv_{i}_0 (K=9, stride 2, pad 4) reads ReLU(carry) for blocks
            # after the first (ReLU commutes with the row decimation); block 1
            # consumes the raw conv_0 output, exactly like the torch module.
            if blk > 0:
                ev = jnp.maximum(ev, 0.0)
                od = jnp.maximum(od, 0.0)
            taps = [(ev if k % 2 == 0 else od)[k // 2:k // 2 + t0, :c_in]
                    for k in range(9)]
            main_patches.append(jnp.concatenate(taps, axis=-1))

        sk = jnp.maximum(_dot(jnp.concatenate(skip_patches, axis=0), wsk, bs),
                         0.0)                                  # skip+bn+relu
        a = jnp.maximum(_dot(jnp.concatenate(main_patches, axis=0), wm0, b0),
                        0.0)                                   # conv+bn+relu

        # conv_{i}_1: K=9, stride 1, pad 5; residual add; carry pre-ReLU sum.
        p1 = jnp.concatenate(
            [_patch_stride1(a[b * t0:(b + 1) * t0, :], 9, 5, t1, c_out)
             for b in range(B)], axis=0)
        prev = _dot(p1, wm1, b1) + sk

    # ---- head: ReLU, global average pool (time), conv_fc, log_softmax ------
    t_fin = blocks[-1][2]
    h = jnp.maximum(prev, 0.0)                         # (B*t_fin, 128)
    pooled = jnp.concatenate(
        [jnp.mean(h[b * t_fin:(b + 1) * t_fin, :], axis=0, keepdims=True)
         for b in range(B)], axis=0)                   # (B, 128) f32
    logits = jnp.dot(pooled, wfc_ref[...], preferred_element_type=jnp.float32)
    lane = jax.lax.broadcasted_iota(jnp.int32, logits.shape, 1)
    z = jnp.where(lane < n_label, logits, -1e30)       # mask padded label lanes
    m = jnp.max(z, axis=-1, keepdims=True)
    lse = jnp.log(jnp.sum(jnp.exp(z - m), axis=-1, keepdims=True))
    o_ref[...] = (z - m) - lse                         # lane-dense (B, 128)


# ----------------------- one-time parameter packing -------------------------

def _conv_t(t_in, K, stride, pad):
    return (t_in + 2 * pad - K) // stride + 1


def _stacked_weight(w, scale=None):
    """Conv2d weight (Cout, Cin, K, 1) -> (K*Cin, 128) bf16, BN scale folded."""
    c_out, c_in, K, _ = w.shape
    wk = jnp.transpose(w[..., 0], (2, 1, 0)).astype(F32)      # (K, Cin, Cout)
    if scale is not None:
        wk = wk * scale[None, None, :]
    wk = wk.reshape(K * c_in, c_out)                           # rows: k*Cin+ci
    return jnp.pad(wk, ((0, 0), (0, C_PAD - c_out))).astype(BF16)


def prepare_params(params):
    """Hoisted weight prep: BN fold, tap stacking, lane padding, bf16 cast."""
    def bn(name):
        mean, var = params[name]
        scale = 1.0 / jnp.sqrt(var + BN_EPS)
        return scale, -mean * scale

    weights = [_stacked_weight(params['conv_0'])]
    biases = []
    for i in range(1, N_BLOCKS + 1):
        s0, b0 = bn(f'bn_{i}_0')
        s1, b1 = bn(f'bn_{i}_1')
        ss, bs = bn(f'skip_bn_{i}')
        weights += [_stacked_weight(params[f'conv_{i}_0'], s0),
                    _stacked_weight(params[f'conv_{i}_1'], s1),
                    _stacked_weight(params[f'skip_conv_{i}'], ss)]
        for b in (b0, b1, bs):
            biases.append(jnp.pad(b, (0, C_PAD - b.shape[0])))
    bias_all = jnp.stack(biases, axis=0).astype(F32)           # (9, 128)

    n_label, c_fc = params['conv_fc'].shape[0], params['conv_fc'].shape[1]
    w_fc = jnp.pad(params['conv_fc'][:, :, 0, 0].T,
                   ((0, C_PAD - c_fc), (0, C_PAD - n_label))).astype(F32)
    return {'weights': tuple(weights), 'bias': bias_all, 'w_fc': w_fc}


# -------------------------- parameters & forward ----------------------------

def init_params(key, input_size=24, output_size=3):
    params = {}
    keys = iter(jax.random.split(key, 16))

    def conv_w(k, cout, cin, kh):
        return (0.1 * jax.random.normal(k, (cout, cin, kh, 1))).astype(F32)

    params['conv_0'] = conv_w(next(keys), N_CHANNELS[0], input_size, 3)
    for i in range(1, N_BLOCKS + 1):
        cin, cout = N_CHANNELS[i - 1], N_CHANNELS[i]
        params[f'conv_{i}_0'] = conv_w(next(keys), cout, cin, 9)
        params[f'conv_{i}_1'] = conv_w(next(keys), cout, cout, 9)
        params[f'skip_conv_{i}'] = conv_w(next(keys), cout, cin, 1)
        for name in (f'bn_{i}_0', f'bn_{i}_1', f'skip_bn_{i}'):
            # BatchNorm2d(affine=False) running stats, freshly initialized.
            params[name] = (jnp.zeros((cout,), F32), jnp.ones((cout,), F32))
    params['conv_fc'] = conv_w(next(keys), output_size, N_CHANNELS[-1], 1)
    # NOTE: the module's nn.Linear 'output' layer is never used in forward().
    return params


def tcresnet_forward(packed, x, *, n_label):
    # x: (B, T, F) float32 -- the 3-D input branch of the PyTorch forward.
    B, T, f_in = x.shape

    # torch: unsqueeze(1) then .view(B, F, T, 1) reinterprets the flat buffer;
    # reproduce with reshape (NOT transpose), then go channels-last and pad
    # the channel dim into the 128-lane slab.
    xs = jnp.transpose(x.reshape(B, f_in, T), (0, 2, 1))       # (B, T, C=f_in)
    x_flat = jnp.pad(xs.astype(F32),
                     ((0, 0), (0, 0), (0, C_PAD - f_in))).reshape(B * T, C_PAD)

    # Static per-conv time plan (all Conv2d here are 1-D convs along time).
    blocks = []
    t = _conv_t(T, 3, 1, 1)                      # conv_0 (== T)
    for i in range(1, N_BLOCKS + 1):
        c_in, c_out = N_CHANNELS[i - 1], N_CHANNELS[i]
        t0 = _conv_t(t, 9, 2, 4)                 # conv_{i}_0
        t1 = _conv_t(t0, 9, 1, 5)                # conv_{i}_1
        ts = _conv_t(t, 1, 2, 2)                 # skip conv
        assert t1 == ts, (t1, ts)                # residual branches must line up
        blocks.append((t, t0, t1, ts, c_in, c_out))
        t = t1

    operands = [x_flat, packed['bias'], packed['w_fc']] + list(packed['weights'])

    # Advisory cost estimate so XLA schedules the surrounding ops sensibly.
    conv_mk = [(B * T, 3 * f_in)]
    for (_, t0, t1, ts, c_in, c_out) in blocks:
        conv_mk += [(B * t0, 9 * c_in), (B * t1, 9 * c_out), (B * ts, c_in)]
    flops = sum(2 * m * k * C_PAD for m, k in conv_mk) + 2 * B * C_PAD * C_PAD
    bytes_accessed = sum(int(o.size) * o.dtype.itemsize for o in operands)
    bytes_accessed += B * C_PAD * 4

    vmem = pl.BlockSpec(memory_space=pltpu.MemorySpace.VMEM)
    logp = pl.pallas_call(
        functools.partial(tcresnet_kernel, batch=B, t_in0=T, c_in0=f_in,
                          blocks=tuple(blocks), n_label=n_label),
        out_shape=jax.ShapeDtypeStruct((B, C_PAD), F32),
        in_specs=[vmem] * len(operands),
        out_specs=vmem,
        cost_estimate=pl.CostEstimate(flops=flops,
                                      transcendentals=B * C_PAD,
                                      bytes_accessed=bytes_accessed),
    )(*operands)

    # Drop the lane padding, then unsqueeze(1) like the module.
    return logp[:, :n_label][:, None, :]                       # (B, 1, n_label)


if __name__ == "__main__":
    key = jax.random.PRNGKey(0)
    pkey, xkey = jax.random.split(key)
    input_size, output_size = 24, 3
    B, T = 2, 16

    params = init_params(pkey, input_size, output_size)
    packed = prepare_params(params)                 # one-time weight packing
    x = jax.random.normal(xkey, (B, T, input_size)).astype(F32)

    fwd = jax.jit(functools.partial(tcresnet_forward, n_label=output_size))
    out = jax.block_until_ready(fwd(packed, x))

    assert out.shape == (B, 1, output_size), out.shape
    assert bool(jnp.all(jnp.isfinite(out)))
    # rows of exp(log_softmax) should sum to 1
    assert bool(jnp.allclose(jnp.sum(jnp.exp(out), axis=-1), 1.0, atol=1e-5))
    print("KERNEL_OK")
</pallas_src>

<mosaic_0001>
module attributes {stable_mosaic.version = 11 : i64} {
  func.func @tcresnet_kernel(%arg0: memref<32x128xf32, #tpu.memory_space<vmem>>, %arg1: memref<9x128xf32, #tpu.memory_space<vmem>>, %arg2: memref<128x128xf32, #tpu.memory_space<vmem>>, %arg3: memref<72x128xbf16, #tpu.memory_space<vmem>>, %arg4: memref<144x128xbf16, #tpu.memory_space<vmem>>, %arg5: memref<216x128xbf16, #tpu.memory_space<vmem>>, %arg6: memref<16x128xbf16, #tpu.memory_space<vmem>>, %arg7: memref<216x128xbf16, #tpu.memory_space<vmem>>, %arg8: memref<288x128xbf16, #tpu.memory_space<vmem>>, %arg9: memref<24x128xbf16, #tpu.memory_space<vmem>>, %arg10: memref<288x128xbf16, #tpu.memory_space<vmem>>, %arg11: memref<432x128xbf16, #tpu.memory_space<vmem>>, %arg12: memref<32x128xbf16, #tpu.memory_space<vmem>>, %arg13: memref<2x128xf32, #tpu.memory_space<vmem>>) attributes {dimension_semantics = [], scalar_prefetch = 0 : i64, scratch_operands = 0 : i64, tpu.core_type = #tpu.core_type<tc>} {
    %c0 = arith.constant 0 : index
    %c0_0 = arith.constant 0 : index
    %0 = vector.load %arg0[%c0, %c0_0] : memref<32x128xf32, #tpu.memory_space<vmem>>, vector<32x128xf32>
    %c0_1 = arith.constant 0 : index
    %c0_2 = arith.constant 0 : index
    %1 = vector.load %arg1[%c0_1, %c0_2] : memref<9x128xf32, #tpu.memory_space<vmem>>, vector<9x128xf32>
    %2 = vector.extract_strided_slice %0 {offsets = [0, 0], sizes = [16, 128], strides = [1, 1]} : vector<32x128xf32> to vector<16x128xf32>
    %cst = arith.constant 0.000000e+00 : f32
    %3 = vector.broadcast %cst : f32 to vector<1x128xf32>
    %4 = tpu.concatenate %3, %2, %3 in 0 : vector<1x128xf32>, vector<16x128xf32>, vector<1x128xf32> -> vector<18x128xf32>
    %5 = vector.extract_strided_slice %4 {offsets = [0, 0], sizes = [16, 24], strides = [1, 1]} : vector<18x128xf32> to vector<16x24xf32>
    %6 = vector.extract_strided_slice %4 {offsets = [1, 0], sizes = [16, 24], strides = [1, 1]} : vector<18x128xf32> to vector<16x24xf32>
    %7 = vector.extract_strided_slice %4 {offsets = [2, 0], sizes = [16, 24], strides = [1, 1]} : vector<18x128xf32> to vector<16x24xf32>
    %8 = tpu.concatenate %5, %6, %7 in 1 : vector<16x24xf32>, vector<16x24xf32>, vector<16x24xf32> -> vector<16x72xf32>
    %9 = vector.extract_strided_slice %0 {offsets = [16, 0], sizes = [16, 128], strides = [1, 1]} : vector<32x128xf32> to vector<16x128xf32>
    %cst_3 = arith.constant 0.000000e+00 : f32
    %10 = vector.broadcast %cst_3 : f32 to vector<1x128xf32>
    %11 = tpu.concatenate %10, %9, %10 in 0 : vector<1x128xf32>, vector<16x128xf32>, vector<1x128xf32> -> vector<18x128xf32>
    %12 = vector.extract_strided_slice %11 {offsets = [0, 0], sizes = [16, 24], strides = [1, 1]} : vector<18x128xf32> to vector<16x24xf32>
    %13 = vector.extract_strided_slice %11 {offsets = [1, 0], sizes = [16, 24], strides = [1, 1]} : vector<18x128xf32> to vector<16x24xf32>
    %14 = vector.extract_strided_slice %11 {offsets = [2, 0], sizes = [16, 24], strides = [1, 1]} : vector<18x128xf32> to vector<16x24xf32>
    %15 = tpu.concatenate %12, %13, %14 in 1 : vector<16x24xf32>, vector<16x24xf32>, vector<16x24xf32> -> vector<16x72xf32>
    %16 = tpu.concatenate %8, %15 in 0 : vector<16x72xf32>, vector<16x72xf32> -> vector<32x72xf32>
    %c0_4 = arith.constant 0 : index
    %c0_5 = arith.constant 0 : index
    %17 = vector.load %arg3[%c0_4, %c0_5] : memref<72x128xbf16, #tpu.memory_space<vmem>>, vector<72x128xbf16>
    %18 = arith.truncf %16 : vector<32x72xf32> to vector<32x72xbf16>
    %cst_6 = arith.constant dense<0.000000e+00> : vector<32x128xf32>
    %19 = tpu.matmul %18, %17, %cst_6 {dimension_numbers = #tpu.dot_dimension_numbers<[1], [0], [0], [1], [0, 0, 1, 1], [], []>} : vector<32x72xbf16>, vector<72x128xbf16>, vector<32x128xf32> -> vector<32x128xf32>
    %c0_7 = arith.constant 0 : index
    %c0_8 = arith.constant 0 : index
    %20 = vector.load %arg4[%c0_7, %c0_8] : memref<144x128xbf16, #tpu.memory_space<vmem>>, vector<144x128xbf16>
    %c0_9 = arith.constant 0 : index
    %c0_10 = arith.constant 0 : index
    %21 = vector.load %arg5[%c0_9, %c0_10] : memref<216x128xbf16, #tpu.memory_space<vmem>>, vector<216x128xbf16>
    %c0_11 = arith.constant 0 : index
    %c0_12 = arith.constant 0 : index
    %22 = vector.load %arg6[%c0_11, %c0_12] : memref<16x128xbf16, #tpu.memory_space<vmem>>, vector<16x128xbf16>
    %23 = vector.extract_strided_slice %1 {offsets = [0, 0], sizes = [1, 128], strides = [1, 1]} : vector<9x128xf32> to vector<1x128xf32>
    %24 = vector.extract_strided_slice %1 {offsets = [1, 0], sizes = [1, 128], strides = [1, 1]} : vector<9x128xf32> to vector<1x128xf32>
    %25 = vector.extract_strided_slice %1 {offsets = [2, 0], sizes = [1, 128], strides = [1, 1]} : vector<9x128xf32> to vector<1x128xf32>
    %26 = vector.extract_strided_slice %19 {offsets = [0, 0], sizes = [16, 128], strides = [1, 1]} : vector<32x128xf32> to vector<16x128xf32>
    %cst_13 = arith.constant 0.000000e+00 : f32
    %27 = vector.broadcast %cst_13 : f32 to vector<4x128xf32>
    %28 = tpu.concatenate %27, %26, %27 in 0 : vector<4x128xf32>, vector<16x128xf32>, vector<4x128xf32> -> vector<24x128xf32>
    %29 = vector.extract_strided_slice %28 {offsets = [0, 0], sizes = [1, 128], strides = [1, 1]} : vector<24x128xf32> to vector<1x128xf32>
    %30 = vector.extract_strided_slice %28 {offsets = [2, 0], sizes = [1, 128], strides = [1, 1]} : vector<24x128xf32> to vector<1x128xf32>
    %31 = vector.extract_strided_slice %28 {offsets = [4, 0], sizes = [1, 128], strides = [1, 1]} : vector<24x128xf32> to vector<1x128xf32>
    %32 = vector.extract_strided_slice %28 {offsets = [6, 0], sizes = [1, 128], strides = [1, 1]} : vector<24x128xf32> to vector<1x128xf32>
    %33 = vector.extract_strided_slice %28 {offsets = [8, 0], sizes = [1, 128], strides = [1, 1]} : vector<24x128xf32> to vector<1x128xf32>
    %34 = vector.extract_strided_slice %28 {offsets = [10, 0], sizes = [1, 128], strides = [1, 1]} : vector<24x128xf32> to vector<1x128xf32>
    %35 = vector.extract_strided_slice %28 {offsets = [12, 0], sizes = [1, 128], strides = [1, 1]} : vector<24x128xf32> to vector<1x128xf32>
    %36 = vector.extract_strided_slice %28 {offsets = [14, 0], sizes = [1, 128], strides = [1, 1]} : vector<24x128xf32> to vector<1x128xf32>
    %37 = vector.extract_strided_slice %28 {offsets = [16, 0], sizes = [1, 128], strides = [1, 1]} : vector<24x128xf32> to vector<1x128xf32>
    %38 = vector.extract_strided_slice %28 {offsets = [18, 0], sizes = [1, 128], strides = [1, 1]} : vector<24x128xf32> to vector<1x128xf32>
    %39 = vector.extract_strided_slice %28 {offsets = [20, 0], sizes = [1, 128], strides = [1, 1]} : vector<24x128xf32> to vector<1x128xf32>
    %40 = vector.extract_strided_slice %28 {offsets = [22, 0], sizes = [1, 128], strides = [1, 1]} : vector<24x128xf32> to vector<1x128xf32>
    %41 = tpu.concatenate %29, %30, %31, %32, %33, %34, %35, %36, %37, %38, %39, %40 in 0 : vector<1x128xf32>, vector<1x128xf32>, vector<1x128xf32>, vector<1x128xf32>, vector<1x128xf32>, vector<1x128xf32>, vector<1x128xf32>, vector<1x128xf32>, vector<1x128xf32>, vector<1x128xf32>, vector<1x128xf32>, vector<1x128xf32> -> vector<12x128xf32>
    %42 = vector.extract_strided_slice %28 {offsets = [1, 0], sizes = [1, 128], strides = [1, 1]} : vector<24x128xf32> to vector<1x128xf32>
    %43 = vector.extract_strided_slice %28 {offsets = [3, 0], sizes = [1, 128], strides = [1, 1]} : vector<24x128xf32> to vector<1x128xf32>
    %44 = vector.extract_strided_slice %28 {offsets = [5, 0], sizes = [1, 128], strides = [1, 1]} : vector<24x128xf32> to vector<1x128xf32>
    %45 = vector.extract_strided_slice %28 {offsets = [7, 0], sizes = [1, 128], strides = [1, 1]} : vector<24x128xf32> to vector<1x128xf32>
    %46 = vector.extract_strided_slice %28 {offsets = [9, 0], sizes = [1, 128], strides = [1, 1]} : vector<24x128xf32> to vector<1x128xf32>
    %47 = vector.extract_strided_slice %28 {offsets = [11, 0], sizes = [1, 128], strides = [1, 1]} : vector<24x128xf32> to vector<1x128xf32>
    %48 = vector.extract_strided_slice %28 {offsets = [13, 0], sizes = [1, 128], strides = [1, 1]} : vector<24x128xf32> to vector<1x128xf32>
    %49 = vector.extract_strided_slice %28 {offsets = [15, 0], sizes = [1, 128], strides = [1, 1]} : vector<24x128xf32> to vector<1x128xf32>
    %50 = vector.extract_strided_slice %28 {offsets = [17, 0], sizes = [1, 128], strides = [1, 1]} : vector<24x128xf32> to vector<1x128xf32>
    %51 = vector.extract_strided_slice %28 {offsets = [19, 0], sizes = [1, 128], strides = [1, 1]} : vector<24x128xf32> to vector<1x128xf32>
    %52 = vector.extract_strided_slice %28 {offsets = [21, 0], sizes = [1, 128], strides = [1, 1]} : vector<24x128xf32> to vector<1x128xf32>
    %53 = vector.extract_strided_slice %28 {offsets = [23, 0], sizes = [1, 128], strides = [1, 1]} : vector<24x128xf32> to vector<1x128xf32>
    %54 = tpu.concatenate %42, %43, %44, %45, %46, %47, %48, %49, %50, %51, %52, %53 in 0 : vector<1x128xf32>, vector<1x128xf32>, vector<1x128xf32>, vector<1x128xf32>, vector<1x128xf32>, vector<1x128xf32>, vector<1x128xf32>, vector<1x128xf32>, vector<1x128xf32>, vector<1x128xf32>, vector<1x128xf32>, vector<1x128xf32> -> vector<12x128xf32>
    %55 = vector.extract_strided_slice %41 {offsets = [1, 0], sizes = [10, 16], strides = [1, 1]} : vector<12x128xf32> to vector<10x16xf32>
    %56 = vector.extract_strided_slice %41 {offsets = [0, 0], sizes = [8, 16], strides = [1, 1]} : vector<12x128xf32> to vector<8x16xf32>
    %57 = vector.extract_strided_slice %54 {offsets = [0, 0], sizes = [8, 16], strides = [1, 1]} : vector<12x128xf32> to vector<8x16xf32>
    %58 = vector.extract_strided_slice %41 {offsets = [1, 0], sizes = [8, 16], strides = [1, 1]} : vector<12x128xf32> to vector<8x16xf32>
    %59 = vector.extract_strided_slice %54 {offsets = [1, 0], sizes = [8, 16], strides = [1, 1]} : vector<12x128xf32> to vector<8x16xf32>
    %60 = vector.extract_strided_slice %41 {offsets = [2, 0], sizes = [8, 16], strides = [1, 1]} : vector<12x128xf32> to vector<8x16xf32>
    %61 = vector.extract_strided_slice %54 {offsets = [2, 0], sizes = [8, 16], strides = [1, 1]} : vector<12x128xf32> to vector<8x16xf32>
    %62 = vector.extract_strided_slice %41 {offsets = [3, 0], sizes = [8, 16], strides = [1, 1]} : vector<12x128xf32> to vector<8x16xf32>
    %63 = vector.extract_strided_slice %54 {offsets = [3, 0], sizes = [8, 16], strides = [1, 1]} : vector<12x128xf32> to vector<8x16xf32>
    %64 = vector.extract_strided_slice %41 {offsets = [4, 0], sizes = [8, 16], strides = [1, 1]} : vector<12x128xf32> to vector<8x16xf32>
    %65 = tpu.concatenate %56, %57, %58, %59, %60, %61, %62, %63, %64 in 1 : vector<8x16xf32>, vector<8x16xf32>, vector<8x16xf32>, vector<8x16xf32>, vector<8x16xf32>, vector<8x16xf32>, vector<8x16xf32>, vector<8x16xf32>, vector<8x16xf32> -> vector<8x144xf32>
    %66 = vector.extract_strided_slice %19 {offsets = [16, 0], sizes = [16, 128], strides = [1, 1]} : vector<32x128xf32> to vector<16x128xf32>
    %cst_14 = arith.constant 0.000000e+00 : f32
    %67 = vector.broadcast %cst_14 : f32 to vector<4x128xf32>
    %68 = tpu.concatenate %67, %66, %67 in 0 : vector<4x128xf32>, vector<16x128xf32>, vector<4x128xf32> -> vector<24x128xf32>
    %69 = vector.extract_strided_slice %68 {offsets = [0, 0], sizes = [1, 128], strides = [1, 1]} : vector<24x128xf32> to vector<1x128xf32>
    %70 = vector.extract_strided_slice %68 {offsets = [2, 0], sizes = [1, 128], strides = [1, 1]} : vector<24x128xf32> to vector<1x128xf32>
    %71 = vector.extract_strided_slice %68 {offsets = [4, 0], sizes = [1, 128], strides = [1, 1]} : vector<24x128xf32> to vector<1x128xf32>
    %72 = vector.extract_strided_slice %68 {offsets = [6, 0], sizes = [1, 128], strides = [1, 1]} : vector<24x128xf32> to vector<1x128xf32>
    %73 = vector.extract_strided_slice %68 {offsets = [8, 0], sizes = [1, 128], strides = [1, 1]} : vector<24x128xf32> to vector<1x128xf32>
    %74 = vector.extract_strided_slice %68 {offsets = [10, 0], sizes = [1, 128], strides = [1, 1]} : vector<24x128xf32> to vector<1x128xf32>
    %75 = vector.extract_strided_slice %68 {offsets = [12, 0], sizes = [1, 128], strides = [1, 1]} : vector<24x128xf32> to vector<1x128xf32>
    %76 = vector.extract_strided_slice %68 {offsets = [14, 0], sizes = [1, 128], strides = [1, 1]} : vector<24x128xf32> to vector<1x128xf32>
    %77 = vector.extract_strided_slice %68 {offsets = [16, 0], sizes = [1, 128], strides = [1, 1]} : vector<24x128xf32> to vector<1x128xf32>
    %78 = vector.extract_strided_slice %68 {offsets = [18, 0], sizes = [1, 128], strides = [1, 1]} : vector<24x128xf32> to vector<1x128xf32>
    %79 = vector.extract_strided_slice %68 {offsets = [20, 0], sizes = [1, 128], strides = [1, 1]} : vector<24x128xf32> to vector<1x128xf32>
    %80 = vector.extract_strided_slice %68 {offsets = [22, 0], sizes = [1, 128], strides = [1, 1]} : vector<24x128xf32> to vector<1x128xf32>
    %81 = tpu.concatenate %69, %70, %71, %72, %73, %74, %75, %76, %77, %78, %79, %80 in 0 : vector<1x128xf32>, vector<1x128xf32>, vector<1x128xf32>, vector<1x128xf32>, vector<1x128xf32>, vector<1x128xf32>, vector<1x128xf32>, vector<1x128xf32>, vector<1x128xf32>, vector<1x128xf32>, vector<1x128xf32>, vector<1x128xf32> -> vector<12x128xf32>
    %82 = vector.extract_strided_slice %68 {offsets = [1, 0], sizes = [1, 128], strides = [1, 1]} : vector<24x128xf32> to vector<1x128xf32>
    %83 = vector.extract_strided_slice %68 {offsets = [3, 0], sizes = [1, 128], strides = [1, 1]} : vector<24x128xf32> to vector<1x128xf32>
    %84 = vector.extract_strided_slice %68 {offsets = [5, 0], sizes = [1, 128], strides = [1, 1]} : vector<24x128xf32> to vector<1x128xf32>
    %85 = vector.extract_strided_slice %68 {offsets = [7, 0], sizes = [1, 128], strides = [1, 1]} : vector<24x128xf32> to vector<1x128xf32>
    %86 = vector.extract_strided_slice %68 {offsets = [9, 0], sizes = [1, 128], strides = [1, 1]} : vector<24x128xf32> to vector<1x128xf32>
    %87 = vector.extract_strided_slice %68 {offsets = [11, 0], sizes = [1, 128], strides = [1, 1]} : vector<24x128xf32> to vector<1x128xf32>
    %88 = vector.extract_strided_slice %68 {offsets = [13, 0], sizes = [1, 128], strides = [1, 1]} : vector<24x128xf32> to vector<1x128xf32>
    %89 = vector.extract_strided_slice %68 {offsets = [15, 0], sizes = [1, 128], strides = [1, 1]} : vector<24x128xf32> to vector<1x128xf32>
    %90 = vector.extract_strided_slice %68 {offsets = [17, 0], sizes = [1, 128], strides = [1, 1]} : vector<24x128xf32> to vector<1x128xf32>
    %91 = vector.extract_strided_slice %68 {offsets = [19, 0], sizes = [1, 128], strides = [1, 1]} : vector<24x128xf32> to vector<1x128xf32>
    %92 = vector.extract_strided_slice %68 {offsets = [21, 0], sizes = [1, 128], strides = [1, 1]} : vector<24x128xf32> to vector<1x128xf32>
    %93 = vector.extract_strided_slice %68 {offsets = [23, 0], sizes = [1, 128], strides = [1, 1]} : vector<24x128xf32> to vector<1x128xf32>
    %94 = tpu.concatenate %82, %83, %84, %85, %86, %87, %88, %89, %90, %91, %92, %93 in 0 : vector<1x128xf32>, vector<1x128xf32>, vector<1x128xf32>, vector<1x128xf32>, vector<1x128xf32>, vector<1x128xf32>, vector<1x128xf32>, vector<1x128xf32>, vector<1x128xf32>, vector<1x128xf32>, vector<1x128xf32>, vector<1x128xf32> -> vector<12x128xf32>
    %95 = vector.extract_strided_slice %81 {offsets = [1, 0], sizes = [10, 16], strides = [1, 1]} : vector<12x128xf32> to vector<10x16xf32>
    %96 = vector.extract_strided_slice %81 {offsets = [0, 0], sizes = [8, 16], strides = [1, 1]} : vector<12x128xf32> to vector<8x16xf32>
    %97 = vector.extract_strided_slice %94 {offsets = [0, 0], sizes = [8, 16], strides = [1, 1]} : vector<12x128xf32> to vector<8x16xf32>
    %98 = vector.extract_strided_slice %81 {offsets = [1, 0], sizes = [8, 16], strides = [1, 1]} : vector<12x128xf32> to vector<8x16xf32>
    %99 = vector.extract_strided_slice %94 {offsets = [1, 0], sizes = [8, 16], strides = [1, 1]} : vector<12x128xf32> to vector<8x16xf32>
    %100 = vector.extract_strided_slice %81 {offsets = [2, 0], sizes = [8, 16], strides = [1, 1]} : vector<12x128xf32> to vector<8x16xf32>
    %101 = vector.extract_strided_slice %94 {offsets = [2, 0], sizes = [8, 16], strides = [1, 1]} : vector<12x128xf32> to vector<8x16xf32>
    %102 = vector.extract_strided_slice %81 {offsets = [3, 0], sizes = [8, 16], strides = [1, 1]} : vector<12x128xf32> to vector<8x16xf32>
    %103 = vector.extract_strided_slice %94 {offsets = [3, 0], sizes = [8, 16], strides = [1, 1]} : vector<12x128xf32> to vector<8x16xf32>
    %104 = vector.extract_strided_slice %81 {offsets = [4, 0], sizes = [8, 16], strides = [1, 1]} : vector<12x128xf32> to vector<8x16xf32>
    %105 = tpu.concatenate %96, %97, %98, %99, %100, %101, %102, %103, %104 in 1 : vector<8x16xf32>, vector<8x16xf32>, vector<8x16xf32>, vector<8x16xf32>, vector<8x16xf32>, vector<8x16xf32>, vector<8x16xf32>, vector<8x16xf32>, vector<8x16xf32> -> vector<8x144xf32>
    %106 = tpu.concatenate %55, %95 in 0 : vector<10x16xf32>, vector<10x16xf32> -> vector<20x16xf32>
    %107 = arith.truncf %106 : vector<20x16xf32> to vector<20x16xbf16>
    %cst_15 = arith.constant dense<0.000000e+00> : vector<20x128xf32>
    %108 = tpu.matmul %107, %22, %cst_15 {dimension_numbers = #tpu.dot_dimension_numbers<[1], [0], [0], [1], [0, 0, 1, 1], [], []>} : vector<20x16xbf16>, vector<16x128xbf16>, vector<20x128xf32> -> vector<20x128xf32>
    %109 = vector.broadcast %25 : vector<1x128xf32> to vector<20x128xf32>
    %110 = arith.addf %108, %109 : vector<20x128xf32>
    %cst_16 = arith.constant 0.000000e+00 : f32
    %111 = vector.broadcast %cst_16 : f32 to vector<20x128xf32>
    %112 = arith.maximumf %110, %111 : vector<20x128xf32>
    %113 = tpu.concatenate %65, %105 in 0 : vector<8x144xf32>, vector<8x144xf32> -> vector<16x144xf32>
    %114 = arith.truncf %113 : vector<16x144xf32> to vector<16x144xbf16>
    %cst_17 = arith.constant dense<0.000000e+00> : vector<16x128xf32>
    %115 = tpu.matmul %114, %20, %cst_17 {dimension_numbers = #tpu.dot_dimension_numbers<[1], [0], [0], [1], [0, 0, 1, 1], [], []>} : vector<16x144xbf16>, vector<144x128xbf16>, vector<16x128xf32> -> vector<16x128xf32>
    %116 = vector.broadcast %23 : vector<1x128xf32> to vector<16x128xf32>
    %117 = arith.addf %115, %116 : vector<16x128xf32>
    %cst_18 = arith.constant 0.000000e+00 : f32
    %118 = vector.broadcast %cst_18 : f32 to vector<16x128xf32>
    %119 = arith.maximumf %117, %118 : vector<16x128xf32>
    %120 = vector.extract_strided_slice %119 {offsets = [0, 0], sizes = [8, 128], strides = [1, 1]} : vector<16x128xf32> to vector<8x128xf32>
    %cst_19 = arith.constant 0.000000e+00 : f32
    %121 = vector.broadcast %cst_19 : f32 to vector<5x128xf32>
    %122 = tpu.concatenate %121, %120, %121 in 0 : vector<5x128xf32>, vector<8x128xf32>, vector<5x128xf32> -> vector<18x128xf32>
    %123 = vector.extract_strided_slice %122 {offsets = [0, 0], sizes = [10, 24], strides = [1, 1]} : vector<18x128xf32> to vector<10x24xf32>
    %124 = vector.extract_strided_slice %122 {offsets = [1, 0], sizes = [10, 24], strides = [1, 1]} : vector<18x128xf32> to vector<10x24xf32>
    %125 = vector.extract_strided_slice %122 {offsets = [2, 0], sizes = [10, 24], strides = [1, 1]} : vector<18x128xf32> to vector<10x24xf32>
    %126 = vector.extract_strided_slice %122 {offsets = [3, 0], sizes = [10, 24], strides = [1, 1]} : vector<18x128xf32> to vector<10x24xf32>
    %127 = vector.extract_strided_slice %122 {offsets = [4, 0], sizes = [10, 24], strides = [1, 1]} : vector<18x128xf32> to vector<10x24xf32>
    %128 = vector.extract_strided_slice %122 {offsets = [5, 0], sizes = [10, 24], strides = [1, 1]} : vector<18x128xf32> to vector<10x24xf32>
    %129 = vector.extract_strided_slice %122 {offsets = [6, 0], sizes = [10, 24], strides = [1, 1]} : vector<18x128xf32> to vector<10x24xf32>
    %130 = vector.extract_strided_slice %122 {offsets = [7, 0], sizes = [10, 24], strides = [1, 1]} : vector<18x128xf32> to vector<10x24xf32>
    %131 = vector.extract_strided_slice %122 {offsets = [8, 0], sizes = [10, 24], strides = [1, 1]} : vector<18x128xf32> to vector<10x24xf32>
    %132 = tpu.concatenate %123, %124, %125, %126, %127, %128, %129, %130, %131 in 1 : vector<10x24xf32>, vector<10x24xf32>, vector<10x24xf32>, vector<10x24xf32>, vector<10x24xf32>, vector<10x24xf32>, vector<10x24xf32>, vector<10x24xf32>, vector<10x24xf32> -> vector<10x216xf32>
    %133 = vector.extract_strided_slice %119 {offsets = [8, 0], sizes = [8, 128], strides = [1, 1]} : vector<16x128xf32> to vector<8x128xf32>
    %cst_20 = arith.constant 0.000000e+00 : f32
    %134 = vector.broadcast %cst_20 : f32 to vector<5x128xf32>
    %135 = tpu.concatenate %134, %133, %134 in 0 : vector<5x128xf32>, vector<8x128xf32>, vector<5x128xf32> -> vector<18x128xf32>
    %136 = vector.extract_strided_slice %135 {offsets = [0, 0], sizes = [10, 24], strides = [1, 1]} : vector<18x128xf32> to vector<10x24xf32>
    %137 = vector.extract_strided_slice %135 {offsets = [1, 0], sizes = [10, 24], strides = [1, 1]} : vector<18x128xf32> to vector<10x24xf32>
    %138 = vector.extract_strided_slice %135 {offsets = [2, 0], sizes = [10, 24], strides = [1, 1]} : vector<18x128xf32> to vector<10x24xf32>
    %139 = vector.extract_strided_slice %135 {offsets = [3, 0], sizes = [10, 24], strides = [1, 1]} : vector<18x128xf32> to vector<10x24xf32>
    %140 = vector.extract_strided_slice %135 {offsets = [4, 0], sizes = [10, 24], strides = [1, 1]} : vector<18x128xf32> to vector<10x24xf32>
    %141 = vector.extract_strided_slice %135 {offsets = [5, 0], sizes = [10, 24], strides = [1, 1]} : vector<18x128xf32> to vector<10x24xf32>
    %142 = vector.extract_strided_slice %135 {offsets = [6, 0], sizes = [10, 24], strides = [1, 1]} : vector<18x128xf32> to vector<10x24xf32>
    %143 = vector.extract_strided_slice %135 {offsets = [7, 0], sizes = [10, 24], strides = [1, 1]} : vector<18x128xf32> to vector<10x24xf32>
    %144 = vector.extract_strided_slice %135 {offsets = [8, 0], sizes = [10, 24], strides = [1, 1]} : vector<18x128xf32> to vector<10x24xf32>
    %145 = tpu.concatenate %136, %137, %138, %139, %140, %141, %142, %143, %144 in 1 : vector<10x24xf32>, vector<10x24xf32>, vector<10x24xf32>, vector<10x24xf32>, vector<10x24xf32>, vector<10x24xf32>, vector<10x24xf32>, vector<10x24xf32>, vector<10x24xf32> -> vector<10x216xf32>
    %146 = tpu.concatenate %132, %145 in 0 : vector<10x216xf32>, vector<10x216xf32> -> vector<20x216xf32>
    %147 = arith.truncf %146 : vector<20x216xf32> to vector<20x216xbf16>
    %cst_21 = arith.constant dense<0.000000e+00> : vector<20x128xf32>
    %148 = tpu.matmul %147, %21, %cst_21 {dimension_numbers = #tpu.dot_dimension_numbers<[1], [0], [0], [1], [0, 0, 1, 1], [], []>} : vector<20x216xbf16>, vector<216x128xbf16>, vector<20x128xf32> -> vector<20x128xf32>
    %149 = vector.broadcast %24 : vector<1x128xf32> to vector<20x128xf32>
    %150 = arith.addf %148, %149 : vector<20x128xf32>
    %151 = arith.addf %150, %112 : vector<20x128xf32>
    %c0_22 = arith.constant 0 : index
    %c0_23 = arith.constant 0 : index
    %152 = vector.load %arg7[%c0_22, %c0_23] : memref<216x128xbf16, #tpu.memory_space<vmem>>, vector<216x128xbf16>
    %c0_24 = arith.constant 0 : index
    %c0_25 = arith.constant 0 : index
    %153 = vector.load %arg8[%c0_24, %c0_25] : memref<288x128xbf16, #tpu.memory_space<vmem>>, vector<288x128xbf16>
    %c0_26 = arith.constant 0 : index
    %c0_27 = arith.constant 0 : index
    %154 = vector.load %arg9[%c0_26, %c0_27] : memref<24x128xbf16, #tpu.memory_space<vmem>>, vector<24x128xbf16>
    %155 = vector.extract_strided_slice %1 {offsets = [3, 0], sizes = [1, 128], strides = [1, 1]} : vector<9x128xf32> to vector<1x128xf32>
    %156 = vector.extract_strided_slice %1 {offsets = [4, 0], sizes = [1, 128], strides = [1, 1]} : vector<9x128xf32> to vector<1x128xf32>
    %157 = vector.extract_strided_slice %1 {offsets = [5, 0], sizes = [1, 128], strides = [1, 1]} : vector<9x128xf32> to vector<1x128xf32>
    %158 = vector.extract_strided_slice %151 {offsets = [0, 0], sizes = [10, 128], strides = [1, 1]} : vector<20x128xf32> to vector<10x128xf32>
    %cst_28 = arith.constant 0.000000e+00 : f32
    %159 = vector.broadcast %cst_28 : f32 to vector<4x128xf32>
    %160 = tpu.concatenate %159, %158, %159 in 0 : vector<4x128xf32>, vector<10x128xf32>, vector<4x128xf32> -> vector<18x128xf32>
    %161 = vector.extract_strided_slice %160 {offsets = [0, 0], sizes = [1, 128], strides = [1, 1]} : vector<18x128xf32> to vector<1x128xf32>
    %162 = vector.extract_strided_slice %160 {offsets = [2, 0], sizes = [1, 128], strides = [1, 1]} : vector<18x128xf32> to vector<1x128xf32>
    %163 = vector.extract_strided_slice %160 {offsets = [4, 0], sizes = [1, 128], strides = [1, 1]} : vector<18x128xf32> to vector<1x128xf32>
    %164 = vector.extract_strided_slice %160 {offsets = [6, 0], sizes = [1, 128], strides = [1, 1]} : vector<18x128xf32> to vector<1x128xf32>
    %165 = vector.extract_strided_slice %160 {offsets = [8, 0], sizes = [1, 128], strides = [1, 1]} : vector<18x128xf32> to vector<1x128xf32>
    %166 = vector.extract_strided_slice %160 {offsets = [10, 0], sizes = [1, 128], strides = [1, 1]} : vector<18x128xf32> to vector<1x128xf32>
    %167 = vector.extract_strided_slice %160 {offsets = [12, 0], sizes = [1, 128], strides = [1, 1]} : vector<18x128xf32> to vector<1x128xf32>
    %168 = vector.extract_strided_slice %160 {offsets = [14, 0], sizes = [1, 128], strides = [1, 1]} : vector<18x128xf32> to vector<1x128xf32>
    %169 = vector.extract_strided_slice %160 {offsets = [16, 0], sizes = [1, 128], strides = [1, 1]} : vector<18x128xf32> to vector<1x128xf32>
    %170 = tpu.concatenate %161, %162, %163, %164, %165, %166, %167, %168, %169 in 0 : vector<1x128xf32>, vector<1x128xf32>, vector<1x128xf32>, vector<1x128xf32>, vector<1x128xf32>, vector<1x128xf32>, vector<1x128xf32>, vector<1x128xf32>, vector<1x128xf32> -> vector<9x128xf32>
    %171 = vector.extract_strided_slice %160 {offsets = [1, 0], sizes = [1, 128], strides = [1, 1]} : vector<18x128xf32> to vector<1x128xf32>
    %172 = vector.extract_strided_slice %160 {offsets = [3, 0], sizes = [1, 128], strides = [1, 1]} : vector<18x128xf32> to vector<1x128xf32>
    %173 = vector.extract_strided_slice %160 {offsets = [5, 0], sizes = [1, 128], strides = [1, 1]} : vector<18x128xf32> to vector<1x128xf32>
    %174 = vector.extract_strided_slice %160 {offsets = [7, 0], sizes = [1, 128], strides = [1, 1]} : vector<18x128xf32> to vector<1x128xf32>
    %175 = vector.extract_strided_slice %160 {offsets = [9, 0], sizes = [1, 128], strides = [1, 1]} : vector<18x128xf32> to vector<1x128xf32>
    %176 = vector.extract_strided_slice %160 {offsets = [11, 0], sizes = [1, 128], strides = [1, 1]} : vector<18x128xf32> to vector<1x128xf32>
    %177 = vector.extract_strided_slice %160 {offsets = [13, 0], sizes = [1, 128], strides = [1, 1]} : vector<18x128xf32> to vector<1x128xf32>
    %178 = vector.extract_strided_slice %160 {offsets = [15, 0], sizes = [1, 128], strides = [1, 1]} : vector<18x128xf32> to vector<1x128xf32>
    %179 = vector.extract_strided_slice %160 {offsets = [17, 0], sizes = [1, 128], strides = [1, 1]} : vector<18x128xf32> to vector<1x128xf32>
    %180 = tpu.concatenate %171, %172, %173, %174, %175, %176, %177, %178, %179 in 0 : vector<1x128xf32>, vector<1x128xf32>, vector<1x128xf32>, vector<1x128xf32>, vector<1x128xf32>, vector<1x128xf32>, vector<1x128xf32>, vector<1x128xf32>, vector<1x128xf32> -> vector<9x128xf32>
    %181 = vector.extract_strided_slice %170 {offsets = [1, 0], sizes = [7, 24], strides = [1, 1]} : vector<9x128xf32> to vector<7x24xf32>
    %cst_29 = arith.constant 0.000000e+00 : f32
    %182 = vector.broadcast %cst_29 : f32 to vector<9x128xf32>
    %183 = arith.maximumf %170, %182 : vector<9x128xf32>
    %cst_30 = arith.constant 0.000000e+00 : f32
    %184 = vector.broadcast %cst_30 : f32 to vector<9x128xf32>
    %185 = arith.maximumf %180, %184 : vector<9x128xf32>
    %186 = vector.extract_strided_slice %183 {offsets = [0, 0], sizes = [5, 24], strides = [1, 1]} : vector<9x128xf32> to vector<5x24xf32>
    %187 = vector.extract_strided_slice %185 {offsets = [0, 0], sizes = [5, 24], strides = [1, 1]} : vector<9x128xf32> to vector<5x24xf32>
    %188 = vector.extract_strided_slice %183 {offsets = [1, 0], sizes = [5, 24], strides = [1, 1]} : vector<9x128xf32> to vector<5x24xf32>
    %189 = vector.extract_strided_slice %185 {offsets = [1, 0], sizes = [5, 24], strides = [1, 1]} : vector<9x128xf32> to vector<5x24xf32>
    %190 = vector.extract_strided_slice %183 {offsets = [2, 0], sizes = [5, 24], strides = [1, 1]} : vector<9x128xf32> to vector<5x24xf32>
    %191 = vector.extract_strided_slice %185 {offsets = [2, 0], sizes = [5, 24], strides = [1, 1]} : vector<9x128xf32> to vector<5x24xf32>
    %192 = vector.extract_strided_slice %183 {offsets = [3, 0], sizes = [5, 24], strides = [1, 1]} : vector<9x128xf32> to vector<5x24xf32>
    %193 = vector.extract_strided_slice %185 {offsets = [3, 0], sizes = [5, 24], strides = [1, 1]} : vector<9x128xf32> to vector<5x24xf32>
    %194 = vector.extract_strided_slice %183 {offsets = [4, 0], sizes = [5, 24], strides = [1, 1]} : vector<9x128xf32> to vector<5x24xf32>
    %195 = tpu.concatenate %186, %187, %188, %189, %190, %191, %192, %193, %194 in 1 : vector<5x24xf32>, vector<5x24xf32>, vector<5x24xf32>, vector<5x24xf32>, vector<5x24xf32>, vector<5x24xf32>, vector<5x24xf32>, vector<5x24xf32>, vector<5x24xf32> -> vector<5x216xf32>
    %196 = vector.extract_strided_slice %151 {offsets = [10, 0], sizes = [10, 128], strides = [1, 1]} : vector<20x128xf32> to vector<10x128xf32>
    %cst_31 = arith.constant 0.000000e+00 : f32
    %197 = vector.broadcast %cst_31 : f32 to vector<4x128xf32>
    %198 = tpu.concatenate %197, %196, %197 in 0 : vector<4x128xf32>, vector<10x128xf32>, vector<4x128xf32> -> vector<18x128xf32>
    %199 = vector.extract_strided_slice %198 {offsets = [0, 0], sizes = [1, 128], strides = [1, 1]} : vector<18x128xf32> to vector<1x128xf32>
    %200 = vector.extract_strided_slice %198 {offsets = [2, 0], sizes = [1, 128], strides = [1, 1]} : vector<18x128xf32> to vector<1x128xf32>
    %201 = vector.extract_strided_slice %198 {offsets = [4, 0], sizes = [1, 128], strides = [1, 1]} : vector<18x128xf32> to vector<1x128xf32>
    %202 = vector.extract_strided_slice %198 {offsets = [6, 0], sizes = [1, 128], strides = [1, 1]} : vector<18x128xf32> to vector<1x128xf32>
    %203 = vector.extract_strided_slice %198 {offsets = [8, 0], sizes = [1, 128], strides = [1, 1]} : vector<18x128xf32> to vector<1x128xf32>
    %204 = vector.extract_strided_slice %198 {offsets = [10, 0], sizes = [1, 128], strides = [1, 1]} : vector<18x128xf32> to vector<1x128xf32>
    %205 = vector.extract_strided_slice %198 {offsets = [12, 0], sizes = [1, 128], strides = [1, 1]} : vector<18x128xf32> to vector<1x128xf32>
    %206 = vector.extract_strided_slice %198 {offsets = [14, 0], sizes = [1, 128], strides = [1, 1]} : vector<18x128xf32> to vector<1x128xf32>
    %207 = vector.extract_strided_slice %198 {offsets = [16, 0], sizes = [1, 128], strides = [1, 1]} : vector<18x128xf32> to vector<1x128xf32>
    %208 = tpu.concatenate %199, %200, %201, %202, %203, %204, %205, %206, %207 in 0 : vector<1x128xf32>, vector<1x128xf32>, vector<1x128xf32>, vector<1x128xf32>, vector<1x128xf32>, vector<1x128xf32>, vector<1x128xf32>, vector<1x128xf32>, vector<1x128xf32> -> vector<9x128xf32>
    %209 = vector.extract_strided_slice %198 {offsets = [1, 0], sizes = [1, 128], strides = [1, 1]} : vector<18x128xf32> to vector<1x128xf32>
    %210 = vector.extract_strided_slice %198 {offsets = [3, 0], sizes = [1, 128], strides = [1, 1]} : vector<18x128xf32> to vector<1x128xf32>
    %211 = vector.extract_strided_slice %198 {offsets = [5, 0], sizes = [1, 128], strides = [1, 1]} : vector<18x128xf32> to vector<1x128xf32>
    %212 = vector.extract_strided_slice %198 {offsets = [7, 0], sizes = [1, 128], strides = [1, 1]} : vector<18x128xf32> to vector<1x128xf32>
    %213 = vector.extract_strided_slice %198 {offsets = [9, 0], sizes = [1, 128], strides = [1, 1]} : vector<18x128xf32> to vector<1x128xf32>
    %214 = vector.extract_strided_slice %198 {offsets = [11, 0], sizes = [1, 128], strides = [1, 1]} : vector<18x128xf32> to vector<1x128xf32>
    %215 = vector.extract_strided_slice %198 {offsets = [13, 0], sizes = [1, 128], strides = [1, 1]} : vector<18x128xf32> to vector<1x128xf32>
    %216 = vector.extract_strided_slice %198 {offsets = [15, 0], sizes = [1, 128], strides = [1, 1]} : vector<18x128xf32> to vector<1x128xf32>
    %217 = vector.extract_strided_slice %198 {offsets = [17, 0], sizes = [1, 128], strides = [1, 1]} : vector<18x128xf32> to vector<1x128xf32>
    %218 = tpu.concatenate %209, %210, %211, %212, %213, %214, %215, %216, %217 in 0 : vector<1x128xf32>, vector<1x128xf32>, vector<1x128xf32>, vector<1x128xf32>, vector<1x128xf32>, vector<1x128xf32>, vector<1x128xf32>, vector<1x128xf32>, vector<1x128xf32> -> vector<9x128xf32>
    %219 = vector.extract_strided_slice %208 {offsets = [1, 0], sizes = [7, 24], strides = [1, 1]} : vector<9x128xf32> to vector<7x24xf32>
    %cst_32 = arith.constant 0.000000e+00 : f32
    %220 = vector.broadcast %cst_32 : f32 to vector<9x128xf32>
    %221 = arith.maximumf %208, %220 : vector<9x128xf32>
    %cst_33 = arith.constant 0.000000e+00 : f32
    %222 = vector.broadcast %cst_33 : f32 to vector<9x128xf32>
    %223 = arith.maximumf %218, %222 : vector<9x128xf32>
    %224 = vector.extract_strided_slice %221 {offsets = [0, 0], sizes = [5, 24], strides = [1, 1]} : vector<9x128xf32> to vector<5x24xf32>
    %225 = vector.extract_strided_slice %223 {offsets = [0, 0], sizes = [5, 24], strides = [1, 1]} : vector<9x128xf32> to vector<5x24xf32>
    %226 = vector.extract_strided_slice %221 {offsets = [1, 0], sizes = [5, 24], strides = [1, 1]} : vector<9x128xf32> to vector<5x24xf32>
    %227 = vector.extract_strided_slice %223 {offsets = [1, 0], sizes = [5, 24], strides = [1, 1]} : vector<9x128xf32> to vector<5x24xf32>
    %228 = vector.extract_strided_slice %221 {offsets = [2, 0], sizes = [5, 24], strides = [1, 1]} : vector<9x128xf32> to vector<5x24xf32>
    %229 = vector.extract_strided_slice %223 {offsets = [2, 0], sizes = [5, 24], strides = [1, 1]} : vector<9x128xf32> to vector<5x24xf32>
    %230 = vector.extract_strided_slice %221 {offsets = [3, 0], sizes = [5, 24], strides = [1, 1]} : vector<9x128xf32> to vector<5x24xf32>
    %231 = vector.extract_strided_slice %223 {offsets = [3, 0], sizes = [5, 24], strides = [1, 1]} : vector<9x128xf32> to vector<5x24xf32>
    %232 = vector.extract_strided_slice %221 {offsets = [4, 0], sizes = [5, 24], strides = [1, 1]} : vector<9x128xf32> to vector<5x24xf32>
    %233 = tpu.concatenate %224, %225, %226, %227, %228, %229, %230, %231, %232 in 1 : vector<5x24xf32>, vector<5x24xf32>, vector<5x24xf32>, vector<5x24xf32>, vector<5x24xf32>, vector<5x24xf32>, vector<5x24xf32>, vector<5x24xf32>, vector<5x24xf32> -> vector<5x216xf32>
    %234 = tpu.concatenate %181, %219 in 0 : vector<7x24xf32>, vector<7x24xf32> -> vector<14x24xf32>
    %235 = arith.truncf %234 : vector<14x24xf32> to vector<14x24xbf16>
    %cst_34 = arith.constant dense<0.000000e+00> : vector<14x128xf32>
    %236 = tpu.matmul %235, %154, %cst_34 {dimension_numbers = #tpu.dot_dimension_numbers<[1], [0], [0], [1], [0, 0, 1, 1], [], []>} : vector<14x24xbf16>, vector<24x128xbf16>, vector<14x128xf32> -> vector<14x128xf32>
    %237 = vector.broadcast %157 : vector<1x128xf32> to vector<14x128xf32>
    %238 = arith.addf %236, %237 : vector<14x128xf32>
    %cst_35 = arith.constant 0.000000e+00 : f32
    %239 = vector.broadcast %cst_35 : f32 to vector<14x128xf32>
    %240 = arith.maximumf %238, %239 : vector<14x128xf32>
    %241 = tpu.concatenate %195, %233 in 0 : vector<5x216xf32>, vector<5x216xf32> -> vector<10x216xf32>
    %242 = arith.truncf %241 : vector<10x216xf32> to vector<10x216xbf16>
    %cst_36 = arith.constant dense<0.000000e+00> : vector<10x128xf32>
    %243 = tpu.matmul %242, %152, %cst_36 {dimension_numbers = #tpu.dot_dimension_numbers<[1], [0], [0], [1], [0, 0, 1, 1], [], []>} : vector<10x216xbf16>, vector<216x128xbf16>, vector<10x128xf32> -> vector<10x128xf32>
    %244 = vector.broadcast %155 : vector<1x128xf32> to vector<10x128xf32>
    %245 = arith.addf %243, %244 : vector<10x128xf32>
    %cst_37 = arith.constant 0.000000e+00 : f32
    %246 = vector.broadcast %cst_37 : f32 to vector<10x128xf32>
    %247 = arith.maximumf %245, %246 : vector<10x128xf32>
    %248 = vector.extract_strided_slice %247 {offsets = [0, 0], sizes = [5, 128], strides = [1, 1]} : vector<10x128xf32> to vector<5x128xf32>
    %cst_38 = arith.constant 0.000000e+00 : f32
    %249 = vector.broadcast %cst_38 : f32 to vector<5x128xf32>
    %250 = tpu.concatenate %249, %248, %249 in 0 : vector<5x128xf32>, vector<5x128xf32>, vector<5x128xf32> -> vector<15x128xf32>
    %251 = vector.extract_strided_slice %250 {offsets = [0, 0], sizes = [7, 32], strides = [1, 1]} : vector<15x128xf32> to vector<7x32xf32>
    %252 = vector.extract_strided_slice %250 {offsets = [1, 0], sizes = [7, 32], strides = [1, 1]} : vector<15x128xf32> to vector<7x32xf32>
    %253 = vector.extract_strided_slice %250 {offsets = [2, 0], sizes = [7, 32], strides = [1, 1]} : vector<15x128xf32> to vector<7x32xf32>
    %254 = vector.extract_strided_slice %250 {offsets = [3, 0], sizes = [7, 32], strides = [1, 1]} : vector<15x128xf32> to vector<7x32xf32>
    %255 = vector.extract_strided_slice %250 {offsets = [4, 0], sizes = [7, 32], strides = [1, 1]} : vector<15x128xf32> to vector<7x32xf32>
    %256 = vector.extract_strided_slice %250 {offsets = [5, 0], sizes = [7, 32], strides = [1, 1]} : vector<15x128xf32> to vector<7x32xf32>
    %257 = vector.extract_strided_slice %250 {offsets = [6, 0], sizes = [7, 32], strides = [1, 1]} : vector<15x128xf32> to vector<7x32xf32>
    %258 = vector.extract_strided_slice %250 {offsets = [7, 0], sizes = [7, 32], strides = [1, 1]} : vector<15x128xf32> to vector<7x32xf32>
    %259 = vector.extract_strided_slice %250 {offsets = [8, 0], sizes = [7, 32], strides = [1, 1]} : vector<15x128xf32> to vector<7x32xf32>
    %260 = tpu.concatenate %251, %252, %253, %254, %255, %256, %257, %258, %259 in 1 : vector<7x32xf32>, vector<7x32xf32>, vector<7x32xf32>, vector<7x32xf32>, vector<7x32xf32>, vector<7x32xf32>, vector<7x32xf32>, vector<7x32xf32>, vector<7x32xf32> -> vector<7x288xf32>
    %261 = vector.extract_strided_slice %247 {offsets = [5, 0], sizes = [5, 128], strides = [1, 1]} : vector<10x128xf32> to vector<5x128xf32>
    %cst_39 = arith.constant 0.000000e+00 : f32
    %262 = vector.broadcast %cst_39 : f32 to vector<5x128xf32>
    %263 = tpu.concatenate %262, %261, %262 in 0 : vector<5x128xf32>, vector<5x128xf32>, vector<5x128xf32> -> vector<15x128xf32>
    %264 = vector.extract_strided_slice %263 {offsets = [0, 0], sizes = [7, 32], strides = [1, 1]} : vector<15x128xf32> to vector<7x32xf32>
    %265 = vector.extract_strided_slice %263 {offsets = [1, 0], sizes = [7, 32], strides = [1, 1]} : vector<15x128xf32> to vector<7x32xf32>
    %266 = vector.extract_strided_slice %263 {offsets = [2, 0], sizes = [7, 32], strides = [1, 1]} : vector<15x128xf32> to vector<7x32xf32>
    %267 = vector.extract_strided_slice %263 {offsets = [3, 0], sizes = [7, 32], strides = [1, 1]} : vector<15x128xf32> to vector<7x32xf32>
    %268 = vector.extract_strided_slice %263 {offsets = [4, 0], sizes = [7, 32], strides = [1, 1]} : vector<15x128xf32> to vector<7x32xf32>
    %269 = vector.extract_strided_slice %263 {offsets = [5, 0], sizes = [7, 32], strides = [1, 1]} : vector<15x128xf32> to vector<7x32xf32>
    %270 = vector.extract_strided_slice %263 {offsets = [6, 0], sizes = [7, 32], strides = [1, 1]} : vector<15x128xf32> to vector<7x32xf32>
    %271 = vector.extract_strided_slice %263 {offsets = [7, 0], sizes = [7, 32], strides = [1, 1]} : vector<15x128xf32> to vector<7x32xf32>
    %272 = vector.extract_strided_slice %263 {offsets = [8, 0], sizes = [7, 32], strides = [1, 1]} : vector<15x128xf32> to vector<7x32xf32>
    %273 = tpu.concatenate %264, %265, %266, %267, %268, %269, %270, %271, %272 in 1 : vector<7x32xf32>, vector<7x32xf32>, vector<7x32xf32>, vector<7x32xf32>, vector<7x32xf32>, vector<7x32xf32>, vector<7x32xf32>, vector<7x32xf32>, vector<7x32xf32> -> vector<7x288xf32>
    %274 = tpu.concatenate %260, %273 in 0 : vector<7x288xf32>, vector<7x288xf32> -> vector<14x288xf32>
    %275 = arith.truncf %274 : vector<14x288xf32> to vector<14x288xbf16>
    %cst_40 = arith.constant dense<0.000000e+00> : vector<14x128xf32>
    %276 = tpu.matmul %275, %153, %cst_40 {dimension_numbers = #tpu.dot_dimension_numbers<[1], [0], [0], [1], [0, 0, 1, 1], [], []>} : vector<14x288xbf16>, vector<288x128xbf16>, vector<14x128xf32> -> vector<14x128xf32>
    %277 = vector.broadcast %156 : vector<1x128xf32> to vector<14x128xf32>
    %278 = arith.addf %276, %277 : vector<14x128xf32>
    %279 = arith.addf %278, %240 : vector<14x128xf32>
    %c0_41 = arith.constant 0 : index
    %c0_42 = arith.constant 0 : index
    %280 = vector.load %arg10[%c0_41, %c0_42] : memref<288x128xbf16, #tpu.memory_space<vmem>>, vector<288x128xbf16>
    %c0_43 = arith.constant 0 : index
    %c0_44 = arith.constant 0 : index
    %281 = vector.load %arg11[%c0_43, %c0_44] : memref<432x128xbf16, #tpu.memory_space<vmem>>, vector<432x128xbf16>
    %c0_45 = arith.constant 0 : index
    %c0_46 = arith.constant 0 : index
    %282 = vector.load %arg12[%c0_45, %c0_46] : memref<32x128xbf16, #tpu.memory_space<vmem>>, vector<32x128xbf16>
    %283 = vector.extract_strided_slice %1 {offsets = [6, 0], sizes = [1, 128], strides = [1, 1]} : vector<9x128xf32> to vector<1x128xf32>
    %284 = vector.extract_strided_slice %1 {offsets = [7, 0], sizes = [1, 128], strides = [1, 1]} : vector<9x128xf32> to vector<1x128xf32>
    %285 = vector.extract_strided_slice %1 {offsets = [8, 0], sizes = [1, 128], strides = [1, 1]} : vector<9x128xf32> to vector<1x128xf32>
    %286 = vector.extract_strided_slice %279 {offsets = [0, 0], sizes = [7, 128], strides = [1, 1]} : vector<14x128xf32> to vector<7x128xf32>
    %cst_47 = arith.constant 0.000000e+00 : f32
    %287 = vector.broadcast %cst_47 : f32 to vector<4x128xf32>
    %288 = tpu.concatenate %287, %286, %287 in 0 : vector<4x128xf32>, vector<7x128xf32>, vector<4x128xf32> -> vector<15x128xf32>
    %289 = vector.extract_strided_slice %288 {offsets = [0, 0], sizes = [1, 128], strides = [1, 1]} : vector<15x128xf32> to vector<1x128xf32>
    %290 = vector.extract_strided_slice %288 {offsets = [2, 0], sizes = [1, 128], strides = [1, 1]} : vector<15x128xf32> to vector<1x128xf32>
    %291 = vector.extract_strided_slice %288 {offsets = [4, 0], sizes = [1, 128], strides = [1, 1]} : vector<15x128xf32> to vector<1x128xf32>
    %292 = vector.extract_strided_slice %288 {offsets = [6, 0], sizes = [1, 128], strides = [1, 1]} : vector<15x128xf32> to vector<1x128xf32>
    %293 = vector.extract_strided_slice %288 {offsets = [8, 0], sizes = [1, 128], strides = [1, 1]} : vector<15x128xf32> to vector<1x128xf32>
    %294 = vector.extract_strided_slice %288 {offsets = [10, 0], sizes = [1, 128], strides = [1, 1]} : vector<15x128xf32> to vector<1x128xf32>
    %295 = vector.extract_strided_slice %288 {offsets = [12, 0], sizes = [1, 128], strides = [1, 1]} : vector<15x128xf32> to vector<1x128xf32>
    %296 = vector.extract_strided_slice %288 {offsets = [14, 0], sizes = [1, 128], strides = [1, 1]} : vector<15x128xf32> to vector<1x128xf32>
    %297 = tpu.concatenate %289, %290, %291, %292, %293, %294, %295, %296 in 0 : vector<1x128xf32>, vector<1x128xf32>, vector<1x128xf32>, vector<1x128xf32>, vector<1x128xf32>, vector<1x128xf32>, vector<1x128xf32>, vector<1x128xf32> -> vector<8x128xf32>
    %298 = vector.extract_strided_slice %288 {offsets = [1, 0], sizes = [1, 128], strides = [1, 1]} : vector<15x128xf32> to vector<1x128xf32>
    %299 = vector.extract_strided_slice %288 {offsets = [3, 0], sizes = [1, 128], strides = [1, 1]} : vector<15x128xf32> to vector<1x128xf32>
    %300 = vector.extract_strided_slice %288 {offsets = [5, 0], sizes = [1, 128], strides = [1, 1]} : vector<15x128xf32> to vector<1x128xf32>
    %301 = vector.extract_strided_slice %288 {offsets = [7, 0], sizes = [1, 128], strides = [1, 1]} : vector<15x128xf32> to vector<1x128xf32>
    %302 = vector.extract_strided_slice %288 {offsets = [9, 0], sizes = [1, 128], strides = [1, 1]} : vector<15x128xf32> to vector<1x128xf32>
    %303 = vector.extract_strided_slice %288 {offsets = [11, 0], sizes = [1, 128], strides = [1, 1]} : vector<15x128xf32> to vector<1x128xf32>
    %304 = vector.extract_strided_slice %288 {offsets = [13, 0], sizes = [1, 128], strides = [1, 1]} : vector<15x128xf32> to vector<1x128xf32>
    %305 = tpu.concatenate %298, %299, %300, %301, %302, %303, %304 in 0 : vector<1x128xf32>, vector<1x128xf32>, vector<1x128xf32>, vector<1x128xf32>, vector<1x128xf32>, vector<1x128xf32>, vector<1x128xf32> -> vector<7x128xf32>
    %306 = vector.extract_strided_slice %297 {offsets = [1, 0], sizes = [6, 32], strides = [1, 1]} : vector<8x128xf32> to vector<6x32xf32>
    %cst_48 = arith.constant 0.000000e+00 : f32
    %307 = vector.broadcast %cst_48 : f32 to vector<8x128xf32>
    %308 = arith.maximumf %297, %307 : vector<8x128xf32>
    %cst_49 = arith.constant 0.000000e+00 : f32
    %309 = vector.broadcast %cst_49 : f32 to vector<7x128xf32>
    %310 = arith.maximumf %305, %309 : vector<7x128xf32>
    %311 = vector.extract_strided_slice %308 {offsets = [0, 0], sizes = [4, 32], strides = [1, 1]} : vector<8x128xf32> to vector<4x32xf32>
    %312 = vector.extract_strided_slice %310 {offsets = [0, 0], sizes = [4, 32], strides = [1, 1]} : vector<7x128xf32> to vector<4x32xf32>
    %313 = vector.extract_strided_slice %308 {offsets = [1, 0], sizes = [4, 32], strides = [1, 1]} : vector<8x128xf32> to vector<4x32xf32>
    %314 = vector.extract_strided_slice %310 {offsets = [1, 0], sizes = [4, 32], strides = [1, 1]} : vector<7x128xf32> to vector<4x32xf32>
    %315 = vector.extract_strided_slice %308 {offsets = [2, 0], sizes = [4, 32], strides = [1, 1]} : vector<8x128xf32> to vector<4x32xf32>
    %316 = vector.extract_strided_slice %310 {offsets = [2, 0], sizes = [4, 32], strides = [1, 1]} : vector<7x128xf32> to vector<4x32xf32>
    %317 = vector.extract_strided_slice %308 {offsets = [3, 0], sizes = [4, 32], strides = [1, 1]} : vector<8x128xf32> to vector<4x32xf32>
    %318 = vector.extract_strided_slice %310 {offsets = [3, 0], sizes = [4, 32], strides = [1, 1]} : vector<7x128xf32> to vector<4x32xf32>
    %319 = vector.extract_strided_slice %308 {offsets = [4, 0], sizes = [4, 32], strides = [1, 1]} : vector<8x128xf32> to vector<4x32xf32>
    %320 = tpu.concatenate %311, %312, %313, %314, %315, %316, %317, %318, %319 in 1 : vector<4x32xf32>, vector<4x32xf32>, vector<4x32xf32>, vector<4x32xf32>, vector<4x32xf32>, vector<4x32xf32>, vector<4x32xf32>, vector<4x32xf32>, vector<4x32xf32> -> vector<4x288xf32>
    %321 = vector.extract_strided_slice %279 {offsets = [7, 0], sizes = [7, 128], strides = [1, 1]} : vector<14x128xf32> to vector<7x128xf32>
    %cst_50 = arith.constant 0.000000e+00 : f32
    %322 = vector.broadcast %cst_50 : f32 to vector<4x128xf32>
    %323 = tpu.concatenate %322, %321, %322 in 0 : vector<4x128xf32>, vector<7x128xf32>, vector<4x128xf32> -> vector<15x128xf32>
    %324 = vector.extract_strided_slice %323 {offsets = [0, 0], sizes = [1, 128], strides = [1, 1]} : vector<15x128xf32> to vector<1x128xf32>
    %325 = vector.extract_strided_slice %323 {offsets = [2, 0], sizes = [1, 128], strides = [1, 1]} : vector<15x128xf32> to vector<1x128xf32>
    %326 = vector.extract_strided_slice %323 {offsets = [4, 0], sizes = [1, 128], strides = [1, 1]} : vector<15x128xf32> to vector<1x128xf32>
    %327 = vector.extract_strided_slice %323 {offsets = [6, 0], sizes = [1, 128], strides = [1, 1]} : vector<15x128xf32> to vector<1x128xf32>
    %328 = vector.extract_strided_slice %323 {offsets = [8, 0], sizes = [1, 128], strides = [1, 1]} : vector<15x128xf32> to vector<1x128xf32>
    %329 = vector.extract_strided_slice %323 {offsets = [10, 0], sizes = [1, 128], strides = [1, 1]} : vector<15x128xf32> to vector<1x128xf32>
    %330 = vector.extract_strided_slice %323 {offsets = [12, 0], sizes = [1, 128], strides = [1, 1]} : vector<15x128xf32> to vector<1x128xf32>
    %331 = vector.extract_strided_slice %323 {offsets = [14, 0], sizes = [1, 128], strides = [1, 1]} : vector<15x128xf32> to vector<1x128xf32>
    %332 = tpu.concatenate %324, %325, %326, %327, %328, %329, %330, %331 in 0 : vector<1x128xf32>, vector<1x128xf32>, vector<1x128xf32>, vector<1x128xf32>, vector<1x128xf32>, vector<1x128xf32>, vector<1x128xf32>, vector<1x128xf32> -> vector<8x128xf32>
    %333 = vector.extract_strided_slice %323 {offsets = [1, 0], sizes = [1, 128], strides = [1, 1]} : vector<15x128xf32> to vector<1x128xf32>
    %334 = vector.extract_strided_slice %323 {offsets = [3, 0], sizes = [1, 128], strides = [1, 1]} : vector<15x128xf32> to vector<1x128xf32>
    %335 = vector.extract_strided_slice %323 {offsets = [5, 0], sizes = [1, 128], strides = [1, 1]} : vector<15x128xf32> to vector<1x128xf32>
    %336 = vector.extract_strided_slice %323 {offsets = [7, 0], sizes = [1, 128], strides = [1, 1]} : vector<15x128xf32> to vector<1x128xf32>
    %337 = vector.extract_strided_slice %323 {offsets = [9, 0], sizes = [1, 128], strides = [1, 1]} : vector<15x128xf32> to vector<1x128xf32>
    %338 = vector.extract_strided_slice %323 {offsets = [11, 0], sizes = [1, 128], strides = [1, 1]} : vector<15x128xf32> to vector<1x128xf32>
    %339 = vector.extract_strided_slice %323 {offsets = [13, 0], sizes = [1, 128], strides = [1, 1]} : vector<15x128xf32> to vector<1x128xf32>
    %340 = tpu.concatenate %333, %334, %335, %336, %337, %338, %339 in 0 : vector<1x128xf32>, vector<1x128xf32>, vector<1x128xf32>, vector<1x128xf32>, vector<1x128xf32>, vector<1x128xf32>, vector<1x128xf32> -> vector<7x128xf32>
    %341 = vector.extract_strided_slice %332 {offsets = [1, 0], sizes = [6, 32], strides = [1, 1]} : vector<8x128xf32> to vector<6x32xf32>
    %cst_51 = arith.constant 0.000000e+00 : f32
    %342 = vector.broadcast %cst_51 : f32 to vector<8x128xf32>
    %343 = arith.maximumf %332, %342 : vector<8x128xf32>
    %cst_52 = arith.constant 0.000000e+00 : f32
    %344 = vector.broadcast %cst_52 : f32 to vector<7x128xf32>
    %345 = arith.maximumf %340, %344 : vector<7x128xf32>
    %346 = vector.extract_strided_slice %343 {offsets = [0, 0], sizes = [4, 32], strides = [1, 1]} : vector<8x128xf32> to vector<4x32xf32>
    %347 = vector.extract_strided_slice %345 {offsets = [0, 0], sizes = [4, 32], strides = [1, 1]} : vector<7x128xf32> to vector<4x32xf32>
    %348 = vector.extract_strided_slice %343 {offsets = [1, 0], sizes = [4, 32], strides = [1, 1]} : vector<8x128xf32> to vector<4x32xf32>
    %349 = vector.extract_strided_slice %345 {offsets = [1, 0], sizes = [4, 32], strides = [1, 1]} : vector<7x128xf32> to vector<4x32xf32>
    %350 = vector.extract_strided_slice %343 {offsets = [2, 0], sizes = [4, 32], strides = [1, 1]} : vector<8x128xf32> to vector<4x32xf32>
    %351 = vector.extract_strided_slice %345 {offsets = [2, 0], sizes = [4, 32], strides = [1, 1]} : vector<7x128xf32> to vector<4x32xf32>
    %352 = vector.extract_strided_slice %343 {offsets = [3, 0], sizes = [4, 32], strides = [1, 1]} : vector<8x128xf32> to vector<4x32xf32>
    %353 = vector.extract_strided_slice %345 {offsets = [3, 0], sizes = [4, 32], strides = [1, 1]} : vector<7x128xf32> to vector<4x32xf32>
    %354 = vector.extract_strided_slice %343 {offsets = [4, 0], sizes = [4, 32], strides = [1, 1]} : vector<8x128xf32> to vector<4x32xf32>
    %355 = tpu.concatenate %346, %347, %348, %349, %350, %351, %352, %353, %354 in 1 : vector<4x32xf32>, vector<4x32xf32>, vector<4x32xf32>, vector<4x32xf32>, vector<4x32xf32>, vector<4x32xf32>, vector<4x32xf32>, vector<4x32xf32>, vector<4x32xf32> -> vector<4x288xf32>
    %356 = tpu.concatenate %306, %341 in 0 : vector<6x32xf32>, vector<6x32xf32> -> vector<12x32xf32>
    %357 = arith.truncf %356 : vector<12x32xf32> to vector<12x32xbf16>
    %cst_53 = arith.constant dense<0.000000e+00> : vector<12x128xf32>
    %358 = tpu.matmul %357, %282, %cst_53 {dimension_numbers = #tpu.dot_dimension_numbers<[1], [0], [0], [1], [0, 0, 1, 1], [], []>} : vector<12x32xbf16>, vector<32x128xbf16>, vector<12x128xf32> -> vector<12x128xf32>
    %359 = vector.broadcast %285 : vector<1x128xf32> to vector<12x128xf32>
    %360 = arith.addf %358, %359 : vector<12x128xf32>
    %cst_54 = arith.constant 0.000000e+00 : f32
    %361 = vector.broadcast %cst_54 : f32 to vector<12x128xf32>
    %362 = arith.maximumf %360, %361 : vector<12x128xf32>
    %363 = tpu.concatenate %320, %355 in 0 : vector<4x288xf32>, vector<4x288xf32> -> vector<8x288xf32>
    %364 = arith.truncf %363 : vector<8x288xf32> to vector<8x288xbf16>
    %cst_55 = arith.constant dense<0.000000e+00> : vector<8x128xf32>
    %365 = tpu.matmul %364, %280, %cst_55 {dimension_numbers = #tpu.dot_dimension_numbers<[1], [0], [0], [1], [0, 0, 1, 1], [], []>} : vector<8x288xbf16>, vector<288x128xbf16>, vector<8x128xf32> -> vector<8x128xf32>
    %366 = vector.broadcast %283 : vector<1x128xf32> to vector<8x128xf32>
    %367 = arith.addf %365, %366 : vector<8x128xf32>
    %cst_56 = arith.constant 0.000000e+00 : f32
    %368 = vector.broadcast %cst_56 : f32 to vector<8x128xf32>
    %369 = arith.maximumf %367, %368 : vector<8x128xf32>
    %370 = vector.extract_strided_slice %369 {offsets = [0, 0], sizes = [4, 128], strides = [1, 1]} : vector<8x128xf32> to vector<4x128xf32>
    %cst_57 = arith.constant 0.000000e+00 : f32
    %371 = vector.broadcast %cst_57 : f32 to vector<5x128xf32>
    %372 = tpu.concatenate %371, %370, %371 in 0 : vector<5x128xf32>, vector<4x128xf32>, vector<5x128xf32> -> vector<14x128xf32>
    %373 = vector.extract_strided_slice %372 {offsets = [0, 0], sizes = [6, 48], strides = [1, 1]} : vector<14x128xf32> to vector<6x48xf32>
    %374 = vector.extract_strided_slice %372 {offsets = [1, 0], sizes = [6, 48], strides = [1, 1]} : vector<14x128xf32> to vector<6x48xf32>
    %375 = vector.extract_strided_slice %372 {offsets = [2, 0], sizes = [6, 48], strides = [1, 1]} : vector<14x128xf32> to vector<6x48xf32>
    %376 = vector.extract_strided_slice %372 {offsets = [3, 0], sizes = [6, 48], strides = [1, 1]} : vector<14x128xf32> to vector<6x48xf32>
    %377 = vector.extract_strided_slice %372 {offsets = [4, 0], sizes = [6, 48], strides = [1, 1]} : vector<14x128xf32> to vector<6x48xf32>
    %378 = vector.extract_strided_slice %372 {offsets = [5, 0], sizes = [6, 48], strides = [1, 1]} : vector<14x128xf32> to vector<6x48xf32>
    %379 = vector.extract_strided_slice %372 {offsets = [6, 0], sizes = [6, 48], strides = [1, 1]} : vector<14x128xf32> to vector<6x48xf32>
    %380 = vector.extract_strided_slice %372 {offsets = [7, 0], sizes = [6, 48], strides = [1, 1]} : vector<14x128xf32> to vector<6x48xf32>
    %381 = vector.extract_strided_slice %372 {offsets = [8, 0], sizes = [6, 48], strides = [1, 1]} : vector<14x128xf32> to vector<6x48xf32>
    %382 = tpu.concatenate %373, %374, %375, %376, %377, %378, %379, %380, %381 in 1 : vector<6x48xf32>, vector<6x48xf32>, vector<6x48xf32>, vector<6x48xf32>, vector<6x48xf32>, vector<6x48xf32>, vector<6x48xf32>, vector<6x48xf32>, vector<6x48xf32> -> vector<6x432xf32>
    %383 = vector.extract_strided_slice %369 {offsets = [4, 0], sizes = [4, 128], strides = [1, 1]} : vector<8x128xf32> to vector<4x128xf32>
    %cst_58 = arith.constant 0.000000e+00 : f32
    %384 = vector.broadcast %cst_58 : f32 to vector<5x128xf32>
    %385 = tpu.concatenate %384, %383, %384 in 0 : vector<5x128xf32>, vector<4x128xf32>, vector<5x128xf32> -> vector<14x128xf32>
    %386 = vector.extract_strided_slice %385 {offsets = [0, 0], sizes = [6, 48], strides = [1, 1]} : vector<14x128xf32> to vector<6x48xf32>
    %387 = vector.extract_strided_slice %385 {offsets = [1, 0], sizes = [6, 48], strides = [1, 1]} : vector<14x128xf32> to vector<6x48xf32>
    %388 = vector.extract_strided_slice %385 {offsets = [2, 0], sizes = [6, 48], strides = [1, 1]} : vector<14x128xf32> to vector<6x48xf32>
    %389 = vector.extract_strided_slice %385 {offsets = [3, 0], sizes = [6, 48], strides = [1, 1]} : vector<14x128xf32> to vector<6x48xf32>
    %390 = vector.extract_strided_slice %385 {offsets = [4, 0], sizes = [6, 48], strides = [1, 1]} : vector<14x128xf32> to vector<6x48xf32>
    %391 = vector.extract_strided_slice %385 {offsets = [5, 0], sizes = [6, 48], strides = [1, 1]} : vector<14x128xf32> to vector<6x48xf32>
    %392 = vector.extract_strided_slice %385 {offsets = [6, 0], sizes = [6, 48], strides = [1, 1]} : vector<14x128xf32> to vector<6x48xf32>
    %393 = vector.extract_strided_slice %385 {offsets = [7, 0], sizes = [6, 48], strides = [1, 1]} : vector<14x128xf32> to vector<6x48xf32>
    %394 = vector.extract_strided_slice %385 {offsets = [8, 0], sizes = [6, 48], strides = [1, 1]} : vector<14x128xf32> to vector<6x48xf32>
    %395 = tpu.concatenate %386, %387, %388, %389, %390, %391, %392, %393, %394 in 1 : vector<6x48xf32>, vector<6x48xf32>, vector<6x48xf32>, vector<6x48xf32>, vector<6x48xf32>, vector<6x48xf32>, vector<6x48xf32>, vector<6x48xf32>, vector<6x48xf32> -> vector<6x432xf32>
    %396 = tpu.concatenate %382, %395 in 0 : vector<6x432xf32>, vector<6x432xf32> -> vector<12x432xf32>
    %397 = arith.truncf %396 : vector<12x432xf32> to vector<12x432xbf16>
    %cst_59 = arith.constant dense<0.000000e+00> : vector<12x128xf32>
    %398 = tpu.matmul %397, %281, %cst_59 {dimension_numbers = #tpu.dot_dimension_numbers<[1], [0], [0], [1], [0, 0, 1, 1], [], []>} : vector<12x432xbf16>, vector<432x128xbf16>, vector<12x128xf32> -> vector<12x128xf32>
    %399 = vector.broadcast %284 : vector<1x128xf32> to vector<12x128xf32>
    %400 = arith.addf %398, %399 : vector<12x128xf32>
    %401 = arith.addf %400, %362 : vector<12x128xf32>
    %cst_60 = arith.constant 0.000000e+00 : f32
    %402 = vector.broadcast %cst_60 : f32 to vector<12x128xf32>
    %403 = arith.maximumf %401, %402 : vector<12x128xf32>
    %404 = vector.extract_strided_slice %403 {offsets = [0, 0], sizes = [6, 128], strides = [1, 1]} : vector<12x128xf32> to vector<6x128xf32>
    %cst_61 = arith.constant dense<0.000000e+00> : vector<128xf32>
    %405 = vector.multi_reduction <add>, %404, %cst_61 [0] : vector<6x128xf32> to vector<128xf32>
    %406 = vector.shape_cast %405 : vector<128xf32> to vector<1x128xf32>
    %cst_62 = arith.constant 6.000000e+00 : f32
    %407 = vector.broadcast %cst_62 : f32 to vector<1x128xf32>
    %408 = arith.divf %406, %407 : vector<1x128xf32>
    %409 = vector.extract_strided_slice %403 {offsets = [6, 0], sizes = [6, 128], strides = [1, 1]} : vector<12x128xf32> to vector<6x128xf32>
    %cst_63 = arith.constant dense<0.000000e+00> : vector<128xf32>
    %410 = vector.multi_reduction <add>, %409, %cst_63 [0] : vector<6x128xf32> to vector<128xf32>
    %411 = vector.shape_cast %410 : vector<128xf32> to vector<1x128xf32>
    %cst_64 = arith.constant 6.000000e+00 : f32
    %412 = vector.broadcast %cst_64 : f32 to vector<1x128xf32>
    %413 = arith.divf %411, %412 : vector<1x128xf32>
    %414 = tpu.concatenate %408, %413 in 0 : vector<1x128xf32>, vector<1x128xf32> -> vector<2x128xf32>
    %c0_65 = arith.constant 0 : index
    %c0_66 = arith.constant 0 : index
    %415 = vector.load %arg2[%c0_65, %c0_66] : memref<128x128xf32, #tpu.memory_space<vmem>>, vector<128x128xf32>
    %cst_67 = arith.constant dense<0.000000e+00> : vector<2x128xf32>
    %416 = tpu.matmul %414, %415, %cst_67 {dimension_numbers = #tpu.dot_dimension_numbers<[1], [0], [0], [1], [0, 0, 1, 1], [], []>} : vector<2x128xf32>, vector<128x128xf32>, vector<2x128xf32> -> vector<2x128xf32>
    %417 = tpu.iota {dimensions = array<i32: 1>} : vector<2x128xi32>
    %c3_i32 = arith.constant 3 : i32
    %418 = vector.broadcast %c3_i32 : i32 to vector<2x128xi32>
    %419 = arith.cmpi slt, %417, %418 : vector<2x128xi32>
    %cst_68 = arith.constant -1.000000e+30 : f32
    %420 = vector.broadcast %cst_68 : f32 to vector<2x128xf32>
    %421 = arith.select %419, %416, %420 : vector<2x128xi1>, vector<2x128xf32>
    %cst_69 = arith.constant dense<0xFF800000> : vector<2xf32>
    %422 = vector.multi_reduction <maximumf>, %421, %cst_69 [1] : vector<2x128xf32> to vector<2xf32>
    %423 = vector.shape_cast %422 : vector<2xf32> to vector<2x1xf32>
    %424 = vector.broadcast %423 : vector<2x1xf32> to vector<2x128xf32>
    %425 = arith.subf %421, %424 : vector<2x128xf32>
    %426 = math.exp %425 : vector<2x128xf32>
    %cst_70 = arith.constant dense<0.000000e+00> : vector<2xf32>
    %427 = vector.multi_reduction <add>, %426, %cst_70 [1] : vector<2x128xf32> to vector<2xf32>
    %428 = vector.shape_cast %427 : vector<2xf32> to vector<2x1xf32>
    %429 = math.log %428 : vector<2x1xf32>
    %430 = vector.broadcast %423 : vector<2x1xf32> to vector<2x128xf32>
    %431 = arith.subf %421, %430 : vector<2x128xf32>
    %432 = vector.broadcast %429 : vector<2x1xf32> to vector<2x128xf32>
    %433 = arith.subf %431, %432 : vector<2x128xf32>
    %c0_71 = arith.constant 0 : index
    %c0_72 = arith.constant 0 : index
    %434 = vector.load %arg13[%c0_71, %c0_72] : memref<2x128xf32, #tpu.memory_space<vmem>>, vector<2x128xf32>
    tpu.vector_store %arg13[%c0_71, %c0_72], %433 {strides = array<i32>} : memref<2x128xf32, #tpu.memory_space<vmem>>, vector<2x128xf32>,
    return
  }
}

</mosaic_0001>

<bundles_post_ra>
// kernel: tcresnet_forward.1
= control target key start
LH: loop header
LB: loop body
LE: loop exit
PB: predicated region body
PF: predicated region fallthrough
CT: control target
= control target key end

     0   :  { %18 = vsyncpa [#allocation3], 0  ;;  %s5059_s0 = inlined_call_operand.vmem [shape: f32[32,128], index: 0, kind: input, shape index: {}]   ;;  %s5060_s1 = inlined_call_operand.vmem [shape: f32[9,128], index: 1, kind: input, shape index: {}]   ;;  %s5061_s2 = inlined_call_operand.hbm [shape: f32[128,128], index: 2, kind: input, shape index: {}]   ;;  %s5062_s3 = inlined_call_operand.vmem [shape: bf16[72,128], index: 3, kind: input, shape index: {}]   ;;  %s5063_s4 = inlined_call_operand.hbm [shape: bf16[144,128], index: 4, kind: input, shape index: {}]   ;;  %s5064_s5 = inlined_call_operand.hbm [shape: bf16[216,128], index: 5, kind: input, shape index: {}]   ;;  %s5065_s6 = inlined_call_operand.hbm [shape: bf16[16,128], index: 6, kind: input, shape index: {}]   ;;  %s5066_s7 = inlined_call_operand.hbm [shape: bf16[216,128], index: 7, kind: input, shape index: {}]   ;;  %s5067_s8 = inlined_call_operand.hbm [shape: bf16[288,128], index: 8, kind: input, shape index: {}]   ;;  %s5068_s9 = inlined_call_operand.hbm [shape: bf16[24,128], index: 9, kind: input, shape index: {}]   ;;  %s5069_s10 = inlined_call_operand.hbm [shape: bf16[288,128], index: 10, kind: input, shape index: {}]   ;;  %s5070_s11 = inlined_call_operand.vmem [shape: bf16[432,128], index: 11, kind: input, shape index: {}]   ;;  %s5071_s12 = inlined_call_operand.hbm [shape: bf16[32,128], index: 12, kind: input, shape index: {}]   ;;  %s5072_s13 = inlined_call_operand.hbm [shape: f32[2,128], index: 13, kind: output, shape index: {}]  }
   0x1   :  { %19 = vsyncpa [#allocation6], 0 }
   0x2   :  { %20 = vsyncpa [#allocation9], 0 }
   0x3   :  { %21 = vsyncpa [#allocation12], 0 }
   0x4   :  { %22 = vsyncpa [#allocation15], 0 }
   0x5   :  { %23 = vsyncpa [#allocation4], 0  ;;  %s3929_s25 = smov [#allocation5]   ;;  %s3697_s29 = scalar_lea.hbm %s5063_s4, 1152 }
   0x6   :  { %s47_s26 = sshll.u32 %s3929_s25, 4  ;;  %p3698_p0 = scmp.ne.s32.totalorder %s5063_s4, %s3697_s29  ;;  %s48_s26 = int_to_ptr.vmem [resolvable:$true] %s47_s26 }
   0x7   :  { %p3701_p1 = scmp.lt.u32.totalorder %s3697_s29, %s5063_s4 }
   0x9   :  { %p3703_p2 = pnand %p3701_p1, %p3698_p0 }
   0xb   :  { %3706 = shalt.err (!%p3703_p2)
}
   0xc   :  { %s3707_s17 = scalar_lea.vmem %s48_s26, 1152  ;;  %p3712_p4 = scmp.lt.s32.totalorder %s48_s26, %s48_s26 }
   0xd   :  { %p3708_p3 = scmp.ne.s32.totalorder %s48_s26, %s3707_s17  ;;  %p3713_p5 = scmp.lt.s32.totalorder %s3707_s17, %s3707_s17 }
   0xf   :  { %p3714_p6 = por %p3713_p5, %p3712_p4 }
  0x11   :  { %p3715_p7 = pnand %p3714_p6, %p3708_p3 }
  0x13   :  { %3718 = shalt.err (!%p3715_p7)
}
  0x14   :  { %s3930_s18 = smov 64   ;;  %s3931_s19 = smov 4  }
  0x15   :  { %53 = dma.hbm_to_vmem [thread:$0]  %s5063_s4, 1152, %s48_s26, [#allocation6], %s3930_s18, %s3930_s18, %s3931_s19  }
  0x16   :  { %s3932_s22 = smov [#allocation8]   ;;  %s3933_s24 = smov [#allocation11]  }
  0x17   :  { %s71_s23 = sshll.u32 %s3932_s22, 4  ;;  %s95_s25 = sshll.u32 %s3933_s24, 4  ;;  %s72_s23 = int_to_ptr.vmem [resolvable:$true] %s71_s23  ;;  %s96_s25 = int_to_ptr.vmem [resolvable:$true] %s95_s25 }
  0x18   :  { %s3719_s29 = scalar_lea.hbm %s5065_s6, 128 }
  0x19   :  { %p3720_p8 = scmp.ne.s32.totalorder %s5065_s6, %s3719_s29  ;;  %p3723_p9 = scmp.lt.u32.totalorder %s3719_s29, %s5065_s6 }
  0x1b   :  { %p3725_p10 = pnand %p3723_p9, %p3720_p8 }
  0x1d   :  { %3728 = shalt.err (!%p3725_p10)
}
  0x1e   :  { %s3729_s4 = scalar_lea.vmem %s72_s23, 128  ;;  %p3734_p12 = scmp.lt.s32.totalorder %s72_s23, %s72_s23 }
  0x1f   :  { %p3730_p11 = scmp.ne.s32.totalorder %s72_s23, %s3729_s4  ;;  %p3735_p13 = scmp.lt.s32.totalorder %s3729_s4, %s3729_s4 }
  0x21   :  { %p3736_p0 = por %p3735_p13, %p3734_p12 }
  0x23   :  { %p3737_p1 = pnand %p3736_p0, %p3730_p11 }
  0x25   :  { %3740 = shalt.err (!%p3737_p1)
}
  0x26   :  { %77 = dma.hbm_to_vmem [thread:$0]  %s5065_s6, 128, %s72_s23, [#allocation9], %s3930_s18, %s3930_s18, %s3931_s19  }
  0x27   :  { %s3741_s22 = scalar_lea.hbm %s5067_s8, 2304 }
  0x28   :  { %p3742_p2 = scmp.ne.s32.totalorder %s5067_s8, %s3741_s22  ;;  %p3745_p3 = scmp.lt.u32.totalorder %s3741_s22, %s5067_s8 }
  0x2a   :  { %p3747_p4 = pnand %p3745_p3, %p3742_p2 }
  0x2c   :  { %3750 = shalt.err (!%p3747_p4)
}
  0x2d   :  { %s3751_s30 = scalar_lea.vmem %s96_s25, 2304  ;;  %p3756_p6 = scmp.lt.s32.totalorder %s96_s25, %s96_s25 }
  0x2e   :  { %p3752_p5 = scmp.ne.s32.totalorder %s96_s25, %s3751_s30  ;;  %p3757_p7 = scmp.lt.s32.totalorder %s3751_s30, %s3751_s30 }
  0x30   :  { %p3758_p8 = por %p3757_p7, %p3756_p6 }
  0x32   :  { %p3759_p9 = pnand %p3758_p8, %p3752_p5 }
  0x34   :  { %3762 = shalt.err (!%p3759_p9)
}
  0x35   :  { %101 = dma.hbm_to_vmem [thread:$0]  %s5067_s8, 2304, %s96_s25, [#allocation12], %s3930_s18, %s3930_s18, %s3931_s19  }
  0x36   :  { %s3934_s14 = smov [#allocation14]   ;;  %s3935_s16 = smov [#allocation2]  }
  0x37   :  { %s119_s15 = sshll.u32 %s3934_s14, 4  ;;  %s33_s4 = sshll.u32 %s3935_s16, 4  ;;  %s120_s15 = int_to_ptr.vmem [resolvable:$true] %s119_s15  ;;  %s34_s4 = int_to_ptr.vmem [resolvable:$true] %s33_s4 }
  0x38   :  { %s3763_s20 = scalar_lea.hbm %s5069_s10, 2304 }
  0x39   :  { %p3764_p10 = scmp.ne.s32.totalorder %s5069_s10, %s3763_s20  ;;  %p3767_p11 = scmp.lt.u32.totalorder %s3763_s20, %s5069_s10 }
  0x3b   :  { %p3769_p12 = pnand %p3767_p11, %p3764_p10 }
  0x3d   :  { %3772 = shalt.err (!%p3769_p12)
}
  0x3e   :  { %s3773_s8 = scalar_lea.vmem %s120_s15, 2304  ;;  %p3778_p0 = scmp.lt.s32.totalorder %s120_s15, %s120_s15 }
  0x3f   :  { %p3774_p13 = scmp.ne.s32.totalorder %s120_s15, %s3773_s8  ;;  %p3779_p1 = scmp.lt.s32.totalorder %s3773_s8, %s3773_s8 }
  0x41   :  { %p3780_p2 = por %p3779_p1, %p3778_p0 }
  0x43   :  { %p3781_p3 = pnand %p3780_p2, %p3774_p13 }
  0x45   :  { %3784 = shalt.err (!%p3781_p3)
}
  0x46   :  { %125 = dma.hbm_to_vmem [thread:$0]  %s5069_s10, 2304, %s120_s15, [#allocation15], %s3930_s18, %s3930_s18, %s3931_s19  }
  0x47   :  { %s3785_s6 = scalar_lea.hbm %s5061_s2, 2048 }
  0x48   :  { %p3786_p4 = scmp.ne.s32.totalorder %s5061_s2, %s3785_s6  ;;  %p3789_p5 = scmp.lt.u32.totalorder %s3785_s6, %s5061_s2 }
  0x4a   :  { %p3791_p6 = pnand %p3789_p5, %p3786_p4 }
  0x4c   :  { %3794 = shalt.err (!%p3791_p6)
}
  0x4d   :  { %s3795_s17 = scalar_lea.vmem %s34_s4, 2048  ;;  %p3800_p8 = scmp.lt.s32.totalorder %s34_s4, %s34_s4 }
  0x4e   :  { %p3796_p7 = scmp.ne.s32.totalorder %s34_s4, %s3795_s17  ;;  %p3801_p9 = scmp.lt.s32.totalorder %s3795_s17, %s3795_s17 }
  0x50   :  { %p3802_p10 = por %p3801_p9, %p3800_p8 }
  0x52   :  { %p3803_p11 = pnand %p3802_p10, %p3796_p7 }
  0x54   :  { %3806 = shalt.err (!%p3803_p11)
}
  0x55   :  { %s3936_s10 = smov 128   ;;  %s3937_s15 = smov 8  }
  0x56   :  { %39 = dma.hbm_to_vmem [thread:$0]  %s5061_s2, 2048, %s34_s4, [#allocation3], %s3936_s10, %s3936_s10, %s3937_s15  }
  0x57   :  { %s3938_s22 = smov [#allocation7]   ;;  %s3939_s27 = smov [#allocation10]  }
  0x58   :  { %s59_s24 = sshll.u32 %s3938_s22, 4  ;;  %s83_s8 = sshll.u32 %s3939_s27, 4  ;;  %s60_s24 = int_to_ptr.vmem [resolvable:$true] %s59_s24  ;;  %s84_s8 = int_to_ptr.vmem [resolvable:$true] %s83_s8 }
  0x59   :  { %s3807_s29 = scalar_lea.hbm %s5064_s5, 1728 }
  0x5a   :  { %p3808_p12 = scmp.ne.s32.totalorder %s5064_s5, %s3807_s29  ;;  %p3811_p13 = scmp.lt.u32.totalorder %s3807_s29, %s5064_s5 }
  0x5c   :  { %p3813_p0 = pnand %p3811_p13, %p3808_p12 }
  0x5e   :  { %3816 = shalt.err (!%p3813_p0)
}
  0x5f   :  { %s3817_s2 = scalar_lea.vmem %s60_s24, 1728  ;;  %p3822_p2 = scmp.lt.s32.totalorder %s60_s24, %s60_s24 }
  0x60   :  { %p3818_p1 = scmp.ne.s32.totalorder %s60_s24, %s3817_s2  ;;  %p3823_p3 = scmp.lt.s32.totalorder %s3817_s2, %s3817_s2 }
  0x62   :  { %p3824_p4 = por %p3823_p3, %p3822_p2 }
  0x64   :  { %p3825_p5 = pnand %p3824_p4, %p3818_p1 }
  0x66   :  { %3828 = shalt.err (!%p3825_p5)
}
  0x67   :  { %65 = dma.hbm_to_vmem [thread:$0]  %s5064_s5, 1728, %s60_s24, [#allocation6], %s3930_s18, %s3930_s18, %s3931_s19  }
  0x68   :  { %s3829_s10 = scalar_lea.hbm %s5066_s7, 1728 }
  0x69   :  { %p3830_p6 = scmp.ne.s32.totalorder %s5066_s7, %s3829_s10  ;;  %p3833_p7 = scmp.lt.u32.totalorder %s3829_s10, %s5066_s7 }
  0x6b   :  { %p3835_p8 = pnand %p3833_p7, %p3830_p6 }
  0x6d   :  { %3838 = shalt.err (!%p3835_p8)
}
  0x6e   :  { %s3839_s27 = scalar_lea.vmem %s84_s8, 1728  ;;  %p3844_p10 = scmp.lt.s32.totalorder %s84_s8, %s84_s8 }
  0x6f   :  { %p3840_p9 = scmp.ne.s32.totalorder %s84_s8, %s3839_s27  ;;  %p3845_p11 = scmp.lt.s32.totalorder %s3839_s27, %s3839_s27 }
  0x71   :  { %p3846_p12 = por %p3845_p11, %p3844_p10 }
  0x73   :  { %p3847_p13 = pnand %p3846_p12, %p3840_p9 }
  0x75   :  { %3850 = shalt.err (!%p3847_p13)
}
  0x76   :  { %89 = dma.hbm_to_vmem [thread:$0]  %s5066_s7, 1728, %s84_s8, [#allocation9], %s3930_s18, %s3930_s18, %s3931_s19  }
  0x77   :  { %s3940_s25 = smov [#allocation13]   ;;  %s3941_s29 = smov [#allocation16]  }
  0x78   :  { %s107_s28 = sshll.u32 %s3940_s25, 4  ;;  %s133_s30 = sshll.u32 %s3941_s29, 4  ;;  %s108_s28 = int_to_ptr.vmem [resolvable:$true] %s107_s28  ;;  %s134_s30 = int_to_ptr.vmem [resolvable:$true] %s133_s30 }
  0x79   :  { %s3851_s14 = scalar_lea.hbm %s5068_s9, 192 }
  0x7a   :  { %p3852_p0 = scmp.ne.s32.totalorder %s5068_s9, %s3851_s14  ;;  %p3855_p1 = scmp.lt.u32.totalorder %s3851_s14, %s5068_s9 }
  0x7c   :  { %p3857_p2 = pnand %p3855_p1, %p3852_p0 }
  0x7e   :  { %3860 = shalt.err (!%p3857_p2)
}
  0x7f   :  { %s3861_s7 = scalar_lea.vmem %s108_s28, 192  ;;  %p3866_p4 = scmp.lt.s32.totalorder %s108_s28, %s108_s28 }
  0x80   :  { %p3862_p3 = scmp.ne.s32.totalorder %s108_s28, %s3861_s7  ;;  %p3867_p5 = scmp.lt.s32.totalorder %s3861_s7, %s3861_s7 }
  0x82   :  { %p3868_p6 = por %p3867_p5, %p3866_p4 }
  0x84   :  { %p3869_p7 = pnand %p3868_p6, %p3862_p3 }
  0x86   :  { %3872 = shalt.err (!%p3869_p7)
}
  0x87   :  { %113 = dma.hbm_to_vmem [thread:$0]  %s5068_s9, 192, %s108_s28, [#allocation12], %s3930_s18, %s3930_s18, %s3931_s19  }
  0x88   :  { %s3873_s20 = scalar_lea.hbm %s5071_s12, 256 }
  0x89   :  { %p3874_p8 = scmp.ne.s32.totalorder %s5071_s12, %s3873_s20  ;;  %p3877_p9 = scmp.lt.u32.totalorder %s3873_s20, %s5071_s12 }
  0x8b   :  { %p3879_p10 = pnand %p3877_p9, %p3874_p8 }
  0x8d   :  { %3882 = shalt.err (!%p3879_p10)
}
  0x8e   :  { %s3883_s24 = scalar_lea.vmem %s134_s30, 256  ;;  %p3888_p12 = scmp.lt.s32.totalorder %s134_s30, %s134_s30 }
  0x8f   :  { %p3884_p11 = scmp.ne.s32.totalorder %s134_s30, %s3883_s24  ;;  %p3889_p13 = scmp.lt.s32.totalorder %s3883_s24, %s3883_s24 }
  0x91   :  { %p3890_p0 = por %p3889_p13, %p3888_p12 }
  0x93   :  { %p3891_p1 = pnand %p3890_p0, %p3884_p11 }
  0x95   :  { %3894 = shalt.err (!%p3891_p1)
}
  0x96   :  { %139 = dma.hbm_to_vmem [thread:$0]  %s5071_s12, 256, %s134_s30, [#allocation15], %s3930_s18, %s3930_s18, %s3931_s19  }
  0x97   :  { %3917 = dma.done.wait [#allocation3], 2048  }
  0x98   :  { %3918 = vsyncadd [#allocation3], 4294965248 }
  0x99   :  { %3919 = dma.done.wait [#allocation6], 2880  }
  0x9a   :  { %3920 = vsyncadd [#allocation6], 4294964416 }
  0x9b   :  { %3921 = dma.done.wait [#allocation9], 1856  }
  0x9c   :  { %3922 = vsyncadd [#allocation9], 4294965440 }
  0x9d   :  { %3923 = dma.done.wait [#allocation12], 2496  }
  0x9e   :  { %3924 = vsyncadd [#allocation12], 4294964800 }
  0x9f   :  { %3925 = dma.done.wait [#allocation15], 2560  }
  0xa0   :  { %3926 = vsyncadd [#allocation15], 4294964736  ;;  %vm176_vm0 = vcmask 1040384   ;;  %v170_v0 = vld [vmem:[%s5059_s0 + $0x10] sm:$0xff]  ;;  %v171_v1 = vld [vmem:[%s5059_s0 + $0x18] sm:$0xff]  ;;  %vm187_vm1 = vcmask 1046528  }
  0xa1   :  { %v168_v2 = vld [vmem:[%s5059_s0] sm:$0xff]  ;;  %vm199_vm2 = vcmask 1045504   ;;  %v219_v3 = vrot.slane %v170_v0, 7  ;;  %v220_v4 = vrot.slane %v171_v1, 7  ;;  %v169_v5 = vld [vmem:[%s5059_s0 + $0x8] sm:$0xff]  ;;  %v3584_v22 = vld [vmem:[%s5062_s3 + $0x10] sm:$0xff]  }
  0xa2   :  { %v177_v6 = vrot.slane %v168_v2, 7  ;;  %v178_v7 = vrot.slane %v169_v5, 7  ;;  %v3582_v8 = vld [vmem:[%s5062_s3] sm:$0xff]   ;;  %v3583_v13 = vld [vmem:[%s5062_s3 + $0x8] sm:$0xff]   ;;  %vm300_vm3 = vcmask 1043456   ;;  %s3942_s10 = smov 24  }
  0xa3   :  { %v4175_v9 = vsel %vm176_vm0, %v219_v3, %v220_v4  ;;  %v4178_v10 = vsel %vm176_vm0, 0.0, %v219_v3  ;;  %v226_v11 = vsel %vm176_vm0, %v220_v4, 0.0  ;;  %3202 = vmatprep.subr.bf16.mxu0 %v3582_v8  ;;  %v3586_v34 = vld [vmem:[%s5062_s3 + $0x20] ss:$0 sps:$4 sm:$0xff]   ;;  %v3585_v41 = vld [vmem:[%s5062_s3 + $0x18] sm:$0xff]   ;;  %s3943_s21 = smov 48  }
  0xa4   :  { %v4182_v12 = vsel %vm176_vm0, 0.0, %v177_v6  ;;  %v229_v14 = vrot.slane %v4178_v10, 1  ;;  %v230_v15 = vrot.slane %v4175_v9, 1  ;;  %v232_v16 = vrot.slane %v226_v11, 1  ;;  %3203 = vmatpush3.bf16.msra.mxu0 %v3582_v8  ;;  %v3587_v2 = vld [vmem:[#allocation8] sm:$0xff]   ;;  %s3945_s3 = smov 16  }
  0xa5   :  { %v243_v17 = vrot.slane %v226_v11, 2  ;;  %v179_v18 = vsel %vm176_vm0, %v177_v6, %v178_v7  ;;  %v184_v19 = vsel %vm176_vm0, %v178_v7, 0.0  ;;  %v188_v20 = vrot.slane %v4182_v12, 1  ;;  %3204 = vmatprep.subr.bf16.mxu0 %v3583_v13  ;;  %3216 = vmatprep.subr.bf16.mxu1 %v3587_v2  ;;  %s3946_s22 = smov 32   ;;  %s3947_s27 = smov 80  }
  0xa6   :  { %v240_v21 = vrot.slane %v4178_v10, 2  ;;  %v231_v23 = vsel %vm187_vm1, %v229_v14, %v230_v15  ;;  %v233_v24 = vsel %vm187_vm1, %v230_v15, %v232_v16  ;;  %v189_v25 = vrot.slane %v179_v18, 1  ;;  %3217 = vmatpush3.bf16.msra.mxu1 %v3587_v2  ;;  %s3948_s5 = smov 96   ;;  %s3949_s24 = smov 112  }
  0xa7   :  { %v191_v26 = vrot.slane %v184_v19, 1  ;;  %v3352_v27 = vpack.i.bf16 %v233_v24, %v231_v23  ;;  %v203_v28 = vrot.slane %v184_v19, 2  ;;  %v241_v29 = vrot.slane %v4175_v9, 2  ;;  %s3951_s28 = smov 40   ;;  %s3952_s29 = smov 72  }
  0xa8   :  { %v200_v30 = vrot.slane %v4182_v12, 2  ;;  %v190_v31 = vsel %vm187_vm1, %v188_v20, %v189_v25  ;;  %v201_v33 = vrot.slane %v179_v18, 2  ;;  %3205 = vmatpush3.bf16.msra.mxu0 %v3583_v13  ;;  %v302_v42 = vsel %vm300_vm3, %v3586_v34, 0  ;;  %s3953_s6 = smov 120  }
  0xa9   :  { %v192_v32 = vsel %vm187_vm1, %v189_v25, %v191_v26  ;;  %3353 = vrot.lane.b32.xlu1 %v3352_v27, %s3942_s10  ;;  %v242_v36 = vsel %vm199_vm2, %v240_v21, %v241_v29  ;;  %v244_v37 = vsel %vm199_vm2, %v241_v29, %v243_v17  ;;  %3206 = vmatprep.subr.bf16.mxu0 %v3584_v22  ;;  %vm211_vm4 = vcmask 195584  }
  0xaa   :  { %v3342_v35 = vpack.i.bf16 %v192_v32, %v190_v31  ;;  %v3357_v38 = vpack.i.bf16 %v244_v37, %v242_v36  ;;  %v202_v39 = vsel %vm199_vm2, %v200_v30, %v201_v33  ;;  %v204_v40 = vsel %vm199_vm2, %v201_v33, %v203_v28 }
  0xab   :  { %v3347_v43 = vpack.i.bf16 %v204_v40, %v202_v39  ;;  %vm5077_vm5 = vcmask 392192   ;;  %vm293_vm6 = vcmask 588800   ;;  %v3944_v3 = vmov 0  }
  0xac   :  { %3343 = vrot.lane.b32.xlu0 %v3342_v35, %s3942_s10  ;;  %3207 = vmatpush3.bf16.msra.mxu0 %v3584_v22  ;;  %vm433_vm7 = vcmask 1041408   ;;  %vm435_vm8 = vcmask 1042432   ;;  %vm438_vm9 = vcmask 1044480   ;;  %vm506_vm10 = vcmask 130048  }
  0xad   :  { %3358 = vrot.lane.b32.xlu1 %v3357_v38, %s3943_s21  ;;  %3208 = vmatprep.subr.bf16.mxu0 %v3585_v41  ;;  %vm5075_vm11 = vcmask 261120   ;;  %vm5076_vm12 = vcmask 523264   ;;  %vm5073_vm13 = vcmask 654336   ;;  %vm515_vm14 = vcmask 785408  }
  0xae   :  { %769 = vmatprep.subr.bf16.mxu1 %v3944_v3  ;;  %vm5074_vm15 = vcmask 916480  }
  0xb0   :  { %3348 = vrot.lane.b32.xlu0 %v3347_v43, %s3943_s21  ;;  %3209 = vmatpush3.bf16.msra.mxu0 %v3585_v41 }
  0xb1   :  { %3313 = vmatprep.subr.msk.bf16.mxu0 %vm300_vm3, %v3586_v34 }
  0xb4   :  { %3211 = vmatpush3.bf16.msra.mxu0 %v302_v42 }
  0xb5   :  { %1114 = vmatprep.subr.bf16.mxu0 %v3944_v3 }
 0x11b   :  { %v3354_v44 = vpop.permute.xlu1 %3353 }
 0x11c   :  { %v3356_v45 = vunpack.i.h.bf16 %v3354_v44  ;;  %v3355_v46 = vunpack.i.l.bf16 %v3354_v44 }
 0x11e   :  { %v3344_v47 = vpop.permute.xlu0 %3343  ;;  %v252_v53 = vsel %vm211_vm4, %v4175_v9, %v3356_v45  ;;  %v251_v54 = vsel %vm211_vm4, %v4178_v10, %v3355_v46 }
 0x11f   :  { %v3346_v48 = vunpack.i.h.bf16 %v3344_v47  ;;  %v3345_v49 = vunpack.i.l.bf16 %v3344_v47  ;;  %v3359_v50 = vpop.permute.xlu1 %3358 }
 0x120   :  { %v3361_v51 = vunpack.i.h.bf16 %v3359_v50  ;;  %v3360_v52 = vunpack.i.l.bf16 %v3359_v50 }
 0x121   :  { %v212_v60 = vsel %vm211_vm4, %v4182_v12, %v3345_v49  ;;  %v213_v61 = vsel %vm211_vm4, %v179_v18, %v3346_v48 }
 0x122   :  { %v3349_v55 = vpop.permute.xlu0 %3348  ;;  %v253_v56 = vsel %vm5077_vm5, %v251_v54, %v3360_v52  ;;  %v254_v57 = vsel %vm5077_vm5, %v252_v53, %v3361_v51 }
 0x123   :  { %v3351_v58 = vunpack.i.h.bf16 %v3349_v55  ;;  %v3350_v59 = vunpack.i.l.bf16 %v3349_v55  ;;  %v265_v62 = vpack.c.bf16 %v254_v57, %v253_v56 }
 0x125   :  { %v215_v63 = vsel %vm5077_vm5, %v212_v60, %v3350_v59  ;;  %v216_v0 = vsel %vm5077_vm5, %v213_v61, %v3351_v58 }
 0x126   :  { %v264_v1 = vpack.c.bf16 %v216_v0, %v215_v63 }
 0x128   :  { %3212 = vmatprep.mubr.msk.bf16.mxu0 %vm293_vm6, %v264_v1 }
 0x129   :  { %3213 = vmatmul.mubr.msk.bf16.vlgmr.msra.gmra.mrb[0].mxu0 %vm293_vm6, %v265_v62 }
 0x1fc   :  { %v3214_v4 = vpop.f32.mrb[0].mxu0 }
 0x1fd   :  { %v521_v5 = vrot.slane %v3214_v4, 4  ;;  %v338_v6 = vpop.f32.mrb[1].mxu0 }
 0x1fe   :  { %v402_v7 = vrot.slane %v338_v6, 4  ;;  %v3215_v8 = vpop.f32.mrb[2].mxu0 }
 0x1ff   :  { %v527_v9 = vsel %vm300_vm3, 0.0, %v521_v5  ;;  %v522_v10 = vrot.slane %v3215_v8, 4  ;;  %v341_v11 = vpop.f32.mrb[3].mxu0 }
 0x200   :  { %v530_v12 = vrot.slane %v527_v9, 1  ;;  %v532_v13 = vrot.slane %v527_v9, 2  ;;  %v534_v14 = vrot.slane %v527_v9, 3  ;;  %v561_v15 = vrot.slane %v527_v9, 4 }
 0x201   :  { %v408_v16 = vsel %vm300_vm3, 0.0, %v402_v7  ;;  %v4236_v17 = vsel %vm300_vm3, %v521_v5, %v522_v10  ;;  %v4239_v18 = vsel %vm300_vm3, %v522_v10, 0.0  ;;  %v403_v19 = vrot.slane %v341_v11, 4 }
 0x202   :  { %v551_v20 = vsel %vm176_vm0, %v527_v9, %v530_v12  ;;  %v565_v21 = vsel %vm176_vm0, %v530_v12, %v532_v13  ;;  %v411_v22 = vrot.slane %v408_v16, 1  ;;  %v413_v23 = vrot.slane %v408_v16, 2 }
 0x203   :  { %v552_v24 = vsel %vm433_vm7, %v551_v20, %v532_v13  ;;  %v566_v25 = vsel %vm433_vm7, %v565_v21, %v534_v14  ;;  %v415_v26 = vrot.slane %v408_v16, 3  ;;  %v445_v27 = vrot.slane %v408_v16, 4 }
 0x204   :  { %v553_v28 = vsel %vm435_vm8, %v552_v24, %v534_v14  ;;  %v567_v29 = vsel %vm435_vm8, %v566_v25, %v561_v15  ;;  %v432_v30 = vsel %vm176_vm0, %v408_v16, %v411_v22  ;;  %v449_v31 = vsel %vm176_vm0, %v411_v22, %v413_v23 }
 0x205   :  { %v434_v32 = vsel %vm433_vm7, %v432_v30, %v413_v23  ;;  %v450_v33 = vsel %vm433_vm7, %v449_v31, %v415_v26  ;;  %v536_v34 = vrot.slane %v4236_v17, 4  ;;  %v538_v35 = vrot.slane %v4236_v17, 5 }
 0x206   :  { %v436_v36 = vsel %vm435_vm8, %v434_v32, %v415_v26  ;;  %v451_v37 = vsel %vm435_vm8, %v450_v33, %v445_v27  ;;  %v540_v38 = vrot.slane %v4236_v17, 6  ;;  %v542_v39 = vrot.slane %v4236_v17, 7 }
 0x207   :  { %v545_v40 = vrot.slane %v4239_v18, 1  ;;  %v547_v41 = vrot.slane %v4239_v18, 2  ;;  %v549_v42 = vrot.slane %v4239_v18, 3  ;;  %v554_v43 = vsel %vm300_vm3, %v553_v28, %v536_v34 }
 0x208   :  { %v555_v44 = vsel %vm438_vm9, %v554_v43, %v538_v35  ;;  %v563_v45 = vrot.slane %v4239_v18, 4  ;;  %v404_v46 = vsel %vm300_vm3, %v402_v7, %v403_v19  ;;  %v409_v47 = vsel %vm300_vm3, %v403_v19, 0.0 }
 0x209   :  { %v556_v48 = vsel %vm199_vm2, %v555_v44, %v540_v38  ;;  %v558_v49 = vsel %vm176_vm0, %v4239_v18, %v545_v40  ;;  %v572_v50 = vsel %vm176_vm0, %v545_v40, %v547_v41  ;;  %v417_v51 = vrot.slane %v404_v46, 4 }
 0x20a   :  { %v4270_v52 = vsel %vm187_vm1, %v556_v48, %v542_v39  ;;  %v559_v53 = vsel %vm433_vm7, %v558_v49, %v547_v41  ;;  %v573_v54 = vsel %vm433_vm7, %v572_v50, %v549_v42  ;;  %v419_v55 = vrot.slane %v404_v46, 5 }
 0x20b   :  { %v4275_v56 = vsel %vm435_vm8, %v559_v53, %v549_v42  ;;  %v421_v57 = vrot.slane %v404_v46, 6  ;;  %v423_v58 = vrot.slane %v404_v46, 7  ;;  %v426_v59 = vrot.slane %v409_v47, 1 }
 0x20c   :  { %v428_v60 = vrot.slane %v409_v47, 2  ;;  %v430_v61 = vrot.slane %v409_v47, 3  ;;  %v437_v62 = vsel %vm300_vm3, %v436_v36, %v417_v51  ;;  %v447_v63 = vrot.slane %v409_v47, 4 }
 0x20d   :  { %v439_v0 = vsel %vm438_vm9, %v437_v62, %v419_v55  ;;  %v442_v1 = vsel %vm176_vm0, %v409_v47, %v426_v59  ;;  %v452_v2 = vsel %vm300_vm3, %v451_v37, %v419_v55  ;;  %v568_v4 = vsel %vm300_vm3, %v567_v29, %v538_v35 }
 0x20e   :  { %v440_v5 = vsel %vm199_vm2, %v439_v0, %v421_v57  ;;  %v443_v6 = vsel %vm433_vm7, %v442_v1, %v428_v60  ;;  %v456_v7 = vsel %vm176_vm0, %v426_v59, %v428_v60  ;;  %v453_v8 = vsel %vm438_vm9, %v452_v2, %v421_v57  ;;  %v3589_v0 = vld [vmem:[#allocation5 + $0x8] sm:$0xff]  }
 0x20f   :  { %v4287_v9 = vsel %vm435_vm8, %v443_v6, %v430_v61  ;;  %v457_v10 = vsel %vm433_vm7, %v456_v7, %v430_v61  ;;  %v454_v11 = vsel %vm199_vm2, %v453_v8, %v423_v58  ;;  %v569_v12 = vsel %vm438_vm9, %v568_v4, %v540_v38 }
 0x210   :  { %v4293_v13 = vsel %vm187_vm1, %v454_v11, %v404_v46  ;;  %v570_v14 = vsel %vm199_vm2, %v569_v12, %v542_v39  ;;  %v4297_v15 = vsel %vm187_vm1, %v440_v5, %v423_v58  ;;  %v466_v16 = vrot.slane %v4287_v9, 1 }
 0x211   :  { %v4302_v18 = vsel %vm187_vm1, %v570_v14, %v4236_v17  ;;  %v465_v19 = vrot.slane %v4297_v15, 1  ;;  %v581_v20 = vrot.slane %v4270_v52, 1  ;;  %v582_v21 = vrot.slane %v4275_v56, 1 }
 0x212   :  { %v3362_v22 = vpack.i.bf16 %v4302_v18, %v4293_v13  ;;  %v631_v23 = vrot.slane %v4270_v52, 7  ;;  %v4311_v24 = vsel %vm435_vm8, %v457_v10, %v447_v63  ;;  %v472_v25 = vrot.slane %v4293_v13, 1 }
 0x213   :  { %v467_v26 = vsel %vm187_vm1, %v465_v19, %v466_v16  ;;  %v583_v17 = vsel %vm187_vm1, %v581_v20, %v582_v21  ;;  %v473_v27 = vrot.slane %v4311_v24, 1  ;;  %v4318_v28 = vsel %vm435_vm8, %v573_v54, %v563_v45  ;;  %v3588_v45 = vld [vmem:[#allocation5] sm:$0xff]   ;;  %v3593_v20 = vld [vmem:[#allocation5 + $0x28] sm:$0xff]   ;;  %v3594_v21 = vld [vmem:[#allocation5 + $0x30] sm:$0xff]  }
 0x214   :  { %3363 = vrot.lane.b32.xlu0 %v3362_v22, %s3945_s3  ;;  %v3367_v29 = vpack.i.bf16 %v583_v17, %v467_v26  ;;  %v636_v30 = vsel %vm433_vm7, %v466_v16, %v631_v23  ;;  %v588_v31 = vrot.slane %v4302_v18, 1  ;;  %v589_v32 = vrot.slane %v4318_v28, 1  ;;  %v3592_v19 = vld [vmem:[#allocation5 + $0x20] sm:$0xff]   ;;  %v3595_v22 = vld [vmem:[#allocation5 + $0x38] sm:$0xff]  }
 0x215   :  { %v637_v33 = vpack.c.bf16 %v636_v30, %v467_v26  ;;  %v474_v34 = vsel %vm187_vm1, %v472_v25, %v473_v27  ;;  %v632_v35 = vrot.slane %v4275_v56, 7  ;;  %v502_v36 = vrot.slane %v4297_v15, 4 }
 0x216   :  { %3368 = vrot.lane.b32.xlu1 %v3367_v29, %s3946_s22  ;;  %v590_v37 = vsel %vm187_vm1, %v588_v31, %v589_v32  ;;  %v503_v38 = vrot.slane %v4287_v9, 4  ;;  %v618_v39 = vrot.slane %v4270_v52, 4  ;;  %v619_v40 = vrot.slane %v4275_v56, 4 }
 0x217   :  { %3218 = vmatprep.mubr.msk.bf16.mxu1 %vm506_vm10, %v637_v33  ;;  %v3372_v41 = vpack.i.bf16 %v590_v37, %v474_v34  ;;  %v633_v42 = vsel %vm176_vm0, %v631_v23, %v632_v35  ;;  %v478_v43 = vrot.slane %v4297_v15, 2  ;;  %v479_v44 = vrot.slane %v4287_v9, 2  ;;  %v3596_v23 = vld [vmem:[#allocation5 + $0x40] sm:$0xff]  }
 0x218   :  { %v638_v46 = vpack.c.bf16 %v633_v42, %v633_v42  ;;  %v504_v47 = vsel %vm300_vm3, %v502_v36, %v503_v38  ;;  %v620_v48 = vsel %vm300_vm3, %v618_v39, %v619_v40  ;;  %v594_v49 = vrot.slane %v4270_v52, 2 }
 0x219   :  { %3373 = vrot.lane.b32.xlu0 %v3372_v41, %s3943_s21  ;;  %v707_v50 = vpack.c.bf16 %v620_v48, %v504_v47  ;;  %v480_v51 = vsel %vm199_vm2, %v478_v43, %v479_v44  ;;  %v595_v53 = vrot.slane %v4275_v56, 2  ;;  %v484_v54 = vrot.slane %v4293_v13, 2 }
 0x21a   :  { %3219 = vmatmul.mubr.msk.bf16.vlgmr.msra.gmra.mrb[0].mxu1 %vm506_vm10, %v638_v46  ;;  %v485_v55 = vrot.slane %v4311_v24, 2  ;;  %v600_v57 = vrot.slane %v4302_v18, 2  ;;  %v601_v58 = vrot.slane %v4318_v28, 2  ;;  %v490_v59 = vrot.slane %v4297_v15, 3 }
 0x21b   :  { %2991 = vmatprep.mubr.msk.bf16.mxu1 %vm506_vm10, %v707_v50  ;;  %v596_v60 = vsel %vm199_vm2, %v594_v49, %v595_v53  ;;  %v491_v61 = vrot.slane %v4287_v9, 3  ;;  %v606_v62 = vrot.slane %v4270_v52, 3  ;;  %v607_v63 = vrot.slane %v4275_v56, 3  ;;  %770 = vmatpush1.bf16.msra.mxu1 %v3588_v45 }
 0x21c   :  { %v3377_v1 = vpack.i.bf16 %v596_v60, %v480_v51  ;;  %v486_v2 = vsel %vm199_vm2, %v484_v54, %v485_v55  ;;  %v602_v4 = vsel %vm199_vm2, %v600_v57, %v601_v58  ;;  %v496_v5 = vrot.slane %v4293_v13, 3  ;;  %771 = vmatprep.subr.bf16.mxu1 %v3944_v3  ;;  %v3590_v13 = vld [vmem:[#allocation5 + $0x10] sm:$0xff]  }
 0x21d   :  { %v3382_v6 = vpack.i.bf16 %v602_v4, %v486_v2  ;;  %v492_v7 = vsel %vm438_vm9, %v490_v59, %v491_v61  ;;  %v608_v8 = vsel %vm438_vm9, %v606_v62, %v607_v63  ;;  %v497_v9 = vrot.slane %v4311_v24, 3  ;;  %v3599_v2 = vld [vmem:[#allocation7 + $0x10] sm:$0xff]   ;;  %v3600_v4 = vld [vmem:[#allocation7 + $0x18] sm:$0xff]  }
 0x21e   :  { %3378 = vrot.lane.b32.xlu1 %v3377_v1, %s3930_s18  ;;  %v3387_v56 = vpack.i.bf16 %v608_v8, %v492_v7  ;;  %v612_v10 = vrot.slane %v4302_v18, 3  ;;  %v613_v11 = vrot.slane %v4318_v28, 3  ;;  %v3591_v18 = vld [vmem:[#allocation5 + $0x18] sm:$0xff]   ;;  %v3950_v63 = vmov 0.0   ;;  %v3598_v1 = vld [vmem:[#allocation7 + $0x8] sm:$0xff]  }
 0x21f   :  { %3383 = vrot.lane.b32.xlu0 %v3382_v6, %s3947_s27  ;;  %v498_v12 = vsel %vm438_vm9, %v496_v5, %v497_v9  ;;  %772 = vmatpush1.bf16.msra.mxu1 %v3589_v0  ;;  %v3597_v0 = vld [vmem:[#allocation7] sm:$0xff]   ;;  %v639_v6 = vlaneseq  ;;  %v4410_v9 = vld [vmem:[%s5060_s1] sm:$0xff] }
 0x220   :  { %v614_v14 = vsel %vm438_vm9, %v612_v10, %v613_v11  ;;  %773 = vmatprep.subr.bf16.mxu1 %v3944_v3  ;;  %1115 = vmatpush1.bf16.msra.mxu0 %v3597_v0  ;;  %v3601_v5 = vld [vmem:[#allocation7 + $0x20] sm:$0xff]   ;;  %v3602_v10 = vld [vmem:[#allocation7 + $0x28] sm:$0xff]  }
 0x221   :  { %v3392_v16 = vpack.i.bf16 %v614_v14, %v498_v12  ;;  %1116 = vmatprep.subr.bf16.mxu0 %v3944_v3  ;;  %v4404_v7 = vshrl.u32 %v639_v6, 7 }
 0x222   :  { %3388 = vrot.lane.b32.xlu1 %v3387_v56, %s3948_s5 }
 0x223   :  { %3393 = vrot.lane.b32.xlu0 %v3392_v16, %s3949_s24  ;;  %774 = vmatpush1.bf16.msra.mxu1 %v3590_v13  ;;  %v710_v8 = vsub.s32 0, %v4404_v7  ;;  %v3603_v16 = vld [vmem:[#allocation7 + $0x30] sm:$0xff]  }
 0x224   :  { %775 = vmatprep.subr.bf16.mxu1 %v3944_v3  ;;  %1117 = vmatpush1.bf16.msra.mxu0 %v3598_v1 }
 0x225   :  { %1118 = vmatprep.subr.bf16.mxu0 %v3944_v3  ;;  %v711_v56 = vrot.slane %v4410_v9, %v710_v8 }
 0x227   :  { %776 = vmatpush1.bf16.msra.mxu1 %v3591_v18 }
 0x228   :  { %777 = vmatprep.subr.bf16.mxu1 %v3944_v3  ;;  %1119 = vmatpush1.bf16.msra.mxu0 %v3599_v2 }
 0x229   :  { %1120 = vmatprep.subr.bf16.mxu0 %v3944_v3 }
 0x22b   :  { %778 = vmatpush1.bf16.msra.mxu1 %v3592_v19 }
 0x22c   :  { %779 = vmatprep.subr.bf16.mxu1 %v3944_v3  ;;  %1121 = vmatpush1.bf16.msra.mxu0 %v3600_v4 }
 0x22d   :  { %1122 = vmatprep.subr.bf16.mxu0 %v3944_v3 }
 0x22f   :  { %780 = vmatpush1.bf16.msra.mxu1 %v3593_v20 }
 0x230   :  { %781 = vmatprep.subr.bf16.mxu1 %v3944_v3  ;;  %1123 = vmatpush1.bf16.msra.mxu0 %v3601_v5 }
 0x231   :  { %1124 = vmatprep.subr.bf16.mxu0 %v3944_v3 }
 0x233   :  { %782 = vmatpush1.bf16.msra.mxu1 %v3594_v21 }
 0x234   :  { %783 = vmatprep.subr.bf16.mxu1 %v3944_v3  ;;  %1125 = vmatpush1.bf16.msra.mxu0 %v3602_v10 }
 0x235   :  { %1126 = vmatprep.subr.bf16.mxu0 %v3944_v3 }
 0x237   :  { %784 = vmatpush1.bf16.msra.mxu1 %v3595_v22 }
 0x238   :  { %785 = vmatprep.subr.bf16.mxu1 %v3944_v3  ;;  %1127 = vmatpush1.bf16.msra.mxu0 %v3603_v16 }
 0x239   :  { %1128 = vmatprep.subr.bf16.mxu0 %v3944_v3 }
 0x23b   :  { %786 = vmatpush1.bf16.msra.mxu1 %v3596_v23  ;;  %v3604_v23 = vld [vmem:[#allocation7 + $0x38] sm:$0xff]  }
 0x23c   :  { %3222 = vmatprep.subr.bf16.mxu1 %v3950_v63  ;;  %1129 = vmatpush1.bf16.msra.mxu0 %v3604_v23  ;;  %v3609_v23 = vld [vmem:[#allocation7 + $0x60] sm:$0xff]  }
 0x23d   :  { %1130 = vmatprep.subr.bf16.mxu0 %v3944_v3 }
 0x286   :  { %v3364_v24 = vpop.permute.xlu0 %3363 }
 0x287   :  { %v3366_v26 = vunpack.i.h.bf16 %v3364_v24  ;;  %v3365_v17 = vunpack.i.l.bf16 %v3364_v24 }
 0x288   :  { %v3369_v25 = vpop.permute.xlu1 %3368 }
 0x289   :  { %v3371_v27 = vunpack.i.h.bf16 %v3369_v25  ;;  %v3370_v28 = vunpack.i.l.bf16 %v3369_v25  ;;  %v622_v30 = vsel %vm506_vm10, %v4270_v52, %v3366_v26  ;;  %v507_v31 = vsel %vm506_vm10, %v4297_v15, %v3365_v17 }
 0x28b   :  { %v3374_v29 = vpop.permute.xlu0 %3373  ;;  %v623_v34 = vsel %vm5075_vm11, %v622_v30, %v3371_v27  ;;  %v509_v35 = vsel %vm5075_vm11, %v507_v31, %v3370_v28  ;;  %vm1104_vm11 = vcmask 719872  }
 0x28c   :  { %v3376_v32 = vunpack.i.h.bf16 %v3374_v29  ;;  %v3375_v33 = vunpack.i.l.bf16 %v3374_v29 }
 0x28e   :  { %v510_v40 = vsel %vm5077_vm5, %v509_v35, %v3375_v33  ;;  %v624_v41 = vsel %vm5077_vm5, %v623_v34, %v3376_v32 }
 0x290   :  { %v3379_v36 = vpop.permute.xlu1 %3378 }
 0x291   :  { %v3381_v37 = vunpack.i.h.bf16 %v3379_v36  ;;  %v3380_v38 = vunpack.i.l.bf16 %v3379_v36  ;;  %v3384_v39 = vpop.permute.xlu0 %3383  ;;  %v3605_v36 = vld [vmem:[#allocation7 + $0x40] sm:$0xff]  }
 0x292   :  { %v3386_v42 = vunpack.i.h.bf16 %v3384_v39  ;;  %v3385_v52 = vunpack.i.l.bf16 %v3384_v39  ;;  %1131 = vmatpush1.bf16.msra.mxu0 %v3605_v36 }
 0x293   :  { %v512_v43 = vsel %vm5076_vm12, %v510_v40, %v3380_v38  ;;  %v625_v15 = vsel %vm5076_vm12, %v624_v41, %v3381_v37  ;;  %1132 = vmatprep.subr.bf16.mxu0 %v3944_v3 }
 0x294   :  { %v3389_v44 = vpop.permute.xlu1 %3388  ;;  %v514_v48 = vsel %vm5073_vm13, %v512_v43, %v3385_v52  ;;  %v626_v49 = vsel %vm5073_vm13, %v625_v15, %v3386_v42  ;;  %vm904_vm13 = vcmask 326656  }
 0x295   :  { %v3391_v45 = vunpack.i.h.bf16 %v3389_v44  ;;  %v3390_v46 = vunpack.i.l.bf16 %v3389_v44  ;;  %v3394_v47 = vpop.permute.xlu0 %3393 }
 0x296   :  { %v3396_v50 = vunpack.i.h.bf16 %v3394_v47  ;;  %v3395_v51 = vunpack.i.l.bf16 %v3394_v47 }
 0x297   :  { %v516_v53 = vsel %vm515_vm14, %v514_v48, %v3390_v46  ;;  %v627_v54 = vsel %vm515_vm14, %v626_v49, %v3391_v45  ;;  %v3606_v46 = vld [vmem:[#allocation7 + $0x48] sm:$0xff]  }
 0x298   :  { %v518_v55 = vsel %vm5074_vm15, %v516_v53, %v3395_v51  ;;  %v628_v57 = vsel %vm5074_vm15, %v627_v54, %v3396_v50  ;;  %1133 = vmatpush1.bf16.msra.mxu0 %v3606_v46  ;;  %vm899_vm15 = vcmask 982016  }
 0x299   :  { %v706_v58 = vpack.c.bf16 %v628_v57, %v518_v55  ;;  %1134 = vmatprep.subr.bf16.mxu0 %v3944_v3 }
 0x29b   :  { %802 = vmatmul.mubr.bf16.vlgmr.msra.gmra.mrb[4].mxu1 %v706_v58  ;;  %v3607_v58 = vld [vmem:[#allocation7 + $0x50] sm:$0xff]  }
 0x29c   :  { %1135 = vmatpush1.bf16.msra.mxu0 %v3607_v58 }
 0x29d   :  { %1136 = vmatprep.subr.bf16.mxu0 %v3944_v3 }
 0x2ed   :  { %v4391_v59 = vpop.f32.mrb[0].mxu1 }
 0x2ee   :  { %v4393_v60 = vpop.f32.mrb[1].mxu1 }
 0x2ef   :  { %v3221_v61 = vpop.f32.mrb[2].mxu1 }
 0x2f0   :  { %v4395_v62 = vpop.f32.mrb[3].mxu1 }
 0x36e   :  { %v803_v11 = vpop.f32.mrb[4].mxu1 }
 0x36f   :  { %v804_v12 = vadd.f32 %v803_v11, %v711_v56  ;;  %v805_v13 = vpop.f32.mrb[5].mxu1 }
 0x370   :  { %v806_v14 = vpop.f32.mrb[6].mxu1 }
 0x371   :  { %v810_v18 = vmax.f32 %v804_v12, 0.0  ;;  %v807_v19 = vadd.f32 %v806_v14, %v711_v56  ;;  %v808_v20 = vpop.f32.mrb[7].mxu1  ;;  %v3608_v56 = vld [vmem:[#allocation7 + $0x58] sm:$0xff]   ;;  %v877_v12 = vrot.slane %v3950_v63, 7 }
 0x372   :  { %1137 = vmatpush1.bf16.msra.mxu0 %v3608_v56 }
 0x373   :  { %v813_v21 = vrot.slane %v810_v18, 3  ;;  %v811_v22 = vmax.f32 %v807_v19, 0.0  ;;  %1138 = vmatprep.subr.bf16.mxu0 %v3944_v3 }
 0x375   :  { %v4416_v24 = vsel %vm438_vm9, 0.0, %v813_v21  ;;  %v4419_v25 = vsel %vm438_vm9, %v813_v21, 0.0  ;;  %v910_v26 = vrot.slane %v811_v22, 3 }
 0x376   :  { %v874_v17 = vrot.slane %v4416_v24, 7  ;;  %v875_v27 = vrot.slane %v4419_v25, 7  ;;  %v828_v28 = vrot.slane %v4416_v24, 2  ;;  %v829_v29 = vrot.slane %v4419_v25, 2  ;;  %1139 = vmatpush1.bf16.msra.mxu0 %v3609_v23 }
 0x377   :  { %v4426_v30 = vsel %vm438_vm9, 0.0, %v910_v26  ;;  %v4429_v31 = vsel %vm438_vm9, %v910_v26, 0.0  ;;  %v837_v37 = vrot.slane %v4416_v24, 3  ;;  %v838_v38 = vrot.slane %v4419_v25, 3  ;;  %1140 = vmatprep.subr.bf16.mxu0 %v3944_v3 }
 0x378   :  { %v876_v32 = vsel %vm176_vm0, %v874_v17, %v875_v27  ;;  %v3397_v33 = vpack.i.bf16 %v3950_v63, %v4429_v31  ;;  %v830_v34 = vsel %vm199_vm2, %v828_v28, %v829_v29  ;;  %v926_v35 = vrot.slane %v4429_v31, 2 }
 0x379   :  { %879 = vrot.lane.b32.xlu0 %v876_v32, %s3951_s28  ;;  %v864_v39 = vrot.slane %v4416_v24, 6  ;;  %v865_v40 = vrot.slane %v4419_v25, 6  ;;  %v819_v42 = vrot.slane %v4416_v24, 1  ;;  %v820_v52 = vrot.slane %v4419_v25, 1 }
 0x37a   :  { %3398 = vrot.lane.b32.xlu1 %v3397_v33, %s3930_s18  ;;  %v3407_v41 = vpack.i.bf16 %v926_v35, %v830_v34  ;;  %v962_v43 = vrot.slane %v4429_v31, 6  ;;  %v917_v44 = vrot.slane %v4429_v31, 1  ;;  %v925_v45 = vrot.slane %v4426_v30, 2  ;;  %v3610_v34 = vld [vmem:[#allocation7 + $0x68] ss:$0 sps:$4 sm:$0xff]  }
 0x37b   :  { %v866_v15 = vsel %vm433_vm7, %v864_v39, %v865_v40  ;;  %v839_v47 = vsel %vm438_vm9, %v837_v37, %v838_v38  ;;  %v821_v48 = vsel %vm187_vm1, %v819_v42, %v820_v52  ;;  %v855_v49 = vrot.slane %v4416_v24, 5 }
 0x37c   :  { %v856_v50 = vrot.slane %v4419_v25, 5  ;;  %v3417_v51 = vpack.i.bf16 %v962_v43, %v866_v15  ;;  %v3402_v53 = vpack.i.bf16 %v917_v44, %v821_v48  ;;  %v927_v54 = vsel %vm199_vm2, %v925_v45, %v926_v35 }
 0x37d   :  { %3408 = vrot.lane.b32.xlu0 %v3407_v41, %s3943_s21  ;;  %v953_v55 = vrot.slane %v4429_v31, 5  ;;  %v961_v57 = vrot.slane %v4426_v30, 6  ;;  %v916_v0 = vrot.slane %v4426_v30, 1  ;;  %v3427_v1 = vpack.i.bf16 %v829_v29, %v927_v54 }
 0x37e   :  { %840 = vrot.lane.b32.xlu1 %v839_v47, %s3952_s29  ;;  %v857_v61 = vsel %vm435_vm8, %v855_v49, %v856_v50  ;;  %v970_v5 = vrot.slane %v4426_v30, 7  ;;  %v971_v8 = vrot.slane %v4429_v31, 7  ;;  %v952_v11 = vrot.slane %v4426_v30, 5 }
 0x37f   :  { %v3412_v2 = vpack.i.bf16 %v953_v55, %v857_v61  ;;  %v963_v4 = vsel %vm433_vm7, %v961_v57, %v962_v43  ;;  %v918_v10 = vsel %vm187_vm1, %v916_v0, %v917_v44  ;;  %v943_v18 = vrot.slane %v4426_v30, 4 }
 0x380   :  { %v3437_v13 = vpack.i.bf16 %v865_v40, %v963_v4  ;;  %v3422_v14 = vpack.i.bf16 %v820_v52, %v918_v10  ;;  %v972_v16 = vsel %vm176_vm0, %v970_v5, %v971_v8  ;;  %v944_v19 = vrot.slane %v4429_v31, 4 }
 0x381   :  { %3418 = vrot.lane.b32.xlu0 %v3417_v51, %s3945_s3  ;;  %v954_v20 = vsel %vm435_vm8, %v952_v11, %v953_v55  ;;  %v934_v21 = vrot.slane %v4426_v30, 3  ;;  %v935_v22 = vrot.slane %v4429_v31, 3  ;;  %v878_v26 = vsel %vm176_vm0, %v875_v27, %v877_v12 }
 0x382   :  { %3403 = vrot.lane.b32.xlu1 %v3402_v53, %s3942_s10  ;;  %v3447_v17 = vpack.i.bf16 %v878_v26, %v972_v16  ;;  %v3432_v28 = vpack.i.bf16 %v856_v50, %v954_v20  ;;  %v945_v29 = vsel %vm300_vm3, %v943_v18, %v944_v19  ;;  %v847_v32 = vrot.slane %v4419_v25, 4 }
 0x383   :  { %v936_v33 = vsel %vm438_vm9, %v934_v21, %v935_v22  ;;  %v1112_v36 = vsel %vm300_vm3, %v3610_v34, 0  ;;  %v846_v37 = vrot.slane %v4416_v24, 4  ;;  %v973_v40 = vsel %vm176_vm0, %v971_v8, %v877_v12 }
 0x384   :  { %v3452_v35 = vpack.i.bf16 %v847_v32, %v945_v29  ;;  %v3442_v27 = vpack.i.bf16 %v838_v38, %v936_v33  ;;  %1141 = vmatpush1.bf16.msra.mxu0 %v1112_v36 }
 0x385   :  { %3428 = vrot.lane.b32.xlu0 %v3427_v1, %s3943_s21  ;;  %v848_v39 = vsel %vm300_vm3, %v846_v37, %v847_v32 }
 0x386   :  { %3413 = vrot.lane.b32.xlu1 %v3412_v2, %s3953_s6 }
 0x389   :  { %3438 = vrot.lane.b32.xlu0 %v3437_v13, %s3945_s3 }
 0x38a   :  { %3423 = vrot.lane.b32.xlu1 %v3422_v14, %s3942_s10 }
 0x38d   :  { %3448 = vrot.lane.b32.xlu0 %v3447_v17, %s3951_s28 }
 0x38e   :  { %3433 = vrot.lane.b32.xlu1 %v3432_v28, %s3953_s6 }
 0x391   :  { %3453 = vrot.lane.b32.xlu0 %v3452_v35, %s3948_s5 }
 0x392   :  { %3443 = vrot.lane.b32.xlu1 %v3442_v27, %s3952_s29 }
 0x395   :  { %885 = vrot.lane.b32.xlu0 %v4419_v25, %s3930_s18 }
 0x396   :  { %849 = vrot.lane.b32.xlu1 %v848_v39, %s3948_s5 }
 0x399   :  { %976 = vrot.lane.b32.xlu0 %v973_v40, %s3951_s28 }
 0x39a   :  { %939 = vrot.lane.b32.xlu1 %v935_v22, %s3952_s29 }
 0x39e   :  { %948 = vrot.lane.b32.xlu1 %v944_v19, %s3948_s5 }
 0x3eb   :  { %v880_v38 = vpop.permute.xlu0 %879 }
 0x3ec   :  { %v4509_v41 = vpop.permute.xlu1 %3398 }
 0x3ed   :  { %v3401_v53 = vunpack.i.h.bf16 %v4509_v41  ;;  %v3400_v54 = vunpack.i.l.bf16 %v4509_v41 }
 0x3ef   :  { %v4511_v42 = vpop.permute.xlu0 %3408 }
 0x3f0   :  { %v841_v52 = vpop.permute.xlu1 %840  ;;  %v3410_v50 = vunpack.i.l.bf16 %v4511_v42 }
 0x3f3   :  { %v4513_v43 = vpop.permute.xlu0 %3418 }
 0x3f4   :  { %v4515_v15 = vpop.permute.xlu1 %3403  ;;  %v3420_v55 = vunpack.i.l.bf16 %v4513_v43 }
 0x3f5   :  { %v3405_v46 = vunpack.i.l.bf16 %v4515_v15  ;;  %v3406_v61 = vunpack.i.h.bf16 %v4515_v15 }
 0x3f7   :  { %v3429_v44 = vpop.permute.xlu0 %3428  ;;  %v891_v49 = vsel %vm211_vm4, %v4416_v24, %v3405_v46 }
 0x3f8   :  { %v4517_v45 = vpop.permute.xlu1 %3413  ;;  %v3431_v0 = vunpack.i.h.bf16 %v3429_v44  ;;  %v893_v24 = vsel %vm5077_vm5, %v891_v49, %v3410_v50  ;;  %v3430_v10 = vunpack.i.l.bf16 %v3429_v44 }
 0x3f9   :  { %v3415_v1 = vunpack.i.l.bf16 %v4517_v45  ;;  %v3416_v14 = vunpack.i.h.bf16 %v4517_v45 }
 0x3fb   :  { %v3439_v47 = vpop.permute.xlu0 %3438  ;;  %v902_v23 = vsel %vm506_vm10, %v3415_v1, %v3420_v55 }
 0x3fc   :  { %v3424_v48 = vpop.permute.xlu1 %3423  ;;  %v3441_v4 = vunpack.i.h.bf16 %v3439_v47  ;;  %v3440_v5 = vunpack.i.l.bf16 %v3439_v47  ;;  %v905_v39 = vsel %vm904_vm13, %v902_v23, %v880_v38  ;;  %v3421_v47 = vunpack.i.h.bf16 %v4513_v43 }
 0x3fd   :  { %v3426_v51 = vunpack.i.h.bf16 %v3424_v48  ;;  %v3425_v57 = vunpack.i.l.bf16 %v3424_v48 }
 0x3fe   :  { %v994_v55 = vsel %vm506_vm10, %v3416_v14, %v3421_v47 }
 0x3ff   :  { %v3449_v58 = vpop.permute.xlu0 %3448  ;;  %v892_v11 = vsel %vm211_vm4, %v4419_v25, %v3426_v51  ;;  %v983_v16 = vsel %vm211_vm4, %v4426_v30, %v3425_v57  ;;  %v895_v25 = vsel %vm293_vm6, %v893_v24, %v841_v52  ;;  %v3411_v24 = vunpack.i.h.bf16 %v4511_v42 }
 0x400   :  { %v3434_v2 = vpop.permute.xlu1 %3433  ;;  %v3451_v12 = vunpack.i.h.bf16 %v3449_v58  ;;  %v3450_v13 = vunpack.i.l.bf16 %v3449_v58  ;;  %v894_v29 = vsel %vm5077_vm5, %v892_v11, %v3431_v0  ;;  %v985_v34 = vsel %vm5077_vm5, %v983_v16, %v3430_v10  ;;  %v3612_v16 = vld [vmem:[#allocation13 + $0x8] ss:$0 sps:$4 sm:$0xff]  }
 0x401   :  { %v3436_v8 = vunpack.i.h.bf16 %v3434_v2  ;;  %v3435_v56 = vunpack.i.l.bf16 %v3434_v2  ;;  %v984_v2 = vsel %vm211_vm4, %v4429_v31, %v3406_v61  ;;  %v3611_v61 = vld [vmem:[#allocation13] sm:$0xff]  }
 0x402   :  { %3223 = vmatpush3.bf16.msra.mxu1 %v3611_v61 }
 0x403   :  { %v903_v18 = vsel %vm506_vm10, %v3436_v8, %v3441_v4  ;;  %v993_v19 = vsel %vm506_vm10, %v3435_v56, %v3440_v5  ;;  %v3454_v20 = vpop.permute.xlu0 %3453  ;;  %3224 = vmatprep.subr.bf16.mxu1 %v3950_v63 }
 0x404   :  { %v995_v21 = vsel %vm904_vm13, %v993_v19, %v3450_v13  ;;  %v3444_v22 = vpop.permute.xlu1 %3443  ;;  %v906_v26 = vsel %vm904_vm13, %v903_v18, %v3451_v12  ;;  %v3456_v32 = vunpack.i.h.bf16 %v3454_v20  ;;  %v3455_v33 = vunpack.i.l.bf16 %v3454_v20 }
 0x405   :  { %v3446_v17 = vunpack.i.h.bf16 %v3444_v22  ;;  %v3445_v28 = vunpack.i.l.bf16 %v3444_v22  ;;  %v997_v30 = vsel %vm5076_vm12, %v995_v21, %v3400_v54  ;;  %v908_v40 = vsel %vm5076_vm12, %v906_v26, %v3401_v53 }
 0x406   :  { %v1004_v35 = vrot.slane %v997_v30, 6  ;;  %v1426_v18 = vsel %vm300_vm3, %v3612_v16, 0  ;;  %v1021_v20 = vsub.s32 1, %v4404_v7 }
 0x407   :  { %v896_v27 = vsel %vm293_vm6, %v894_v29, %v3446_v17  ;;  %v987_v36 = vsel %vm293_vm6, %v985_v34, %v3445_v28  ;;  %v886_v37 = vpop.permute.xlu0 %885  ;;  %3225 = vmatpush3.bf16.msra.mxu1 %v1426_v18 }
 0x408   :  { %v898_v52 = vsel %vm515_vm14, %v896_v27, %v3456_v32  ;;  %v989_v15 = vsel %vm515_vm14, %v987_v36, %v3455_v33  ;;  %v907_v44 = vsel %vm5076_vm12, %v905_v39, %v886_v37  ;;  %v1014_v45 = vsel %vm433_vm7, %v908_v40, %v1004_v35  ;;  %v850_v46 = vpop.permute.xlu1 %849  ;;  %1572 = vmatprep.subr.bf16.mxu1 %v3944_v3 }
 0x409   :  { %v1016_v48 = vpack.c.bf16 %v1014_v45, %v907_v44  ;;  %v897_v49 = vsel %vm515_vm14, %v895_v25, %v850_v46  ;;  %v991_v38 = vsel %vm899_vm15, %v989_v15, %v3435_v56  ;;  %v901_v51 = vsel %vm899_vm15, %v898_v52, %v3436_v8 }
 0x40a   :  { %v1003_v50 = vrot.slane %v991_v38, 6  ;;  %v900_v57 = vsel %vm899_vm15, %v897_v49, %v3415_v1  ;;  %v986_v56 = vsel %vm5077_vm5, %v984_v2, %v3411_v24  ;;  %v1022_v22 = vrot.slane %v4410_v9, %v1021_v20 }
 0x40b   :  { %v977_v54 = vpop.permute.xlu0 %976  ;;  %3006 = vmatprep.mubr.msk.bf16.mxu0 %vm1104_vm11, %v1016_v48 }
 0x40c   :  { %v1013_v58 = vsel %vm433_vm7, %v901_v51, %v1003_v50  ;;  %v996_v0 = vsel %vm904_vm13, %v994_v55, %v977_v54  ;;  %v940_v43 = vpop.permute.xlu1 %939 }
 0x40d   :  { %v1015_v4 = vpack.c.bf16 %v1013_v58, %v900_v57  ;;  %v998_v5 = vsel %vm5076_vm12, %v996_v0, %v3401_v53  ;;  %v988_v1 = vsel %vm293_vm6, %v986_v56, %v940_v43  ;;  %vm3954_vm12 = vmmov 0  }
 0x40e   :  { %v1007_v8 = vrot.slane %v998_v5, 6  ;;  %3226 = vmatprep.mubr.msk.bf16.mxu1 %vm3954_vm12, %v3950_v63 }
 0x40f   :  { %1147 = vmatmul.mubr.bf16.vlgmr.msra.gmra.mrb[4].mxu0 %v1015_v4 }
 0x410   :  { %v949_v10 = vpop.permute.xlu1 %948  ;;  %v1008_v11 = vsel %vm433_vm7, %v1004_v35, %v1007_v8 }
 0x411   :  { %v990_v12 = vsel %vm515_vm14, %v988_v1, %v949_v10  ;;  %v1018_v13 = vpack.c.bf16 %v1008_v11, %v1008_v11 }
 0x412   :  { %v992_v31 = vsel %vm899_vm15, %v990_v12, %v3416_v14  ;;  %v641_v14 = vsub.s32 2, %v4404_v7 }
 0x413   :  { %v1005_v42 = vrot.slane %v992_v31, 6  ;;  %3007 = vmatprep.mubr.msk.bf16.mxu0 %vm1104_vm11, %v1018_v13 }
 0x414   :  { %v642_v19 = vrot.slane %v4410_v9, %v641_v14 }
 0x415   :  { %v1006_v41 = vsel %vm433_vm7, %v1003_v50, %v1005_v42 }
 0x416   :  { %v1017_v53 = vpack.c.bf16 %v1006_v41, %v1006_v41  ;;  %v690_v21 = vadd.f32 %v4393_v60, %v642_v19  ;;  %v693_v23 = vadd.f32 %v4395_v62, %v642_v19  ;;  %v698_v62 = vadd.f32 %v4391_v59, %v642_v19 }
 0x418   :  { %1155 = vmatmul.mubr.bf16.gmra.mrb[8].mxu0 %v1017_v53  ;;  %v703_v25 = vmax.f32 %v690_v21, 0.0  ;;  %v704_v30 = vmax.f32 %v693_v23, 0.0  ;;  %v705_v2 = vmax.f32 %v698_v62, 0.0 }
 0x4e2   :  { %v1148_v26 = vpop.f32.mrb[4].mxu0 }
 0x4e3   :  { %v1149_v17 = vadd.f32 %v1148_v26, %v1022_v22  ;;  %v1150_v28 = vpop.f32.mrb[5].mxu0 }
 0x4e4   :  { %v1151_v29 = vpop.f32.mrb[6].mxu0 }
 0x4e5   :  { %v1162_v32 = vadd.f32 %v1149_v17, %v703_v25  ;;  %v1152_v33 = vadd.f32 %v1151_v29, %v1022_v22  ;;  %v1153_v34 = vpop.f32.mrb[7].mxu0 }
 0x4e7   :  { %v1233_v35 = vrot.slane %v1162_v32, 4  ;;  %v1163_v27 = vadd.f32 %v1152_v33, %v704_v30 }
 0x4e9   :  { %v1238_v36 = vsel %vm300_vm3, 0.0, %v1233_v35  ;;  %v1234_v37 = vrot.slane %v1163_v27, 4  ;;  %v1318_v39 = vrot.slane %v1163_v27, 6 }
 0x4ea   :  { %v1241_v60 = vrot.slane %v1238_v36, 1  ;;  %v1243_v40 = vrot.slane %v1238_v36, 2  ;;  %v1245_v52 = vrot.slane %v1238_v36, 3  ;;  %v1263_v15 = vrot.slane %v1238_v36, 4 }
 0x4eb   :  { %v1235_v44 = vsel %vm300_vm3, %v1233_v35, %v1234_v37  ;;  %v1156_v45 = vpop.f32.mrb[8].mxu0  ;;  %v1323_v49 = vsel %vm300_vm3, 0.0, %v1318_v39 }
 0x4ec   :  { %v1256_v46 = vsel %vm176_vm0, %v1238_v36, %v1241_v60  ;;  %v1265_v47 = vsel %vm176_vm0, %v1241_v60, %v1243_v40  ;;  %v1239_v48 = vsel %vm199_vm2, %v1235_v44, 0.0  ;;  %v1158_v38 = vpop.f32.mrb[9].mxu0  ;;  %v1326_v4 = vrot.slane %v1323_v49, 1 }
 0x4ed   :  { %v1257_v50 = vsel %vm433_vm7, %v1256_v46, %v1243_v40  ;;  %v1266_v51 = vsel %vm433_vm7, %v1265_v47, %v1245_v52  ;;  %v1248_v54 = vrot.slane %v1239_v48, 4  ;;  %v1250_v55 = vrot.slane %v1239_v48, 5  ;;  %v1159_v59 = vpop.f32.mrb[10].mxu0 }
 0x4ee   :  { %v1258_v57 = vsel %vm435_vm8, %v1257_v50, %v1245_v52  ;;  %v1267_v58 = vsel %vm435_vm8, %v1266_v51, %v1263_v15  ;;  %v1252_v0 = vrot.slane %v1239_v48, 6  ;;  %v1160_v43 = vpop.f32.mrb[11].mxu0  ;;  %v1328_v5 = vrot.slane %v1323_v49, 2  ;;  %v3613_v50 = vld [vmem:[#allocation10] sm:$0xff]  }
 0x4ef   :  { %v1259_v24 = vsel %vm300_vm3, %v1258_v57, %v1248_v54  ;;  %v1254_v8 = vrot.slane %v1239_v48, 7  ;;  %v1157_v1 = vadd.f32 %v1156_v45, %v1022_v22  ;;  %v1268_v10 = vsel %vm300_vm3, %v1267_v58, %v1250_v55 }
 0x4f0   :  { %v1260_v56 = vsel %vm438_vm9, %v1259_v24, %v1250_v55  ;;  %v1269_v11 = vsel %vm438_vm9, %v1268_v10, %v1252_v0  ;;  %v1330_v13 = vrot.slane %v1323_v49, 3  ;;  %v1341_v41 = vsel %vm176_vm0, %v1323_v49, %v1326_v4 }
 0x4f1   :  { %v1261_v12 = vsel %vm199_vm2, %v1260_v56, %v1252_v0  ;;  %v1164_v31 = vadd.f32 %v1157_v1, %v705_v2  ;;  %v1270_v42 = vsel %vm199_vm2, %v1269_v11, %v1254_v8  ;;  %v1350_v53 = vsel %vm176_vm0, %v1326_v4, %v1328_v5  ;;  %v3614_v4 = vld [vmem:[#allocation10 + $0x8] sm:$0xff]   ;;  %v3615_v56 = vld [vmem:[#allocation10 + $0x10] sm:$0xff]  }
 0x4f2   :  { %v1271_v61 = vsel %vm187_vm1, %v1270_v42, %v1239_v48  ;;  %v1262_v16 = vsel %vm187_vm1, %v1261_v12, %v1254_v8  ;;  %v1342_v14 = vsel %vm433_vm7, %v1341_v41, %v1328_v5  ;;  %v1351_v19 = vsel %vm433_vm7, %v1350_v53, %v1330_v13  ;;  %v3616_v12 = vld [vmem:[#allocation10 + $0x18] sm:$0xff]   ;;  %v3617_v41 = vld [vmem:[#allocation10 + $0x20] sm:$0xff]  }
 0x4f3   :  { %v1319_v18 = vrot.slane %v1164_v31, 6  ;;  %v1348_v21 = vrot.slane %v1323_v49, 4  ;;  %v1343_v17 = vsel %vm435_vm8, %v1342_v14, %v1330_v13  ;;  %v1273_v34 = vmax.f32 %v1271_v61, 0.0  ;;  %v3618_v61 = vld [vmem:[#allocation10 + $0x28] sm:$0xff]   ;;  %v3621_v14 = vld [vmem:[#allocation10 + $0x40] sm:$0xff]  }
 0x4f4   :  { %v4617_v27 = vmax.f32 %v1262_v16, 0.0  ;;  %v1402_v62 = vrot.slane %v1262_v16, 1  ;;  %v1304_v13 = vrot.slane %v3950_v63, 4  ;;  %v3619_v16 = vld [vmem:[#allocation10 + $0x30] sm:$0xff]  }
 0x4f5   :  { %v1320_v20 = vsel %vm433_vm7, %v1318_v39, %v1319_v18  ;;  %v1352_v28 = vsel %vm435_vm8, %v1351_v19, %v1348_v21  ;;  %v1291_v45 = vrot.slane %v1273_v34, 2  ;;  %v1283_v46 = vrot.slane %v1273_v34, 1  ;;  %v3620_v18 = vld [vmem:[#allocation10 + $0x38] sm:$0xff]   ;;  %v3622_v19 = vld [vmem:[#allocation10 + $0x48] sm:$0xff]  }
 0x4f6   :  { %v1324_v22 = vsel %vm199_vm2, %v1320_v20, 0.0  ;;  %v1279_v44 = vrot.slane %v4617_v27, 1  ;;  %v1299_v55 = vrot.slane %v1273_v34, 3  ;;  %v1295_v24 = vrot.slane %v4617_v27, 3  ;;  %v3623_v20 = vld [vmem:[#allocation10 + $0x50] sm:$0xff]   ;;  %v3624_v21 = vld [vmem:[#allocation10 + $0x58] sm:$0xff]  }
 0x4f7   :  { %v1333_v23 = vrot.slane %v1324_v22, 4  ;;  %v1335_v26 = vrot.slane %v1324_v22, 5  ;;  %v1337_v25 = vrot.slane %v1324_v22, 6  ;;  %v1339_v29 = vrot.slane %v1324_v22, 7 }
 0x4f8   :  { %v1287_v1 = vrot.slane %v4617_v27, 2  ;;  %v1303_v31 = vrot.slane %v4617_v27, 4 }
 0x4f9   :  { %v1344_v30 = vsel %vm300_vm3, %v1343_v17, %v1333_v23  ;;  %v1353_v32 = vsel %vm300_vm3, %v1352_v28, %v1335_v26  ;;  %v3626_v23 = vld [vmem:[#allocation10 + $0x68] ss:$0 sps:$4 sm:$0xff]  }
 0x4fa   :  { %v1345_v33 = vsel %vm438_vm9, %v1344_v30, %v1335_v26  ;;  %v1354_v35 = vsel %vm438_vm9, %v1353_v32, %v1337_v25  ;;  %v1305_v53 = vsel %vm300_vm3, %v1303_v31, %v1304_v13  ;;  %v1570_v26 = vsel %vm300_vm3, %v3626_v23, 0  ;;  %v3635_v23 = vld [vmem:[#allocation11 + $0x58] sm:$0xff]  }
 0x4fb   :  { %v1355_v36 = vsel %vm199_vm2, %v1354_v35, %v1339_v29  ;;  %v1346_v37 = vsel %vm199_vm2, %v1345_v33, %v1337_v25 }
 0x4fc   :  { %v1356_v39 = vsel %vm187_vm1, %v1355_v36, %v1324_v22  ;;  %v1347_v60 = vsel %vm187_vm1, %v1346_v37, %v1339_v29  ;;  %v3625_v22 = vld [vmem:[#allocation10 + $0x60] sm:$0xff]  }
 0x4fd   :  { %v1358_v40 = vmax.f32 %v1356_v39, 0.0  ;;  %v4623_v52 = vmax.f32 %v1347_v60, 0.0  ;;  %v1405_v15 = vrot.slane %v1347_v60, 2 }
 0x4ff   :  { %v3457_v47 = vpack.i.bf16 %v1273_v34, %v1358_v40  ;;  %v1407_v48 = vsel %vm187_vm1, %v1402_v62, %v1405_v15  ;;  %v1364_v49 = vrot.slane %v4623_v52, 1  ;;  %v1376_v38 = vrot.slane %v1358_v40, 2 }
 0x500   :  { %v1408_v51 = vpack.c.bf16 %v1405_v15, %v1407_v48  ;;  %v1368_v54 = vrot.slane %v1358_v40, 1  ;;  %v1384_v59 = vrot.slane %v1358_v40, 3  ;;  %v1380_v0 = vrot.slane %v4623_v52, 3 }
 0x501   :  { %3458 = vrot.lane.b32.xlu0 %v3457_v47, %s3942_s10  ;;  %v3462_v57 = vpack.i.bf16 %v1279_v44, %v1364_v49  ;;  %v3467_v58 = vpack.i.bf16 %v1291_v45, %v1376_v38  ;;  %v1372_v8 = vrot.slane %v4623_v52, 2  ;;  %v1388_v10 = vrot.slane %v4623_v52, 4 }
 0x502   :  { %3227 = vmatmul.mubr.msk.bf16.vlgmr.msra.gmra.mrb[8].mxu1 %vm211_vm4, %v1408_v51  ;;  %v3477_v43 = vpack.i.bf16 %v1283_v46, %v1368_v54  ;;  %v3482_v2 = vpack.i.bf16 %v1299_v55, %v1384_v59  ;;  %v3472_v5 = vpack.i.bf16 %v1295_v24, %v1380_v0 }
 0x503   :  { %3463 = vrot.lane.b32.xlu1 %v3462_v57, %s3943_s21  ;;  %1573 = vmatpush1.bf16.msra.mxu1 %v3613_v50  ;;  %v3487_v11 = vpack.i.bf16 %v1287_v1, %v1372_v8  ;;  %v1389_v42 = vsel %vm300_vm3, %v1388_v10, %v1304_v13 }
 0x504   :  { %1574 = vmatprep.subr.bf16.mxu1 %v3944_v3 }
 0x505   :  { %3468 = vrot.lane.b32.xlu0 %v3467_v58, %s3953_s6 }
 0x507   :  { %3473 = vrot.lane.b32.xlu1 %v3472_v5, %s3945_s3  ;;  %1575 = vmatpush1.bf16.msra.mxu1 %v3614_v4 }
 0x508   :  { %1576 = vmatprep.subr.bf16.mxu1 %v3944_v3 }
 0x509   :  { %3478 = vrot.lane.b32.xlu0 %v3477_v43, %s3952_s29 }
 0x50b   :  { %3483 = vrot.lane.b32.xlu1 %v3482_v2, %s3951_s28  ;;  %1577 = vmatpush1.bf16.msra.mxu1 %v3615_v56 }
 0x50c   :  { %1578 = vmatprep.subr.bf16.mxu1 %v3944_v3 }
 0x50d   :  { %3488 = vrot.lane.b32.xlu0 %v3487_v11, %s3948_s5 }
 0x50f   :  { %1390 = vrot.lane.b32.xlu1 %v1389_v42, %s3930_s18  ;;  %1579 = vmatpush1.bf16.msra.mxu1 %v3616_v12 }
 0x510   :  { %1580 = vmatprep.subr.bf16.mxu1 %v3944_v3 }
 0x511   :  { %1306 = vrot.lane.b32.xlu0 %v1305_v53, %s3930_s18 }
 0x513   :  { %1581 = vmatpush1.bf16.msra.mxu1 %v3617_v41 }
 0x514   :  { %1582 = vmatprep.subr.bf16.mxu1 %v3944_v3 }
 0x517   :  { %1583 = vmatpush1.bf16.msra.mxu1 %v3618_v61  ;;  %v3627_v61 = vld [vmem:[#allocation11 + $0x80] sm:$0xff]  }
 0x518   :  { %1584 = vmatprep.subr.bf16.mxu1 %v3944_v3 }
 0x51b   :  { %1585 = vmatpush1.bf16.msra.mxu1 %v3619_v16  ;;  %v3628_v16 = vld [vmem:[#allocation11 + $0x88] sm:$0xff]  }
 0x51c   :  { %1586 = vmatprep.subr.bf16.mxu1 %v3944_v3 }
 0x51f   :  { %1587 = vmatpush1.bf16.msra.mxu1 %v3620_v18  ;;  %v3629_v18 = vld [vmem:[#allocation11 + $0x40] sm:$0xff]  }
 0x520   :  { %1588 = vmatprep.subr.bf16.mxu1 %v3944_v3  ;;  %3110 = vmatprep.subr.bf16.mxu0 %v3629_v18 }
 0x523   :  { %1589 = vmatpush1.bf16.msra.mxu1 %v3621_v14  ;;  %v3630_v14 = vld [vmem:[#allocation11] sm:$0xff]  }
 0x524   :  { %1590 = vmatprep.subr.bf16.mxu1 %v3944_v3  ;;  %3111 = vmatpush3.bf16.msra.mxu0 %v3630_v14 }
 0x527   :  { %1591 = vmatpush1.bf16.msra.mxu1 %v3622_v19  ;;  %v3631_v19 = vld [vmem:[#allocation11 + $0x48] sm:$0xff]  }
 0x528   :  { %1592 = vmatprep.subr.bf16.mxu1 %v3944_v3  ;;  %3112 = vmatprep.subr.bf16.mxu0 %v3631_v19 }
 0x52b   :  { %1593 = vmatpush1.bf16.msra.mxu1 %v3623_v20  ;;  %v3632_v20 = vld [vmem:[#allocation11 + $0x8] sm:$0xff]  }
 0x52c   :  { %1594 = vmatprep.subr.bf16.mxu1 %v3944_v3  ;;  %3113 = vmatpush3.bf16.msra.mxu0 %v3632_v20  ;;  %v3643_v20 = vld [vmem:[#allocation11 + $0x78] sm:$0xff]  }
 0x52f   :  { %1595 = vmatpush1.bf16.msra.mxu1 %v3624_v21  ;;  %v3633_v21 = vld [vmem:[#allocation11 + $0x50] sm:$0xff]  }
 0x530   :  { %1596 = vmatprep.subr.bf16.mxu1 %v3944_v3  ;;  %3114 = vmatprep.subr.bf16.mxu0 %v3633_v21 }
 0x533   :  { %1597 = vmatpush1.bf16.msra.mxu1 %v3625_v22  ;;  %v3634_v22 = vld [vmem:[#allocation11 + $0x10] sm:$0xff]  }
 0x534   :  { %1598 = vmatprep.subr.bf16.mxu1 %v3944_v3  ;;  %3115 = vmatpush3.bf16.msra.mxu0 %v3634_v22 }
 0x535   :  { %3116 = vmatprep.subr.bf16.mxu0 %v3635_v23 }
 0x537   :  { %1599 = vmatpush1.bf16.msra.mxu1 %v1570_v26  ;;  %v3636_v26 = vld [vmem:[#allocation11 + $0x18] sm:$0xff]  }
 0x538   :  { %3230 = vmatprep.subr.bf16.mxu1 %v3950_v63  ;;  %3117 = vmatpush3.bf16.msra.mxu0 %v3636_v26 }
 0x573   :  { %v3459_v25 = vpop.permute.xlu0 %3458 }
 0x574   :  { %v3461_v29 = vunpack.i.h.bf16 %v3459_v25  ;;  %v3460_v30 = vunpack.i.l.bf16 %v3459_v25  ;;  %v1483_v25 = vsub.s32 3, %v4404_v7 }
 0x575   :  { %v3464_v17 = vpop.permute.xlu1 %3463 }
 0x576   :  { %v3466_v33 = vunpack.i.h.bf16 %v3464_v17  ;;  %v3465_v34 = vunpack.i.l.bf16 %v3464_v17  ;;  %v1309_v37 = vsel %vm211_vm4, %v4617_v27, %v3461_v29  ;;  %v1393_v39 = vsel %vm211_vm4, %v4623_v52, %v3460_v30 }
 0x577   :  { %v3469_v28 = vpop.permute.xlu0 %3468  ;;  %vm5078_vm4 = vcmask 523264   ;;  %v1484_v17 = vrot.slane %v4410_v9, %v1483_v25 }
 0x578   :  { %v3470_v60 = vunpack.i.l.bf16 %v3469_v28  ;;  %v1310_v46 = vsel %vm5077_vm5, %v1309_v37, %v3466_v33  ;;  %v1394_v47 = vsel %vm5077_vm5, %v1393_v39, %v3465_v34  ;;  %v3471_v50 = vunpack.i.h.bf16 %v3469_v28  ;;  %vm5079_vm5 = vmmov %vm5078_vm4  ;;  %v3637_v33 = vld [vmem:[#allocation11 + $0x60] sm:$0xff]  }
 0x579   :  { %v3474_v32 = vpop.permute.xlu1 %3473  ;;  %v3638_v34 = vld [vmem:[#allocation11 + $0x20] sm:$0xff]   ;;  %3118 = vmatprep.subr.bf16.mxu0 %v3637_v33 }
 0x57a   :  { %v3475_v35 = vunpack.i.l.bf16 %v3474_v32  ;;  %v3476_v44 = vunpack.i.h.bf16 %v3474_v32  ;;  %3119 = vmatpush3.bf16.msra.mxu0 %v3638_v34 }
 0x57b   :  { %v3479_v36 = vpop.permute.xlu0 %3478 }
 0x57c   :  { %v3481_v40 = vunpack.i.h.bf16 %v3479_v36  ;;  %v3480_v62 = vunpack.i.l.bf16 %v3479_v36  ;;  %v1398_v38 = vsel %vm506_vm10, %v3470_v60, %v3475_v35  ;;  %v1314_v43 = vsel %vm506_vm10, %v3471_v50, %v3476_v44 }
 0x57d   :  { %v3484_v15 = vpop.permute.xlu1 %3483 }
 0x57e   :  { %v3485_v45 = vunpack.i.l.bf16 %v3484_v15  ;;  %v3486_v48 = vunpack.i.h.bf16 %v3484_v15  ;;  %v1311_v52 = vsel %vm293_vm6, %v1310_v46, %v3481_v40  ;;  %v1395_v55 = vsel %vm293_vm6, %v1394_v47, %v3480_v62 }
 0x57f   :  { %v3489_v49 = vpop.permute.xlu0 %3488 }
 0x580   :  { %v3491_v51 = vunpack.i.h.bf16 %v3489_v49  ;;  %v3490_v27 = vunpack.i.l.bf16 %v3489_v49  ;;  %v1399_v54 = vsel %vm904_vm13, %v1398_v38, %v3485_v45  ;;  %v1315_v5 = vsel %vm904_vm13, %v1314_v43, %v3486_v48  ;;  %v3639_v49 = vld [vmem:[#allocation11 + $0x68] sm:$0xff]   ;;  %vm5083_vm13 = vmmov %vm5078_vm4 }
 0x581   :  { %v1391_v59 = vpop.permute.xlu1 %1390  ;;  %v3640_v38 = vld [vmem:[#allocation11 + $0x28] sm:$0xff]   ;;  %3120 = vmatprep.subr.bf16.mxu0 %v3639_v49 }
 0x582   :  { %v1312_v57 = vsel %vm515_vm14, %v1311_v52, %v3491_v51  ;;  %v1396_v58 = vsel %vm515_vm14, %v1395_v55, %v3490_v27  ;;  %v1400_v0 = vsel %vm5078_vm4, %v1399_v54, %v1391_v59  ;;  %3121 = vmatpush3.bf16.msra.mxu0 %v3640_v38 }
 0x583   :  { %v1397_v2 = vsel %vm899_vm15, %v1396_v58, %v3470_v60  ;;  %v1474_v24 = vrot.slane %v1400_v0, 3  ;;  %v1307_v4 = vpop.permute.xlu0 %1306  ;;  %v1313_v1 = vsel %vm899_vm15, %v1312_v57, %v3471_v50  ;;  %vm5084_vm15 = vmmov %vm5078_vm4 }
 0x584   :  { %v1473_v8 = vrot.slane %v1397_v2, 3  ;;  %v1316_v56 = vsel %vm5079_vm5, %v1315_v5, %v1307_v4  ;;  %vm5080_vm5 = vcmask 261120  }
 0x585   :  { %v1478_v10 = vsel %vm438_vm9, %v1316_v56, %v1474_v24  ;;  %vm5081_vm6 = vmmov %vm5080_vm5 }
 0x586   :  { %v1480_v11 = vpack.c.bf16 %v1474_v24, %v1478_v10  ;;  %v1477_v12 = vsel %vm438_vm9, %v1313_v1, %v1473_v8  ;;  %vm5085_vm4 = vmmov %vm5080_vm5 }
 0x587   :  { %v1479_v13 = vpack.c.bf16 %v1473_v8, %v1477_v12 }
 0x588   :  { %3025 = vmatprep.mubr.msk.bf16.mxu1 %vm1104_vm11, %v1480_v11  ;;  %vm5082_vm11 = vmmov %vm5080_vm5 }
 0x589   :  { %1605 = vmatmul.mubr.bf16.vlgmr.msra.gmra.mrb[12].mxu1 %v1479_v13 }
 0x58a   :  { %3234 = vmatprep.mubr.msk.bf16.mxu1 %vm3954_vm12, %v3950_v63  ;;  %3231 = vmatpush3.bf16.msra.mxu1 %v3627_v61  ;;  %v3642_v61 = vld [vmem:[#allocation11 + $0x30] sm:$0xff]  }
 0x58b   :  { %3232 = vmatprep.subr.bf16.mxu1 %v3950_v63 }
 0x58e   :  { %3233 = vmatpush3.bf16.msra.mxu1 %v3628_v16 }
 0x5d5   :  { %v4685_v31 = vpop.f32.mrb[8].mxu1 }
 0x5d6   :  { %v3228_v42 = vpop.f32.mrb[9].mxu1 }
 0x5d7   :  { %v4687_v41 = vpop.f32.mrb[10].mxu1 }
 0x5d8   :  { %v3229_v53 = vpop.f32.mrb[11].mxu1 }
 0x5d9   :  { %v3641_v53 = vld [vmem:[#allocation11 + $0x70] sm:$0xff]  }
 0x5da   :  { %3122 = vmatprep.subr.bf16.mxu0 %v3641_v53 }
 0x5db   :  { %3123 = vmatpush3.bf16.msra.mxu0 %v3642_v61 }
 0x5dc   :  { %3124 = vmatprep.subr.bf16.mxu0 %v3643_v20  ;;  %v3646_v20 = vld [vmem:[#allocation16 + $0x8] sm:$0xff]  }
 0x65c   :  { %v1606_v28 = vpop.f32.mrb[12].mxu1 }
 0x65d   :  { %v1607_v29 = vadd.f32 %v1606_v28, %v1484_v17  ;;  %v1608_v30 = vpop.f32.mrb[13].mxu1  ;;  %v3644_v28 = vld [vmem:[#allocation11 + $0x38] sm:$0xff]  }
 0x65e   :  { %v1609_v32 = vpop.f32.mrb[14].mxu1  ;;  %3125 = vmatpush3.bf16.msra.mxu0 %v3644_v28  ;;  %v3655_v28 = vld [vmem:[#allocation14 + $0x58] sm:$0xff]  }
 0x65f   :  { %v1613_v35 = vmax.f32 %v1607_v29, 0.0  ;;  %v1610_v36 = vadd.f32 %v1609_v32, %v1484_v17  ;;  %v1611_v37 = vpop.f32.mrb[15].mxu1  ;;  %3238 = vmatprep.subr.bf16.mxu0 %v3950_v63 }
 0x661   :  { %v1616_v39 = vrot.slane %v1613_v35, 3  ;;  %v4693_v60 = vsel %vm438_vm9, 0.0, %v1613_v35  ;;  %v1614_v40 = vmax.f32 %v1610_v36, 0.0 }
 0x662   :  { %v1674_v62 = vrot.slane %v4693_v60, 2  ;;  %v1696_v9 = vrot.slane %v4693_v60, 6  ;;  %v1669_v15 = vrot.slane %v4693_v60, 1  ;;  %v1690_v44 = vrot.slane %v4693_v60, 5 }
 0x663   :  { %v4700_v45 = vsel %vm438_vm9, 0.0, %v1616_v39  ;;  %v4703_v46 = vsel %vm433_vm7, %v1616_v39, 0.0  ;;  %v4706_v47 = vsel %vm433_vm7, %v1614_v40, 0.0  ;;  %v1680_v48 = vrot.slane %v4693_v60, 3 }
 0x664   :  { %v1675_v50 = vrot.slane %v4706_v47, 2  ;;  %v1697_v51 = vrot.slane %v4706_v47, 6  ;;  %v1691_v27 = vrot.slane %v4706_v47, 5  ;;  %v1718_v54 = vrot.slane %v4706_v47, 1 }
 0x665   :  { %v1681_v52 = vrot.slane %v4706_v47, 3  ;;  %v1702_v55 = vrot.slane %v4693_v60, 7  ;;  %v1703_v59 = vrot.slane %v4706_v47, 7  ;;  %v1621_v57 = vrot.slane %v4700_v45, 1 }
 0x666   :  { %v1676_v58 = vsel %vm199_vm2, %v1674_v62, %v1675_v50  ;;  %v1698_v0 = vsel %vm433_vm7, %v1696_v9, %v1697_v51  ;;  %v1692_v43 = vsel %vm435_vm8, %v1690_v44, %v1691_v27  ;;  %v1724_v2 = vsel %vm187_vm1, %v4703_v46, %v1718_v54 }
 0x667   :  { %v3497_v24 = vpack.i.bf16 %v1676_v58, %v1698_v0  ;;  %v3492_v4 = vpack.i.bf16 %v1669_v15, %v1692_v43  ;;  %v1727_v5 = vpack.c.bf16 %v1718_v54, %v1724_v2  ;;  %v1682_v8 = vsel %vm438_vm9, %v1680_v48, %v1681_v52 }
 0x668   :  { %v1704_v56 = vsel %vm176_vm0, %v1702_v55, %v1703_v59  ;;  %v1642_v1 = vrot.slane %v4700_v45, 5  ;;  %v1643_v10 = vrot.slane %v4703_v46, 5  ;;  %v1632_v11 = vrot.slane %v4700_v45, 3 }
 0x669   :  { %3498 = vrot.lane.b32.xlu0 %v3497_v24, %s3930_s18  ;;  %3493 = vrot.lane.b32.xlu1 %v3492_v4, %s3946_s22  ;;  %v1633_v12 = vrot.slane %v4703_v46, 3  ;;  %v1654_v13 = vrot.slane %v4700_v45, 7  ;;  %v1655_v42 = vrot.slane %v4703_v46, 7  ;;  %v1626_v18 = vrot.slane %v4700_v45, 2 }
 0x66a   :  { %3235 = vmatmul.mubr.msk.bf16.vlgmr.msra.gmra.mrb[16].mxu1 %vm5080_vm5, %v1727_v5  ;;  %v1644_v16 = vsel %vm435_vm8, %v1642_v1, %v1643_v10  ;;  %v1627_v14 = vrot.slane %v4703_v46, 2  ;;  %v1648_v19 = vrot.slane %v4700_v45, 6  ;;  %v3507_v21 = vpack.i.bf16 %v1682_v8, %v1704_v56  ;;  %vm5086_vm5 = vmmov %vm5085_vm4 }
 0x66b   :  { %v3502_v22 = vpack.i.bf16 %v1621_v57, %v1644_v16  ;;  %v1649_v23 = vrot.slane %v4703_v46, 6  ;;  %v1634_v26 = vsel %vm438_vm9, %v1632_v11, %v1633_v12  ;;  %v1656_v25 = vsel %vm176_vm0, %v1654_v13, %v1655_v42 }
 0x66c   :  { %v1628_v17 = vsel %vm199_vm2, %v1626_v18, %v1627_v14  ;;  %v3517_v30 = vpack.i.bf16 %v1634_v26, %v1656_v25  ;;  %v1687_v33 = vrot.slane %v4706_v47, 4  ;;  %v1686_v36 = vrot.slane %v4693_v60, 4  ;;  %v3652_v26 = vld [vmem:[#allocation14 + $0x8] sm:$0xff]   ;;  %v3653_v25 = vld [vmem:[#allocation14 + $0x50] sm:$0xff]  }
 0x66d   :  { %3508 = vrot.lane.b32.xlu0 %v3507_v21, %s3948_s5  ;;  %3503 = vrot.lane.b32.xlu1 %v3502_v22, %s3946_s22  ;;  %v1650_v29 = vsel %vm433_vm7, %v1648_v19, %v1649_v23  ;;  %v1638_v49 = vrot.slane %v4700_v45, 4  ;;  %v1639_v47 = vrot.slane %v4703_v46, 4  ;;  %v3645_v19 = vld [vmem:[#allocation16] sm:$0xff]   ;;  %v3649_v21 = vld [vmem:[#allocation14 + $0x40] sm:$0xff]   ;;  %v3651_v23 = vld [vmem:[#allocation14 + $0x48] sm:$0xff]  }
 0x66e   :  { %v3512_v32 = vpack.i.bf16 %v1628_v17, %v1650_v29  ;;  %v1688_v9 = vsel %vm300_vm3, %v1686_v36, %v1687_v33  ;;  %v3650_v22 = vld [vmem:[#allocation14] sm:$0xff]   ;;  %3138 = vmatprep.subr.bf16.mxu1 %v3649_v21  ;;  %v3654_v17 = vld [vmem:[#allocation14 + $0x10] sm:$0xff]   ;;  %v3656_v29 = vld [vmem:[#allocation14 + $0x18] sm:$0xff]  }
 0x66f   :  { %3139 = vmatpush3.bf16.msra.mxu1 %v3650_v22  ;;  %v4778_v33 = vld [vmem:[%s5060_s1] sm:$0xff] }
 0x670   :  { %3140 = vmatprep.subr.bf16.mxu1 %v3651_v23  ;;  %v3657_v22 = vld [vmem:[#allocation14 + $0x60] sm:$0xff]  }
 0x671   :  { %3518 = vrot.lane.b32.xlu0 %v3517_v30, %s3948_s5  ;;  %3513 = vrot.lane.b32.xlu1 %v3512_v32, %s3930_s18  ;;  %v1411_v30 = vsub.s32 5, %v4404_v7  ;;  %v1730_v32 = vsub.s32 4, %v4404_v7  ;;  %v3658_v23 = vld [vmem:[#allocation14 + $0x20] sm:$0xff]  }
 0x673   :  { %3141 = vmatpush3.bf16.msra.mxu1 %v3652_v26  ;;  %v1731_v36 = vrot.slane %v4778_v33, %v1730_v32 }
 0x674   :  { %3142 = vmatprep.subr.bf16.mxu1 %v3653_v25 }
 0x677   :  { %3143 = vmatpush3.bf16.msra.mxu1 %v3654_v17 }
 0x678   :  { %3144 = vmatprep.subr.bf16.mxu1 %v3655_v28 }
 0x67b   :  { %3145 = vmatpush3.bf16.msra.mxu1 %v3656_v29 }
 0x67c   :  { %3146 = vmatprep.subr.bf16.mxu1 %v3657_v22 }
 0x67f   :  { %3147 = vmatpush3.bf16.msra.mxu1 %v3658_v23 }
 0x6db   :  { %v3499_v34 = vpop.permute.xlu0 %3498  ;;  %v3494_v35 = vpop.permute.xlu1 %3493 }
 0x6dc   :  { %v3496_v37 = vunpack.i.h.bf16 %v3494_v35  ;;  %v3495_v39 = vunpack.i.l.bf16 %v3494_v35  ;;  %v3501_v40 = vunpack.i.h.bf16 %v3499_v34  ;;  %v3500_v62 = vunpack.i.l.bf16 %v3499_v34 }
 0x6dd   :  { %v1412_v34 = vrot.slane %v4778_v33, %v1411_v30 }
 0x6de   :  { %v1708_v15 = vsel %vm5081_vm6, %v4693_v60, %v3496_v37  ;;  %v1711_v44 = vsel %vm5082_vm11, %v1688_v9, %v3495_v39  ;;  %v1640_v60 = vsel %vm300_vm3, %v1638_v49, %v1639_v47  ;;  %vm5087_vm6 = vmmov %vm5083_vm13 }
 0x6df   :  { %v3509_v48 = vpop.permute.xlu0 %3508  ;;  %v3504_v38 = vpop.permute.xlu1 %3503  ;;  %v1709_v52 = vsel %vm5083_vm13, %v1708_v15, %v3501_v40  ;;  %v1712_v55 = vsel %vm5084_vm15, %v1711_v44, %v3500_v62  ;;  %vm5088_vm11 = vmmov %vm5087_vm6  ;;  %v1463_v39 = vadd.f32 %v4685_v31, %v1412_v34  ;;  %v1466_v15 = vadd.f32 %v4687_v41, %v1412_v34 }
 0x6e0   :  { %v3511_v50 = vunpack.i.h.bf16 %v3509_v48  ;;  %v3510_v51 = vunpack.i.l.bf16 %v3509_v48  ;;  %v3506_v27 = vunpack.i.h.bf16 %v3504_v38  ;;  %v3505_v54 = vunpack.i.l.bf16 %v3504_v38 }
 0x6e1   :  { %v1469_v49 = vmax.f32 %v1463_v39, 0.0 }
 0x6e2   :  { %v1710_v59 = vsel %vm515_vm14, %v1709_v52, %v3511_v50  ;;  %v1713_v0 = vsel %vm515_vm14, %v1712_v55, %v3510_v51  ;;  %v1660_v4 = vsel %vm5085_vm4, %v4700_v45, %v3506_v27  ;;  %v1663_v5 = vsel %vm5086_vm5, %v1640_v60, %v3505_v54 }
 0x6e3   :  { %v3519_v57 = vpop.permute.xlu0 %3518  ;;  %v3514_v58 = vpop.permute.xlu1 %3513  ;;  %v1716_v8 = vrot.slane %v1710_v59, 1  ;;  %v1717_v10 = vrot.slane %v1713_v0, 1  ;;  %v1470_v50 = vmax.f32 %v1466_v15, 0.0  ;;  %v3659_v15 = vld [vmem:[#allocation14 + $0x68] sm:$0xff]  }
 0x6e4   :  { %v3521_v43 = vunpack.i.h.bf16 %v3519_v57  ;;  %v3520_v2 = vunpack.i.l.bf16 %v3519_v57  ;;  %v3516_v46 = vunpack.i.h.bf16 %v3514_v58  ;;  %v3515_v24 = vunpack.i.l.bf16 %v3514_v58  ;;  %3148 = vmatprep.subr.bf16.mxu1 %v3659_v15 }
 0x6e6   :  { %v1661_v56 = vsel %vm5087_vm6, %v1660_v4, %v3516_v46  ;;  %v1664_v1 = vsel %vm5088_vm11, %v1663_v5, %v3515_v24 }
 0x6e7   :  { %v1662_v11 = vsel %vm515_vm14, %v1661_v56, %v3521_v43  ;;  %v1665_v12 = vsel %vm515_vm14, %v1664_v1, %v3520_v2 }
 0x6e8   :  { %v1722_v13 = vsel %vm187_vm1, %v1662_v11, %v1716_v8  ;;  %v1723_v42 = vsel %vm187_vm1, %v1665_v12, %v1717_v10 }
 0x6e9   :  { %v1725_v53 = vpack.c.bf16 %v1716_v8, %v1722_v13  ;;  %v1726_v61 = vpack.c.bf16 %v1717_v10, %v1723_v42 }
 0x6eb   :  { %1875 = vmatprep.mubr.bf16.mxu0 %v1726_v61 }
 0x6ec   :  { %1876 = vmatmul.mubr.bf16.vlgmr.msra.gmra.mrb[12].mxu0 %v1725_v53 }
 0x6ed   :  { %3242 = vmatprep.mubr.msk.bf16.mxu0 %vm3954_vm12, %v3950_v63  ;;  %3239 = vmatpush3.bf16.msra.mxu0 %v3645_v19 }
 0x6ee   :  { %3240 = vmatprep.subr.bf16.mxu0 %v3950_v63 }
 0x6f1   :  { %3241 = vmatpush3.bf16.msra.mxu0 %v3646_v20 }
 0x6f2   :  { %3246 = vmatprep.subr.bf16.mxu0 %v3950_v63 }
 0x73d   :  { %v1918_v45 = vpop.f32.mrb[16].mxu1 }
 0x73e   :  { %v3236_v16 = vpop.f32.mrb[17].mxu1 }
 0x73f   :  { %v1921_v18 = vpop.f32.mrb[18].mxu1 }
 0x740   :  { %v3237_v14 = vpop.f32.mrb[19].mxu1 }
 0x7bf   :  { %v3126_v35 = vpop.f32.mrb[12].mxu0 }
 0x7c0   :  { %v3127_v37 = vpop.f32.mrb[13].mxu0 }
 0x7c1   :  { %v3128_v40 = vadd.f32 %v3127_v37, %v3126_v35  ;;  %v3129_v62 = vpop.f32.mrb[14].mxu0 }
 0x7c2   :  { %v3130_v9 = vpop.f32.mrb[15].mxu0 }
 0x7c3   :  { %v1878_v44 = vadd.f32 %v3128_v40, %v1731_v36  ;;  %v3131_v48 = vadd.f32 %v3130_v9, %v3129_v62 }
 0x7c5   :  { %v1919_v47 = vadd.f32 %v1918_v45, %v1878_v44  ;;  %v1881_v38 = vadd.f32 %v3131_v48, %v1731_v36 }
 0x7c7   :  { %v1925_v51 = vadd.f32 %v1919_v47, %v1469_v49  ;;  %v1922_v27 = vadd.f32 %v1921_v18, %v1881_v38 }
 0x7c9   :  { %v2022_v54 = vrot.slane %v1925_v51, 4  ;;  %v1926_v52 = vadd.f32 %v1922_v27, %v1470_v50  ;;  %v2095_v0 = vrot.slane %v1925_v51, 3 }
 0x7cb   :  { %v2024_v55 = vsel %vm300_vm3, 0.0, %v2022_v54  ;;  %v2025_v59 = vsel %vm435_vm8, %v2022_v54, 0.0  ;;  %v2096_v31 = vrot.slane %v1926_v52, 3 }
 0x7cc   :  { %v2027_v60 = vrot.slane %v2024_v55, 1  ;;  %v2029_v57 = vrot.slane %v2024_v55, 2  ;;  %v2031_v58 = vrot.slane %v2024_v55, 3  ;;  %v2034_v41 = vrot.slane %v2025_v59, 4 }
 0x7cd   :  { %v2036_v43 = vrot.slane %v2025_v59, 5  ;;  %v2038_v2 = vrot.slane %v2025_v59, 6  ;;  %v2040_v46 = vrot.slane %v2025_v59, 7  ;;  %v2049_v4 = vrot.slane %v2024_v55, 4 }
 0x7ce   :  { %v2042_v24 = vsel %vm176_vm0, %v2024_v55, %v2027_v60  ;;  %v2097_v5 = vsel %vm438_vm9, %v2095_v0, %v2096_v31  ;;  %v2101_v8 = vsel %vm435_vm8, %v2096_v31, 0.0  ;;  %v2051_v1 = vsel %vm176_vm0, %v2027_v60, %v2029_v57  ;;  %v3660_v55 = vld [vmem:[#allocation14 + $0x28] sm:$0xff]  }
 0x7cf   :  { %v2043_v56 = vsel %vm433_vm7, %v2042_v24, %v2029_v57  ;;  %v2100_v10 = vsel %vm300_vm3, 0.0, %v2097_v5  ;;  %v2110_v11 = vrot.slane %v2101_v8, 4  ;;  %v2112_v45 = vrot.slane %v2101_v8, 5  ;;  %v3661_v57 = vld [vmem:[#allocation14 + $0x70] sm:$0xff]   ;;  %3149 = vmatpush3.bf16.msra.mxu1 %v3660_v55 }
 0x7d0   :  { %v2044_v12 = vsel %vm435_vm8, %v2043_v56, %v2031_v58  ;;  %v2103_v13 = vrot.slane %v2100_v10, 1  ;;  %v2105_v42 = vrot.slane %v2100_v10, 2  ;;  %v2107_v53 = vrot.slane %v2100_v10, 3  ;;  %3150 = vmatprep.subr.bf16.mxu1 %v3661_v57  ;;  %v3663_v56 = vld [vmem:[#allocation14 + $0x78] sm:$0xff]  }
 0x7d1   :  { %v2045_v61 = vsel %vm300_vm3, %v2044_v12, %v2034_v41  ;;  %v2114_v16 = vrot.slane %v2101_v8, 6  ;;  %v2125_v18 = vrot.slane %v2100_v10, 4  ;;  %v2052_v21 = vsel %vm433_vm7, %v2051_v1, %v2031_v58  ;;  %v3647_v41 = vld [vmem:[#allocation14 + $0x80] sm:$0xff]   ;;  %v3648_v1 = vld [vmem:[#allocation14 + $0x88] sm:$0xff]  }
 0x7d2   :  { %v2046_v14 = vsel %vm438_vm9, %v2045_v61, %v2036_v43  ;;  %v2118_v19 = vsel %vm176_vm0, %v2100_v10, %v2103_v13  ;;  %v2127_v20 = vsel %vm176_vm0, %v2103_v13, %v2105_v42  ;;  %v2053_v28 = vsel %vm435_vm8, %v2052_v21, %v2049_v4  ;;  %v3662_v4 = vld [vmem:[#allocation14 + $0x30] sm:$0xff]  }
 0x7d3   :  { %v2047_v26 = vsel %vm199_vm2, %v2046_v14, %v2038_v2  ;;  %v2119_v25 = vsel %vm433_vm7, %v2118_v19, %v2105_v42  ;;  %v2128_v17 = vsel %vm433_vm7, %v2127_v20, %v2107_v53  ;;  %v2116_v29 = vrot.slane %v2101_v8, 7  ;;  %3151 = vmatpush3.bf16.msra.mxu1 %v3662_v4 }
 0x7d4   :  { %v2120_v30 = vsel %vm435_vm8, %v2119_v25, %v2107_v53  ;;  %v2129_v32 = vsel %vm435_vm8, %v2128_v17, %v2125_v18  ;;  %v2054_v34 = vsel %vm300_vm3, %v2053_v28, %v2036_v43  ;;  %v2048_v39 = vsel %vm187_vm1, %v2047_v26, %v2040_v46  ;;  %v3664_v53 = vld [vmem:[#allocation14 + $0x38] sm:$0xff]   ;;  %3152 = vmatprep.subr.bf16.mxu1 %v3663_v56 }
 0x7d5   :  { %v2121_v35 = vsel %vm300_vm3, %v2120_v30, %v2110_v11  ;;  %v2130_v36 = vsel %vm300_vm3, %v2129_v32, %v2112_v45  ;;  %v2055_v37 = vsel %vm438_vm9, %v2054_v34, %v2038_v2  ;;  %v2170_v50 = vrot.slane %v2048_v39, 1  ;;  %v3668_v56 = vld [vmem:[%s5070_s11 + $0x40] sm:$0xff]  }
 0x7d6   :  { %v2122_v40 = vsel %vm438_vm9, %v2121_v35, %v2112_v45  ;;  %v2056_v62 = vsel %vm199_vm2, %v2055_v37, %v2040_v46  ;;  %v2131_v9 = vsel %vm438_vm9, %v2130_v36, %v2114_v16  ;;  %v4817_v52 = vmax.f32 %v2048_v39, 0.0 }
 0x7d7   :  { %v2058_v44 = vmax.f32 %v2056_v62, 0.0  ;;  %v2132_v48 = vsel %vm199_vm2, %v2131_v9, %v2116_v29  ;;  %v2123_v49 = vsel %vm199_vm2, %v2122_v40, %v2114_v16  ;;  %3153 = vmatpush3.bf16.msra.mxu1 %v3664_v53  ;;  %v3675_v53 = vld [vmem:[%s5070_s11 + $0x10] sm:$0xff]  }
 0x7d8   :  { %v2134_v47 = vmax.f32 %v2132_v48, 0.0  ;;  %v2124_v38 = vsel %vm187_vm1, %v2123_v49, %v2116_v29  ;;  %v2086_v8 = vrot.slane %v4817_v52, 4  ;;  %vm5089_vm1 = vmmov %vm5085_vm4  ;;  %v2064_v10 = vrot.slane %v4817_v52, 1  ;;  %2781 = vmatprep.subr.bf16.mxu1 %v3944_v3 }
 0x7d9   :  { %v2074_v51 = vrot.slane %v2058_v44, 2  ;;  %v2173_v27 = vrot.slane %v2124_v38, 3  ;;  %v4815_v54 = vmax.f32 %v2124_v38, 0.0  ;;  %v2078_v11 = vrot.slane %v4817_v52, 3  ;;  %vm5090_vm13 = vmmov %vm5089_vm1 }
 0x7da   :  { %v2144_v59 = vrot.slane %v2134_v47, 1  ;;  %v2158_v31 = vrot.slane %v2134_v47, 3  ;;  %v2150_v60 = vrot.slane %v2134_v47, 2  ;;  %v2068_v13 = vrot.slane %v2058_v44, 1  ;;  %vm5091_vm15 = vmmov %vm5089_vm1 }
 0x7db   :  { %v3522_v58 = vpack.i.bf16 %v2058_v44, %v2074_v51  ;;  %v2175_v0 = vsel %vm199_vm2, %v2170_v50, %v2173_v27  ;;  %v2140_v46 = vrot.slane %v4815_v54, 1  ;;  %v2154_v24 = vrot.slane %v4815_v54, 3  ;;  %vm5092_vm4 = vmmov %vm5089_vm1 }
 0x7dc   :  { %v3537_v43 = vpack.i.bf16 %v2144_v59, %v2158_v31  ;;  %v2176_v2 = vpack.c.bf16 %v2173_v27, %v2175_v0  ;;  %v3527_v5 = vpack.i.bf16 %v2134_v47, %v2150_v60  ;;  %v2082_v42 = vrot.slane %v2058_v44, 3  ;;  %vm5093_vm5 = vmmov %vm5089_vm1 }
 0x7dd   :  { %3523 = vrot.lane.b32.xlu1 %v3522_v58, %s3946_s22  ;;  %v3542_v12 = vpack.i.bf16 %v2140_v46, %v2154_v24  ;;  %v2249_v61 = vsel %vm300_vm3, %v2086_v8, %v4815_v54  ;;  %v3532_v45 = vpack.i.bf16 %v2064_v10, %v2078_v11  ;;  %v2148_v23 = vrot.slane %v4815_v54, 2  ;;  %vm5094_vm6 = vmmov %vm5089_vm1  ;;  %v3665_v8 = vld [vmem:[%s5070_s11 + $0x80] sm:$0xff]   ;;  %v3666_v10 = vld [vmem:[%s5070_s11 + $0x88] sm:$0xff]  }
 0x7de   :  { %3538 = vrot.lane.b32.xlu0 %v3537_v43, %s3948_s5  ;;  %3243 = vmatmul.mubr.msk.bf16.vlgmr.msra.gmra.mrb[16].mxu0 %vm5089_vm1, %v2176_v2  ;;  %v3547_v16 = vpack.i.bf16 %v2068_v13, %v2082_v42  ;;  %v2252_v18 = vpack.c.bf16 %v2249_v61, %v2249_v61  ;;  %v2072_v28 = vrot.slane %v4817_v52, 2  ;;  %vm5095_vm1 = vmmov %vm5088_vm11  ;;  %v3671_v11 = vld [vmem:[%s5070_s11 + $0x48] sm:$0xff]   ;;  %v3674_v13 = vld [vmem:[%s5070_s11 + $0x50] sm:$0xff]  }
 0x7df   :  { %3247 = vmatpush3.bf16.msra.mxu0 %v3647_v41  ;;  %3250 = vmatprep.mubr.msk.bf16.mxu0 %vm3954_vm12, %v3950_v63  ;;  %v3667_v42 = vld [vmem:[%s5070_s11 + $0x90] sm:$0xff]   ;;  %v3677_v61 = vld [vmem:[%s5070_s11 + $0x58] sm:$0xff]  }
 0x7e0   :  { %3248 = vmatprep.subr.bf16.mxu0 %v3950_v63 }
 0x7e1   :  { %3528 = vrot.lane.b32.xlu1 %v3527_v5, %s3946_s22 }
 0x7e2   :  { %3543 = vrot.lane.b32.xlu0 %v3542_v12, %s3930_s18  ;;  %v3672_v12 = vld [vmem:[%s5070_s11 + $0x8] sm:$0xff]  }
 0x7e3   :  { %3249 = vmatpush3.bf16.msra.mxu0 %v3648_v1  ;;  %v3669_v1 = vld [vmem:[%s5070_s11] sm:$0xff]  }
 0x7e4   :  { %3163 = vmatprep.subr.bf16.mxu0 %v3668_v56  ;;  %v3687_v56 = vld [vmem:[%s5070_s11 + $0x30] sm:$0xff]  }
 0x7e5   :  { %3533 = vrot.lane.b32.xlu1 %v3532_v45, %s3930_s18  ;;  %v3670_v45 = vld [vmem:[%s5070_s11 + $0x98] sm:$0xff]  }
 0x7e6   :  { %3548 = vrot.lane.b32.xlu0 %v3547_v16, %s3948_s5  ;;  %3251 = vmatmul.mubr.msk.bf16.vlgmr.msra.gmra.mrb[20].mxu0 %vm5090_vm13, %v2252_v18  ;;  %vm5096_vm13 = vmmov %vm5095_vm1  ;;  %v3678_v16 = vld [vmem:[%s5070_s11 + $0x18] sm:$0xff]   ;;  %v3673_v18 = vld [vmem:[%s5070_s11 + $0xa0] sm:$0xff]  }
 0x7e7   :  { %3164 = vmatpush3.bf16.msra.mxu0 %v3669_v1 }
 0x7e8   :  { %3165 = vmatprep.subr.bf16.mxu0 %v3671_v11 }
 0x7eb   :  { %3166 = vmatpush3.bf16.msra.mxu0 %v3672_v12 }
 0x7ec   :  { %3167 = vmatprep.subr.bf16.mxu0 %v3674_v13  ;;  %v3688_v13 = vld [vmem:[%s5070_s11 + $0xc8] sm:$0xff]  }
 0x7ef   :  { %3168 = vmatpush3.bf16.msra.mxu0 %v3675_v53 }
 0x7f0   :  { %3169 = vmatprep.subr.bf16.mxu0 %v3677_v61 }
 0x7f3   :  { %3170 = vmatpush3.bf16.msra.mxu0 %v3678_v16 }
 0x84f   :  { %v3524_v14 = vpop.permute.xlu1 %3523 }
 0x850   :  { %v3539_v19 = vpop.permute.xlu0 %3538  ;;  %v3526_v20 = vunpack.i.h.bf16 %v3524_v14  ;;  %v3525_v21 = vunpack.i.l.bf16 %v3524_v14  ;;  %v3676_v14 = vld [vmem:[%s5070_s11 + $0xa8] sm:$0xff]  }
 0x851   :  { %v3541_v32 = vunpack.i.h.bf16 %v3539_v19  ;;  %v3540_v34 = vunpack.i.l.bf16 %v3539_v19  ;;  %v3679_v19 = vld [vmem:[%s5070_s11 + $0xb0] sm:$0xff]  }
 0x852   :  { %v2088_v37 = vsel %vm5093_vm5, %v4817_v52, %v3526_v20  ;;  %v2091_v39 = vsel %vm5094_vm6, %v2072_v28, %v3525_v21  ;;  %v2255_v20 = vsub.s32 6, %v4404_v7  ;;  %vm5102_vm5 = vmmov %vm5095_vm1  ;;  %vm5103_vm6 = vcmask 916480  }
 0x853   :  { %v3529_v22 = vpop.permute.xlu1 %3528 }
 0x854   :  { %v3531_v26 = vunpack.i.h.bf16 %v3529_v22  ;;  %v3530_v25 = vunpack.i.l.bf16 %v3529_v22  ;;  %v3544_v17 = vpop.permute.xlu0 %3543  ;;  %v2256_v22 = vrot.slane %v4778_v33, %v2255_v20 }
 0x855   :  { %v3546_v29 = vunpack.i.h.bf16 %v3544_v17  ;;  %v3545_v30 = vunpack.i.l.bf16 %v3544_v17 }
 0x856   :  { %v2163_v35 = vsel %vm5091_vm15, %v4815_v54, %v3531_v26  ;;  %v2166_v36 = vsel %vm5092_vm4, %v2148_v23, %v3530_v25  ;;  %vm5097_vm15 = vmmov %vm5095_vm1  ;;  %vm5098_vm4 = vcmask 392192  }
 0x857   :  { %v2164_v40 = vsel %vm5088_vm11, %v2163_v35, %v3546_v29  ;;  %v2167_v62 = vsel %vm5095_vm1, %v2166_v36, %v3545_v30  ;;  %v3534_v9 = vpop.permute.xlu1 %3533  ;;  %v3682_v35 = vld [vmem:[%s5070_s11 + $0xb8] sm:$0xff]   ;;  %vm5104_vm11 = vcmask 261120  }
 0x858   :  { %v2165_v15 = vsel %vm515_vm14, %v2164_v40, %v3541_v32  ;;  %v2168_v44 = vsel %vm515_vm14, %v2167_v62, %v3540_v34  ;;  %v3536_v48 = vunpack.i.h.bf16 %v3534_v9  ;;  %v3535_v49 = vunpack.i.l.bf16 %v3534_v9  ;;  %v3549_v47 = vpop.permute.xlu0 %3548  ;;  %v3680_v32 = vld [vmem:[%s5070_s11 + $0x60] sm:$0xff]  }
 0x859   :  { %v2241_v38 = vrot.slane %v2165_v15, 4  ;;  %v3551_v50 = vunpack.i.h.bf16 %v3549_v47  ;;  %v3550_v51 = vunpack.i.l.bf16 %v3549_v47  ;;  %v2242_v27 = vrot.slane %v2168_v44, 4  ;;  %v3681_v34 = vld [vmem:[%s5070_s11 + $0x20] sm:$0xff]   ;;  %3171 = vmatprep.subr.bf16.mxu0 %v3680_v32 }
 0x85a   :  { %v2089_v54 = vsel %vm5096_vm13, %v2088_v37, %v3536_v48  ;;  %v2092_v52 = vsel %vm5097_vm15, %v2091_v39, %v3535_v49  ;;  %3172 = vmatpush3.bf16.msra.mxu0 %v3681_v34  ;;  %vm5107_vm13 = vcmask 654336  }
 0x85b   :  { %v2090_v55 = vsel %vm515_vm14, %v2089_v54, %v3551_v50  ;;  %v2093_v59 = vsel %vm515_vm14, %v2092_v52, %v3550_v51  ;;  %v3684_v54 = vld [vmem:[%s5070_s11 + $0x28] sm:$0xff]   ;;  %vm5108_vm15 = vmmov %vm5107_vm13 }
 0x85c   :  { %v2248_v31 = vsel %vm300_vm3, %v2093_v59, %v2242_v27  ;;  %v2247_v60 = vsel %vm300_vm3, %v2090_v55, %v2241_v38  ;;  %v3683_v27 = vld [vmem:[%s5070_s11 + $0x68] sm:$0xff]  }
 0x85d   :  { %v2251_v57 = vpack.c.bf16 %v2248_v31, %v2248_v31  ;;  %v2250_v58 = vpack.c.bf16 %v2247_v60, %v2247_v60  ;;  %v3685_v60 = vld [vmem:[%s5070_s11 + $0xc0] sm:$0xff]   ;;  %3173 = vmatprep.subr.bf16.mxu0 %v3683_v27 }
 0x85e   :  { %3174 = vmatpush3.bf16.msra.mxu0 %v3684_v54 }
 0x85f   :  { %2400 = vmatprep.mubr.bf16.mxu1 %v2251_v57  ;;  %v3686_v57 = vld [vmem:[%s5070_s11 + $0x70] sm:$0xff]  }
 0x860   :  { %2401 = vmatmul.mubr.bf16.vlgmr.msra.gmra.mrb[20].mxu1 %v2250_v58  ;;  %3175 = vmatprep.subr.bf16.mxu0 %v3686_v57 }
 0x861   :  { %2782 = vmatpush1.bf16.msra.mxu1 %v3665_v8 }
 0x862   :  { %2783 = vmatprep.subr.bf16.mxu1 %v3944_v3  ;;  %3176 = vmatpush3.bf16.msra.mxu0 %v3687_v56 }
 0x865   :  { %2784 = vmatpush1.bf16.msra.mxu1 %v3666_v10 }
 0x866   :  { %2785 = vmatprep.subr.bf16.mxu1 %v3944_v3 }
 0x869   :  { %2786 = vmatpush1.bf16.msra.mxu1 %v3667_v42 }
 0x86a   :  { %2787 = vmatprep.subr.bf16.mxu1 %v3944_v3 }
 0x86d   :  { %2788 = vmatpush1.bf16.msra.mxu1 %v3670_v45 }
 0x86e   :  { %2789 = vmatprep.subr.bf16.mxu1 %v3944_v3 }
 0x871   :  { %2790 = vmatpush1.bf16.msra.mxu1 %v3673_v18 }
 0x872   :  { %2791 = vmatprep.subr.bf16.mxu1 %v3944_v3 }
 0x875   :  { %2792 = vmatpush1.bf16.msra.mxu1 %v3676_v14 }
 0x876   :  { %2793 = vmatprep.subr.bf16.mxu1 %v3944_v3 }
 0x879   :  { %2794 = vmatpush1.bf16.msra.mxu1 %v3679_v19 }
 0x87a   :  { %2795 = vmatprep.subr.bf16.mxu1 %v3944_v3 }
 0x87d   :  { %2796 = vmatpush1.bf16.msra.mxu1 %v3682_v35 }
 0x87e   :  { %2797 = vmatprep.subr.bf16.mxu1 %v3944_v3 }
 0x881   :  { %2798 = vmatpush1.bf16.msra.mxu1 %v3685_v60 }
 0x882   :  { %2799 = vmatprep.subr.bf16.mxu1 %v3944_v3 }
 0x885   :  { %2800 = vmatpush1.bf16.msra.mxu1 %v3688_v13 }
 0x886   :  { %2801 = vmatprep.subr.bf16.mxu1 %v3944_v3 }
 0x8b1   :  { %v4857_v0 = vpop.f32.mrb[16].mxu0 }
 0x8b2   :  { %v3244_v41 = vpop.f32.mrb[17].mxu0 }
 0x8b3   :  { %v4859_v43 = vpop.f32.mrb[18].mxu0 }
 0x8b4   :  { %v3245_v2 = vpop.f32.mrb[19].mxu0 }
 0x8b9   :  { %v2442_v46 = vpop.f32.mrb[20].mxu0 }
 0x8ba   :  { %v3252_v24 = vpop.f32.mrb[21].mxu0 }
 0x8bb   :  { %v2445_v4 = vpop.f32.mrb[22].mxu0 }
 0x8bc   :  { %v3253_v5 = vpop.f32.mrb[23].mxu0 }
 0x933   :  { %v3154_v21 = vpop.f32.mrb[20].mxu1 }
 0x934   :  { %v3155_v23 = vpop.f32.mrb[21].mxu1 }
 0x935   :  { %v3156_v26 = vadd.f32 %v3155_v23, %v3154_v21  ;;  %v3157_v25 = vpop.f32.mrb[22].mxu1  ;;  %v3689_v21 = vld [vmem:[%s5070_s11 + $0x78] sm:$0xff]  }
 0x936   :  { %v3158_v17 = vpop.f32.mrb[23].mxu1  ;;  %v3691_v25 = vld [vmem:[%s5070_s11 + $0xd0] sm:$0xff]   ;;  %3177 = vmatprep.subr.bf16.mxu0 %v3689_v21 }
 0x937   :  { %v2403_v28 = vadd.f32 %v3156_v26, %v2256_v22  ;;  %v3690_v22 = vld [vmem:[%s5070_s11 + $0x38] sm:$0xff]   ;;  %2802 = vmatpush1.bf16.msra.mxu1 %v3691_v25 }
 0x938   :  { %3178 = vmatpush3.bf16.msra.mxu0 %v3690_v22  ;;  %v3955_v22 = vmov 0.0|0.0  }
 0x939   :  { %v2443_v29 = vadd.f32 %v2442_v46, %v2403_v28  ;;  %3289 = vmatprep.subr.bf16.mxu0 %v3955_v22 }
 0x93b   :  { %v2448_v30 = vmax.f32 %v2443_v29, 0.0 }
 0x93d   :  { %v2450_v36 = vrot.slane %v2448_v30, 3  ;;  %v2501_v37 = vrot.slane %v2448_v30, 7 }
 0x93f   :  { %v4926_v39 = vsel %vm438_vm9, 0.0, %v2450_v36  ;;  %v4929_v40 = vsel %vm176_vm0, %v2450_v36, 0.0  ;;  %v4932_v62 = vsel %vm438_vm9, 0.0, %v2501_v37  ;;  %v4935_v9 = vsel %vm176_vm0, %v2501_v37, 0.0 }
 0x940   :  { %v2459_v15 = vrot.slane %v4926_v39, 2  ;;  %v2510_v44 = vrot.slane %v4932_v62, 2  ;;  %v2558_v48 = vrot.slane %v4935_v9, 2  ;;  %v2464_v49 = vrot.slane %v4926_v39, 3 }
 0x941   :  { %v2465_v47 = vrot.slane %v4929_v40, 3  ;;  %v2515_v38 = vrot.slane %v4932_v62, 3  ;;  %v2516_v50 = vrot.slane %v4935_v9, 3  ;;  %v2470_v51 = vrot.slane %v4926_v39, 4 }
 0x942   :  { %v3552_v52 = vpack.i.bf16 %v2459_v15, %v2510_v44  ;;  %v2566_v55 = vsel %vm199_vm2, %v4929_v40, %v2558_v48  ;;  %v2471_v59 = vrot.slane %v4929_v40, 4  ;;  %v2521_v31 = vrot.slane %v4932_v62, 4 }
 0x943   :  { %v2570_v58 = vpack.c.bf16 %v2558_v48, %v2566_v55  ;;  %v2466_v41 = vsel %vm438_vm9, %v2464_v49, %v2465_v47  ;;  %v2517_v2 = vsel %vm438_vm9, %v2515_v38, %v2516_v50  ;;  %v2522_v46 = vrot.slane %v4935_v9, 4  ;;  %vm5101_vm9 = vmmov %vm5095_vm1 }
 0x944   :  { %3553 = vrot.lane.b32.xlu1 %v3552_v52, %s3948_s5  ;;  %v3557_v24 = vpack.i.bf16 %v2466_v41, %v2517_v2  ;;  %v2472_v4 = vsel %vm300_vm3, %v2470_v51, %v2471_v59  ;;  %v2455_v5 = vrot.slane %v4926_v39, 1  ;;  %v2506_v8 = vrot.slane %v4932_v62, 1  ;;  %vm5106_vm1 = vmmov %vm5103_vm6 }
 0x945   :  { %3096 = vmatprep.mubr.msk.bf16.mxu1 %vm5098_vm4, %v2570_v58  ;;  %v2523_v1 = vsel %vm300_vm3, %v2521_v31, %v2522_v46  ;;  %v2476_v10 = vrot.slane %v4926_v39, 5  ;;  %v2477_v11 = vrot.slane %v4929_v40, 5  ;;  %v2527_v12 = vrot.slane %v4932_v62, 5  ;;  %vm5099_vm3 = vmmov %vm5098_vm4 }
 0x946   :  { %3558 = vrot.lane.b32.xlu0 %v3557_v24, %s3945_s3  ;;  %v3567_v42 = vpack.i.bf16 %v2472_v4, %v2523_v1  ;;  %v2528_v53 = vrot.slane %v4935_v9, 5  ;;  %v2482_v61 = vrot.slane %v4926_v39, 6  ;;  %v2483_v16 = vrot.slane %v4929_v40, 6 }
 0x947   :  { %v2478_v45 = vsel %vm435_vm8, %v2476_v10, %v2477_v11  ;;  %v2533_v18 = vrot.slane %v4932_v62, 6  ;;  %v2534_v14 = vrot.slane %v4935_v9, 6  ;;  %v3562_v19 = vpack.i.bf16 %v2455_v5, %v2506_v8 }
 0x948   :  { %3568 = vrot.lane.b32.xlu1 %v3567_v42, %s3930_s18  ;;  %v2529_v20 = vsel %vm435_vm8, %v2527_v12, %v2528_v53  ;;  %v2484_v23 = vsel %vm433_vm7, %v2482_v61, %v2483_v16  ;;  %v2539_v28 = vrot.slane %v4932_v62, 7  ;;  %v2540_v29 = vrot.slane %v4935_v9, 7  ;;  %vm5100_vm8 = vmmov %vm5099_vm3 }
 0x949   :  { %v2535_v26 = vsel %vm433_vm7, %v2533_v18, %v2534_v14  ;;  %v3572_v17 = vpack.i.bf16 %v2478_v45, %v2529_v20  ;;  %v2488_v32 = vrot.slane %v4926_v39, 7  ;;  %v2489_v34 = vrot.slane %v4929_v40, 7  ;;  %v2851_v20 = vld [vmem:[#allocation2 + $0x8] sm:$0xff] }
 0x94a   :  { %3563 = vrot.lane.b32.xlu0 %v3562_v19, %s3943_s21  ;;  %v3577_v30 = vpack.i.bf16 %v2484_v23, %v2535_v26  ;;  %v2541_v35 = vsel %vm176_vm0, %v2539_v28, %v2540_v29  ;;  %v2850_v19 = vld [vmem:[#allocation2] sm:$0xff]  ;;  %v2852_v23 = vld [vmem:[#allocation2 + $0x10] sm:$0xff]  ;;  %v2853_v26 = vld [vmem:[#allocation2 + $0x18] sm:$0xff] }
 0x94b   :  { %v2490_v36 = vsel %vm176_vm0, %v2488_v32, %v2489_v34  ;;  %v3290_v21 = vpack.c.bf16 %v2851_v20, %v2850_v19  ;;  %v3293_v25 = vpack.c.bf16 %v2853_v26, %v2852_v23  ;;  %v2855_v28 = vld [vmem:[#allocation2 + $0x28] sm:$0xff]  ;;  %v2857_v32 = vld [vmem:[#allocation2 + $0x38] sm:$0xff]  ;;  %v2858_v34 = vld [vmem:[#allocation2 + $0x40] sm:$0xff] }
 0x94c   :  { %3573 = vrot.lane.b32.xlu1 %v3572_v17, %s3949_s24  ;;  %v2854_v17 = vld [vmem:[#allocation2 + $0x20] sm:$0xff] }
 0x94d   :  { %v3296_v29 = vpack.c.bf16 %v2855_v28, %v2854_v17  ;;  %v2937_v17 = vand.u32 127, %v639_v6 }
 0x94e   :  { %3578 = vrot.lane.b32.xlu0 %v3577_v30, %s3946_s22  ;;  %v2856_v30 = vld [vmem:[#allocation2 + $0x30] sm:$0xff] }
 0x950   :  { %2542 = vrot.lane.b32.xlu1 %v2541_v35, %s3947_s27  ;;  %v2859_v35 = vld [vmem:[#allocation2 + $0x48] sm:$0xff] }
 0x952   :  { %2491 = vrot.lane.b32.xlu0 %v2490_v36, %s3947_s27  ;;  %v3302_v36 = vpack.c.bf16 %v2859_v35, %v2858_v34 }
 0x9b6   :  { %v3554_v3 = vpop.permute.xlu1 %3553 }
 0x9b7   :  { %v3556_v15 = vunpack.i.h.bf16 %v3554_v3  ;;  %v3555_v44 = vunpack.i.l.bf16 %v3554_v3  ;;  %v2860_v3 = vld [vmem:[#allocation2 + $0x50] sm:$0xff] }
 0x9b8   :  { %v3559_v37 = vpop.permute.xlu0 %3558 }
 0x9b9   :  { %v3561_v48 = vunpack.i.h.bf16 %v3559_v37  ;;  %v3560_v49 = vunpack.i.l.bf16 %v3559_v37  ;;  %v2861_v37 = vld [vmem:[#allocation2 + $0x58] sm:$0xff] }
 0x9ba   :  { %v3569_v9 = vpop.permute.xlu1 %3568 }
 0x9bb   :  { %v3570_v40 = vunpack.i.l.bf16 %v3569_v9  ;;  %v3571_v51 = vunpack.i.h.bf16 %v3569_v9  ;;  %v2496_v59 = vsel %vm506_vm10, %v3556_v15, %v3561_v48  ;;  %v2547_v31 = vsel %vm506_vm10, %v3555_v44, %v3560_v49  ;;  %vm5105_vm10 = vmmov %vm5104_vm11  ;;  %v2864_v49 = vld [vmem:[#allocation2 + $0x70] sm:$0xff] }
 0x9bc   :  { %v3564_v47 = vpop.permute.xlu0 %3563  ;;  %v3305_v9 = vpack.c.bf16 %v2861_v37, %v2860_v3 }
 0x9bd   :  { %v3566_v38 = vunpack.i.h.bf16 %v3564_v47  ;;  %v3565_v50 = vunpack.i.l.bf16 %v3564_v47  ;;  %v2548_v41 = vsel %vm5101_vm9, %v2547_v31, %v3570_v40  ;;  %v2497_v4 = vsel %vm5102_vm5, %v2496_v59, %v3571_v51  ;;  %v2865_v47 = vld [vmem:[#allocation2 + $0x78] sm:$0xff] }
 0x9be   :  { %v3574_v27 = vpop.permute.xlu1 %3573  ;;  %v3311_v40 = vpack.c.bf16 %v2865_v47, %v2864_v49 }
 0x9bf   :  { %v2545_v54 = vsel %vm5099_vm3, %v4932_v62, %v3565_v50  ;;  %v3576_v52 = vunpack.i.h.bf16 %v3574_v27  ;;  %v3575_v55 = vunpack.i.l.bf16 %v3574_v27  ;;  %v2494_v60 = vsel %vm5100_vm8, %v4926_v39, %v3566_v38  ;;  %v3045_v50 = vld [vmem:[%s5060_s1 + $0x8] ss:$0 sm:$0xff]  ;;  %s3956_s1 = smov [#allocation17]  }
 0x9c0   :  { %v2546_v57 = vsel %vm515_vm14, %v2545_v54, %v3555_v44  ;;  %v3579_v58 = vpop.permute.xlu0 %3578  ;;  %v2495_v8 = vsel %vm515_vm14, %v2494_v60, %v3556_v15  ;;  %v2862_v15 = vld [vmem:[#allocation2 + $0x60] sm:$0xff]  ;;  %v2863_v44 = vld [vmem:[#allocation2 + $0x68] sm:$0xff]  ;;  %v2573_v38 = vsub.s32 7, %v4404_v7  ;;  %s2959_s21 = sshll.u32 %s3956_s1, 4  ;;  %s2960_s21 = int_to_ptr.vmem [resolvable:$true] %s2959_s21 }
 0x9c1   :  { %v2555_v2 = vrot.slane %v2546_v57, 2  ;;  %v3581_v46 = vunpack.i.h.bf16 %v3579_v58  ;;  %v3580_v24 = vunpack.i.l.bf16 %v3579_v58  ;;  %v2549_v5 = vsel %vm5103_vm6, %v2548_v41, %v3575_v55  ;;  %s3895_s22 = scalar_lea.vmem %s2960_s21, 32  ;;  %p3900_p3 = scmp.lt.s32.totalorder %s2960_s21, %s2960_s21 }
 0x9c2   :  { %v2543_v62 = vpop.permute.xlu1 %2542  ;;  %v2556_v39 = vrot.slane %v2549_v5, 2  ;;  %v2498_v10 = vsel %vm5106_vm1, %v2497_v4, %v3576_v52  ;;  %v3308_v48 = vpack.c.bf16 %v2863_v44, %v2862_v15  ;;  %v2574_v27 = vrot.slane %v4778_v33, %v2573_v38  ;;  %p3896_p2 = scmp.ne.s32.totalorder %s2960_s21, %s3895_s22  ;;  %p3901_p4 = scmp.lt.s32.totalorder %s3895_s22, %s3895_s22 }
 0x9c3   :  { %v2550_v56 = vsel %vm5104_vm11, %v3575_v55, %v3580_v24  ;;  %v2499_v1 = vsel %vm5105_vm10, %v3576_v52, %v3581_v46  ;;  %v2563_v13 = vsel %vm199_vm2, %v2495_v8, %v2555_v2  ;;  %v2231_v55 = vadd.f32 %v3045_v50, %v4857_v0 }
 0x9c4   :  { %v2551_v11 = vsel %vm5107_vm13, %v2550_v56, %v2543_v62  ;;  %v2492_v12 = vpop.permute.xlu0 %2491  ;;  %v2564_v61 = vsel %vm199_vm2, %v2498_v10, %v2556_v39  ;;  %v2567_v18 = vpack.c.bf16 %v2555_v2, %v2563_v13  ;;  %v2234_v41 = vadd.f32 %v3045_v50, %v4859_v43  ;;  %p3902_p5 = por %p3901_p4, %p3900_p3 }
 0x9c5   :  { %v2557_v42 = vrot.slane %v2551_v11, 2  ;;  %v2500_v53 = vsel %vm5108_vm15, %v2499_v1, %v2492_v12  ;;  %v2568_v45 = vpack.c.bf16 %v2556_v39, %v2564_v61  ;;  %v2237_v24 = vmax.f32 %v2231_v55, 0.0 }
 0x9c6   :  { %v2238_v5 = vmax.f32 %v2234_v41, 0.0  ;;  %p3903_p6 = pnand %p3902_p5, %p3896_p2 }
 0x9c7   :  { %v2565_v16 = vsel %vm199_vm2, %v2500_v53, %v2557_v42  ;;  %2772 = vmatprep.mubr.bf16.mxu0 %v2568_v45 }
 0x9c8   :  { %v2569_v14 = vpack.c.bf16 %v2557_v42, %v2565_v16  ;;  %2773 = vmatmul.mubr.bf16.vlgmr.msra.gmra.mrb[24].mxu0 %v2567_v18 }
 0x9c9   :  { %3286 = vmatprep.mubr.msk.f32.mxu0 %vm3954_vm12, %v3950_v63  ;;  %3291 = vmatpush3.bf16.msra.mxu0 %v3290_v21  ;;  %v3299_v63 = vpack.c.bf16 %v2857_v32, %v2856_v30  ;;  %vm2938_vm12 = vcmp.lt.s32.totalorder %v2937_v17, 3 }
 0x9ca   :  { %2814 = vmatmul.mubr.bf16.vlgmr.msra.gmra.mrb[24].mxu1 %v2569_v14  ;;  %3292 = vmatprep.subr.bf16.mxu0 %v3955_v22 }
 0x9cd   :  { %3294 = vmatpush3.bf16.msra.mxu0 %v3293_v25 }
 0x9ce   :  { %3295 = vmatprep.subr.bf16.mxu0 %v3955_v22 }
 0x9d1   :  { %3297 = vmatpush3.bf16.msra.mxu0 %v3296_v29 }
 0x9d2   :  { %3298 = vmatprep.subr.bf16.mxu0 %v3955_v22 }
 0x9d5   :  { %3300 = vmatpush3.bf16.msra.mxu0 %v3299_v63 }
 0x9d6   :  { %3301 = vmatprep.subr.bf16.mxu0 %v3955_v22 }
 0x9d9   :  { %3303 = vmatpush3.bf16.msra.mxu0 %v3302_v36 }
 0x9da   :  { %3304 = vmatprep.subr.bf16.mxu0 %v3955_v22 }
 0x9dd   :  { %3306 = vmatpush3.bf16.msra.mxu0 %v3305_v9 }
 0x9de   :  { %3307 = vmatprep.subr.bf16.mxu0 %v3955_v22 }
 0x9e1   :  { %3309 = vmatpush3.bf16.msra.mxu0 %v3308_v48 }
 0x9e2   :  { %3310 = vmatprep.subr.bf16.mxu0 %v3955_v22 }
 0x9e5   :  { %3312 = vmatpush3.bf16.msra.mxu0 %v3311_v40 }
 0xa9b   :  { %v3179_v51 = vpop.f32.mrb[24].mxu0 }
 0xa9c   :  { %v3180_v54 = vpop.f32.mrb[25].mxu0 }
 0xa9d   :  { %v2815_v52 = vpop.f32.mrb[24].mxu1  ;;  %v3181_v59 = vadd.f32 %v3180_v54, %v3179_v51  ;;  %v3182_v31 = vpop.f32.mrb[26].mxu0 }
 0xa9e   :  { %v2817_v60 = vpop.f32.mrb[25].mxu1  ;;  %v3183_v57 = vpop.f32.mrb[27].mxu0 }
 0xa9f   :  { %v2818_v58 = vpop.f32.mrb[26].mxu1  ;;  %v2775_v2 = vadd.f32 %v3181_v59, %v2574_v27  ;;  %v3184_v7 = vadd.f32 %v3183_v57, %v3182_v31 }
 0xaa0   :  { %v2820_v46 = vpop.f32.mrb[27].mxu1 }
 0xaa1   :  { %v2816_v4 = vadd.f32 %v2815_v52, %v2775_v2  ;;  %v2778_v62 = vadd.f32 %v3184_v7, %v2574_v27 }
 0xaa3   :  { %v2822_v8 = vadd.f32 %v2816_v4, %v2237_v24  ;;  %v2819_v33 = vadd.f32 %v2818_v58, %v2778_v62 }
 0xaa5   :  { %v2824_v56 = vmax.f32 %v2822_v8, 0.0  ;;  %v2823_v1 = vadd.f32 %v2819_v33, %v2238_v5 }
 0xaa7   :  { %v2826_v0 = vsel %vm199_vm2, %v2824_v56, 0.0  ;;  %v2825_v39 = vmax.f32 %v2823_v1, 0.0  ;;  %v2837_v11 = vrot.slane %v2824_v56, 6 }
 0xaa8   :  { %v2827_v10 = vrot.slane %v2826_v0, 4 }
 0xaa9   :  { %v2838_v12 = vrot.slane %v2825_v39, 6 }
 0xaaa   :  { %v2828_v13 = vadd.f32 %v2827_v10, %v2826_v0 }
 0xaab   :  { %v2839_v43 = vsel %vm433_vm7, %v2837_v11, %v2838_v12 }
 0xaac   :  { %v2829_v42 = vrot.slane %v2828_v13, 2  ;;  %v2841_v53 = vsel %vm199_vm2, %v2839_v43, 0.0 }
 0xaad   :  { %v2842_v61 = vrot.slane %v2841_v53, 4 }
 0xaae   :  { %v2830_v45 = vadd.f32 %v2829_v42, %v2828_v13 }
 0xaaf   :  { %v2843_v16 = vadd.f32 %v2842_v61, %v2841_v53 }
 0xab0   :  { %v2831_v18 = vrot.slane %v2830_v45, 1 }
 0xab1   :  { %v2844_v14 = vrot.slane %v2843_v16, 2 }
 0xab2   :  { %v2832_v20 = vadd.f32 %v2831_v18, %v2830_v45 }
 0xab3   :  { %v2845_v19 = vadd.f32 %v2844_v14, %v2843_v16 }
 0xab4   :  { %v2834_v23 = vmul.f32 0.16666667, %v2832_v20 }
 0xab5   :  { %v2846_v21 = vrot.slane %v2845_v19, 1 }
 0xab7   :  { %v2847_v22 = vadd.f32 %v2846_v21, %v2845_v19 }
 0xab9   :  { %v2848_v26 = vmul.f32 0.16666667, %v2847_v22 }
 0xabb   :  { %v2849_v25 = vsel %vm176_vm0, %v2834_v23, %v2848_v26 }
 0xabc   :  { %3287 = vmatmul.mubr.f32.vlgmr.msra.gmra.mrb[28].mxu0 %v2849_v25 }
 0xb8f   :  { %v2932_v28 = vpop.f32.mrb[28].mxu0 }
 0xb90   :  { %v2939_v29 = vsel %vm2938_vm12, %v2932_v28, -1e+30  ;;  %v3288_v30 = vpop.f32.mrb[29].mxu0 }
 0xb91   :  { %v2940_v32 = vsel %vm433_vm7, %v2939_v29, -inf }
 0xb92   :  { %2941 = vmax.xlane.f32.xlu1 %v2940_v32 }
 0xc1f   :  { %v2942_v63 = vpop.xlane.xlu1 %2941 }
 0xc20   :  { %v2943_v34 = vsub.f32 %v2939_v29, %v2942_v63 }
 0xc22   :  { %v2944_v35 = vmul.f32 1.442695, %v2943_v34 }
 0xc24   :  { %3692 = vpow2.f32 %v2944_v35 }
 0xc2e   :  { %v3693_v36 = vpop.eup %3692 }
 0xc2f   :  { %v2946_v3 = vsel %vm433_vm7, %v3693_v36, 0.0 }
 0xc30   :  { %2947 = vadd.xlane.f32.xlu0 %v2946_v3 }
 0xcbd   :  { %v2948_v37 = vpop.xlane.xlu0 %2947 }
 0xcbe   :  { %3694 = vlog2.f32 %v2948_v37 }
 0xcc8   :  { %v3695_v9 = vpop.eup %3694 }
 0xcc9   :  { %v2950_v6 = vmul.f32 0.6931472, %v3695_v9 }
 0xccb   :  { %v2951_v15 = vsub.f32 %v2943_v34, %v2950_v6 }
 0xccd   :  { %2952 = vst [vmem:[#allocation17] sm:$0x3] %v2951_v15 }
 0xcce   :  { %3906 = shalt.err (!%p3903_p6)
}
 0xccf   :  { %s3907_s17 = scalar_lea.hbm %s5072_s13, 32 }
 0xcd0   :  { %p3908_p7 = scmp.ne.s32.totalorder %s5072_s13, %s3907_s17  ;;  %p3911_p8 = scmp.lt.u32.totalorder %s3907_s17, %s5072_s13 }
 0xcd2   :  { %p3913_p9 = pnand %p3911_p8, %p3908_p7 }
 0xcd4   :  { %3916 = shalt.err (!%p3913_p9)
}
 0xcd5   :  { %2962 = dma.vmem_to_hbm [thread:$0]  %s2960_s21, 32, %s5072_s13, [#allocation4]  }
 0xcd6   :  { %3927 = dma.done.wait [#allocation4], 32  }
 0xcd7   :  { %3928 = vsyncadd [#allocation4], 4294967264 }
 0xcd8   :  { %2966 = vsyncpa [#allocation3], 1 }
 0xcd9   :  { %2967 = vsyncpa [#allocation6], 1 }
 0xcda   :  { %2968 = vsyncpa [#allocation9], 1 }
 0xcdb   :  { %2969 = vsyncpa [#allocation12], 1 }
 0xcdc   :  { %2970 = vsyncpa [#allocation15], 1 }
 0xcdd   :  { %2971 = vsyncpa [#allocation4], 1 }

</bundles_post_ra>
